<compile_context>
chip_gen: v6e
topology: v6e:2x2x1
jax: 0.10.0
libtpu: 0.0.40
codegen_flags: <defaults>
</compile_context>

<pallas_src>
import numpy as np
import jax
import jax.numpy as jnp
from jax.experimental import pallas as pl
from jax.experimental.pallas import tpu as pltpu

_EPS = 1e-5

# ConvTranspose2d(kernel=4, stride=2, padding=1): for output row/col parity r,
# the contributing (kernel tap kh, start offset sh into the 1-zero-padded input).
_CT_TAPS = (((1, 1), (3, 0)),   # output parity 0
            ((0, 2), (2, 1)))   # output parity 1


# --------------------------- host-side helpers ------------------------------
def _upsample_pairs(n):
    """Bilinear x2 (align_corners=False): per output index -> (src0, w0, src1, w1)."""
    out = []
    for u in range(2 * n):
        k = u // 2
        if u % 2 == 0:
            out.append((max(k - 1, 0), 0.25, k, 0.75))
        else:
            out.append((k, 0.75, min(k + 1, n - 1), 0.25))
    return out


def _reflect1(i, n):
    """ReflectionPad2d(1) source index for padded index i on a length-n axis."""
    if i == 0:
        return 1
    if i == n + 1:
        return n - 2
    return i - 1


def _vrow_spec(h0):
    """Padded+upsampled row i -> (input row a, wa, input row b, wb)."""
    h1 = 2 * h0
    pairs = _upsample_pairs(h0)
    return [pairs[_reflect1(i, h1)] for i in range(h1 + 2)]


def _build_up_matrix(w0):
    """(W0, W1+2): horizontal bilinear x2 + ReflectionPad(1), as a right matmul."""
    w1 = 2 * w0
    pairs = _upsample_pairs(w0)
    up = np.zeros((w0, w1 + 2), np.float32)
    for j in range(w1 + 2):
        a, wa, b, wb = pairs[_reflect1(j, w1)]
        up[a, j] += wa
        up[b, j] += wb
    return up


def _build_recomb_matrix(w1):
    """(2*W1, W2+10): column-parity interleave + ReflectionPad(4) + zero-pad(1)."""
    w2 = 2 * w1
    wp2 = w2 + 10
    g = np.zeros((2 * w1, wp2), np.float32)
    for j in range(1, wp2 - 1):
        p = j - 5
        src = -p if p < 0 else (2 * w2 - 2 - p if p >= w2 else p)
        g[(src % 2) * w1 + src // 2, j] = 1.0
    return g


def _pack_conv_weight(w_oihw):
    """(Co, Ci, 3, 3) -> (Co, 9*Ci); columns ordered (kh, kw, ci)."""
    co, ci, kh, kw = w_oihw.shape
    return np.transpose(w_oihw, (0, 2, 3, 1)).reshape(co, kh * kw * ci)


def _pack_convt_weight(w_iohw):
    """(Ci, Co, 4, 4) -> (4*Co, 9*Ci): one row block per output phase p = 2r+c,
    column blocks ordered by (sh, sw) tap offset into the zero-padded input."""
    ci, co = w_iohw.shape[:2]
    out = np.zeros((4 * co, 9 * ci), np.float32)
    for r in range(2):
        for c in range(2):
            p = 2 * r + c
            for kh, sh in _CT_TAPS[r]:
                for kw, sw in _CT_TAPS[c]:
                    t = sh * 3 + sw
                    out[p * co:(p + 1) * co, t * ci:(t + 1) * ci] = w_iohw[:, :, kh, kw].T
    return out


# -------------------------------- kernel ------------------------------------
def _decoder_kernel(x_ref, up_ref, w1_ref, wt_ref, g_ref, w2_ref, b2_ref,
                    o_ref,
                    p1_ref, y1p_ref, s1_ref, s2_ref, y2w_ref, y2p_ref, s3_ref):
    f32, bf16 = jnp.float32, jnp.bfloat16
    _, H0, Cin, W0 = x_ref.shape
    Cout = w1_ref.shape[0]
    C2 = w2_ref.shape[1] // 9
    H1, W1 = 2 * H0, 2 * W0
    Hp1, Wp1 = H1 + 2, W1 + 2
    Np1 = H1 * Wp1                       # wide pixel count after upsample
    H2, W2 = 2 * H1, 2 * W1
    H3 = H2 + 8
    Hp2, Wp2 = H2 + 10, W2 + 10
    Np3 = H3 * Wp2                       # wide pixel count of the final output

    # ---- Bilinear x2 upsample + ReflectionPad2d(1), written flat row-major ----
    # Horizontal direction (incl. reflect columns) is one small matmul; the
    # vertical direction blends at most two upsampled rows per output row.
    xu = jnp.dot(x_ref[0].astype(f32).reshape(H0 * Cin, W0), up_ref[...],
                 preferred_element_type=f32)                    # (H0*Cin, Wp1)
    for i, (a, wa, b, wb) in enumerate(_vrow_spec(H0)):
        row = wa * xu[a * Cin:(a + 1) * Cin, :] + wb * xu[b * Cin:(b + 1) * Cin, :]
        p1_ref[:, i * Wp1:(i + 1) * Wp1] = row.astype(bf16)
    p1_ref[:, Hp1 * Wp1:] = jnp.zeros((Cin, 2), bf16)           # 2-lane tail

    # ---- Conv2d(Cin->Cout, 3x3): lane-dense im2col + one (Co,K)@(K,Npix) dot ----
    for kh in range(3):
        for kw in range(3):
            t, off = kh * 3 + kw, kh * Wp1 + kw
            s1_ref[t * Cin:(t + 1) * Cin, :] = p1_ref[:, off:off + Np1]
    acc1 = jnp.dot(w1_ref[...], s1_ref[...], preferred_element_type=f32)  # (Cout, Np1)

    # Wide rows carry 2 junk lanes each; mask them out of the IN statistics.
    lane = jax.lax.broadcasted_iota(jnp.int32, (1, Np1), 1)
    valid = (lane % Wp1) < W1

    # InstanceNorm(affine=False) + ReLU (conv bias cancels against IN -> dropped).
    n1 = H1 * W1
    m1 = jnp.where(valid, acc1, 0.0)
    mu1 = jnp.sum(m1, axis=1, keepdims=True) / n1
    var1 = jnp.maximum(jnp.sum(m1 * m1, axis=1, keepdims=True) / n1 - mu1 * mu1, 0.0)
    y1 = jnp.where(valid, jnp.maximum((acc1 - mu1) * jax.lax.rsqrt(var1 + _EPS), 0.0), 0.0)

    # Zero-pad(1) image for the transposed conv: the zeroed junk lanes land
    # exactly on the pad columns after one shifted copy; only borders need zeroing.
    y1p_ref[:, 0:Wp1 + 1] = jnp.zeros((Cout, Wp1 + 1), bf16)
    y1p_ref[:, Wp1 + 1:Wp1 + 1 + Np1] = y1.astype(bf16)
    y1p_ref[:, Wp1 + 1 + Np1:] = jnp.zeros((Cout, Wp1 + 1), bf16)

    # ---- ConvTranspose2d(Cout->C2, 4, s=2, p=1): 4 stride-2 phases, ONE matmul ----
    for sh in range(3):
        for sw in range(3):
            t, off = sh * 3 + sw, sh * Wp1 + sw
            s2_ref[t * Cout:(t + 1) * Cout, :] = y1p_ref[:, off:off + Np1]
    acc2 = jnp.dot(wt_ref[...], s2_ref[...], preferred_element_type=f32)  # (4*C2, Np1)

    # InstanceNorm statistics over all 4 phases (= full H2 x W2 image) + ReLU.
    n2 = H2 * W2
    m2 = jnp.where(valid, acc2, 0.0)
    s_r = jnp.sum(m2, axis=1, keepdims=True)
    q_r = jnp.sum(m2 * m2, axis=1, keepdims=True)
    s_c = s_r[0:C2] + s_r[C2:2 * C2] + s_r[2 * C2:3 * C2] + s_r[3 * C2:4 * C2]
    q_c = q_r[0:C2] + q_r[C2:2 * C2] + q_r[2 * C2:3 * C2] + q_r[3 * C2:4 * C2]
    mu2 = s_c / n2
    inv2 = jax.lax.rsqrt(jnp.maximum(q_c / n2 - mu2 * mu2, 0.0) + _EPS)
    mu2b = jnp.concatenate([mu2] * 4, axis=0)
    inv2b = jnp.concatenate([inv2] * 4, axis=0)
    y2w_ref[...] = jnp.where(
        valid, jnp.maximum((acc2 - mu2b) * inv2b, 0.0), 0.0).astype(bf16)

    # ---- Recombine phases + ReflectionPad2d(4) + zero-pad(1), flat layout ----
    # Column interleave / reflection is one fixed 0/1 right-matmul per image row;
    # vertical reflections are cheap copies of already-written rows.
    g = g_ref[...]
    y2p_ref[:, 0:Wp2] = jnp.zeros((C2, Wp2), bf16)              # top zero row
    for oi in range(H2):
        r, m = oi % 2, oi // 2
        seg0 = y2w_ref[(2 * r) * C2:(2 * r + 1) * C2, m * Wp1:m * Wp1 + W1]
        seg1 = y2w_ref[(2 * r + 1) * C2:(2 * r + 2) * C2, m * Wp1:m * Wp1 + W1]
        row = jnp.dot(jnp.concatenate([seg0, seg1], axis=1), g,
                      preferred_element_type=f32)               # (C2, Wp2)
        y2p_ref[:, (oi + 5) * Wp2:(oi + 6) * Wp2] = row.astype(bf16)
    for dst, src in ((1, 4), (2, 3), (3, 2), (4, 1),
                     (H2 + 5, H2 - 2), (H2 + 6, H2 - 3),
                     (H2 + 7, H2 - 4), (H2 + 8, H2 - 5)):
        y2p_ref[:, dst * Wp2:(dst + 1) * Wp2] = y2p_ref[:, (src + 5) * Wp2:(src + 6) * Wp2]
    y2p_ref[:, (Hp2 - 1) * Wp2:] = jnp.zeros((C2, Wp2 + 2), bf16)  # bottom row + tail

    # ---- Conv2d(C2->3, 3x3) on the reflect(4)+zero(1) image: im2col + one dot ----
    for kh in range(3):
        for kw in range(3):
            t, off = kh * 3 + kw, kh * Wp2 + kw
            s3_ref[t * C2:(t + 1) * C2, :] = y2p_ref[:, off:off + Np3]
    out = jnp.dot(w2_ref[...], s3_ref[...], preferred_element_type=f32) + b2_ref[...]
    o_ref[0] = out.astype(o_ref.dtype)   # (3, H3*Wp2); 2 junk cols/row cropped outside


# ------------------------------- wrapper ------------------------------------
def decoder_pallas(x_nchw, w1p, wtp, w2p, b2):
    N, Cin, H0, W0 = x_nchw.shape
    assert H0 >= 2 and W0 >= 2, "spatial dims too small for the reflection pads"
    Cout = w1p.shape[0]
    C2 = w2p.shape[1] // 9
    H1, W1 = 2 * H0, 2 * W0
    Hp1, Wp1 = H1 + 2, W1 + 2
    Np1 = H1 * Wp1
    H2, W2 = 2 * H1, 2 * W1
    H3, W3 = H2 + 8, W2 + 8
    Hp2, Wp2 = H2 + 10, W2 + 10
    Np3 = H3 * Wp2

    up = jnp.asarray(_build_up_matrix(W0))                           # (W0, Wp1) f32
    g = jnp.asarray(_build_recomb_matrix(W1), dtype=jnp.bfloat16)    # (2*W1, Wp2)

    # (N, C, H, W) -> (N, H, C, W): tiny input transpose so rows of all channels
    # are contiguous sublane blocks in-kernel. Output needs NO transpose at all.
    x_hcw = jnp.transpose(x_nchw, (0, 2, 1, 3))

    out_wide = pl.pallas_call(
        _decoder_kernel,
        out_shape=jax.ShapeDtypeStruct((N, 3, Np3), jnp.float32),
        grid=(N,),
        in_specs=[
            pl.BlockSpec((1, H0, Cin, W0), lambda n: (n, 0, 0, 0)),
            pl.BlockSpec((W0, Wp1), lambda n: (0, 0)),
            pl.BlockSpec((Cout, 9 * Cin), lambda n: (0, 0)),
            pl.BlockSpec((4 * C2, 9 * Cout), lambda n: (0, 0)),
            pl.BlockSpec((2 * W1, Wp2), lambda n: (0, 0)),
            pl.BlockSpec((3, 9 * C2), lambda n: (0, 0)),
            pl.BlockSpec((3, 1), lambda n: (0, 0)),
        ],
        out_specs=pl.BlockSpec((1, 3, Np3), lambda n: (n, 0, 0)),
        scratch_shapes=[
            pltpu.VMEM((Cin, Hp1 * Wp1 + 2), jnp.bfloat16),    # upsampled + reflect(1), flat
            pltpu.VMEM((Cout, Hp1 * Wp1 + 2), jnp.bfloat16),   # zero-pad(1) conv1 output, flat
            pltpu.VMEM((9 * Cin, Np1), jnp.bfloat16),          # im2col, conv1
            pltpu.VMEM((9 * Cout, Np1), jnp.bfloat16),         # im2col, convT phases
            pltpu.VMEM((4 * C2, Np1), jnp.bfloat16),           # normalized convT phases
            pltpu.VMEM((C2, Hp2 * Wp2 + 2), jnp.bfloat16),     # reflect(4)+zero(1) image, flat
            pltpu.VMEM((9 * C2, Np3), jnp.bfloat16),           # im2col, final conv
        ],
        compiler_params=pltpu.CompilerParams(
            dimension_semantics=("parallel",),
            vmem_limit_bytes=32 * 1024 * 1024),
    )(x_hcw, up, w1p, wtp, g, w2p, b2)

    # Free contiguous reshape + tiny crop of the 2 junk lanes per output row.
    return out_wide.reshape(N, 3, H3, Wp2)[:, :, :, :W3]


def init_params(key, in_channels, out_channels):
    half = out_channels // 2
    k1, k2, k3, _, k5, k6 = jax.random.split(key, 6)
    # Deterministic synthetic weights in PyTorch layouts.
    w1_oihw = 0.1 * jax.random.normal(k1, (out_channels, in_channels, 3, 3), jnp.float32)
    wt_iohw = 0.1 * jax.random.normal(k3, (out_channels, half, 4, 4), jnp.float32)
    w2_oihw = 0.1 * jax.random.normal(k5, (3, half, 3, 3), jnp.float32)
    b2 = 0.1 * jax.random.normal(k6, (3,), jnp.float32)
    # conv1 / convT biases are exact no-ops (cancelled by InstanceNorm) -> omitted.
    _ = k2

    w1p = jnp.asarray(_pack_conv_weight(np.asarray(w1_oihw)), jnp.bfloat16)
    wtp = jnp.asarray(_pack_convt_weight(np.asarray(wt_iohw)), jnp.bfloat16)
    w2p = jnp.asarray(_pack_conv_weight(np.asarray(w2_oihw)), jnp.bfloat16)
    return {"w1p": w1p, "wtp": wtp, "w2p": w2p, "b2": b2.reshape(3, 1)}


@jax.jit
def decoder_forward(x_nchw, params):
    return decoder_pallas(x_nchw, params["w1p"], params["wtp"],
                          params["w2p"], params["b2"])


if __name__ == "__main__":
    key = jax.random.PRNGKey(0)
    kx, kp = jax.random.split(key)
    N, Cin, Cout, H, W = 2, 8, 8, 8, 8
    x = jax.random.normal(kx, (N, Cin, H, W), jnp.float32)
    params = init_params(kp, Cin, Cout)

    y = decoder_forward(x, params)
    jax.block_until_ready(y)

    expected = (N, 3, 4 * H + 8, 4 * W + 8)                 # (2, 3, 40, 40)
    assert y.shape == expected, (y.shape, expected)
    assert bool(jnp.all(jnp.isfinite(y)))
    print("KERNEL_OK")
</pallas_src>

<mosaic_0001>
module attributes {stable_mosaic.version = 11 : i64} {
  func.func @_decoder_kernel(%arg0: i32, %arg1: memref<1x8x8x8xf32, #tpu.memory_space<vmem>>, %arg2: memref<8x18xf32, #tpu.memory_space<vmem>>, %arg3: memref<8x72xbf16, #tpu.memory_space<vmem>>, %arg4: memref<16x72xbf16, #tpu.memory_space<vmem>>, %arg5: memref<32x42xbf16, #tpu.memory_space<vmem>>, %arg6: memref<3x36xbf16, #tpu.memory_space<vmem>>, %arg7: memref<3x1xf32, #tpu.memory_space<vmem>>, %arg8: memref<1x3x1680xf32, #tpu.memory_space<vmem>>, %arg9: memref<8x326xbf16, #tpu.memory_space<vmem>>, %arg10: memref<8x326xbf16, #tpu.memory_space<vmem>>, %arg11: memref<72x288xbf16, #tpu.memory_space<vmem>>, %arg12: memref<72x288xbf16, #tpu.memory_space<vmem>>, %arg13: memref<16x288xbf16, #tpu.memory_space<vmem>>, %arg14: memref<4x1766xbf16, #tpu.memory_space<vmem>>, %arg15: memref<36x1680xbf16, #tpu.memory_space<vmem>>) attributes {dimension_semantics = [#tpu.dimension_semantics<parallel>], iteration_bounds = array<i64: 2>, scalar_prefetch = 0 : i64, scratch_operands = 7 : i64, tpu.core_type = #tpu.core_type<tc>, window_params = [{transform_indices = @transform_0, window_bounds = array<i64: 1, 8, 8, 8>}, {pipeline_mode = #tpu.pipeline_mode<synchronous>, transform_indices = @transform_1, window_bounds = array<i64: 8, 18>}, {pipeline_mode = #tpu.pipeline_mode<synchronous>, transform_indices = @transform_2, window_bounds = array<i64: 8, 72>}, {pipeline_mode = #tpu.pipeline_mode<synchronous>, transform_indices = @transform_3, window_bounds = array<i64: 16, 72>}, {pipeline_mode = #tpu.pipeline_mode<synchronous>, transform_indices = @transform_4, window_bounds = array<i64: 32, 42>}, {pipeline_mode = #tpu.pipeline_mode<synchronous>, transform_indices = @transform_5, window_bounds = array<i64: 3, 36>}, {pipeline_mode = #tpu.pipeline_mode<synchronous>, transform_indices = @transform_6, window_bounds = array<i64: 3, 1>}, {transform_indices = @transform_7, window_bounds = array<i64: 1, 3, 1680>}]} {
    %c0 = arith.constant 0 : index
    %c0_0 = arith.constant 0 : index
    %c0_1 = arith.constant 0 : index
    %c0_2 = arith.constant 0 : index
    %0 = vector.load %arg1[%c0, %c0_0, %c0_1, %c0_2] : memref<1x8x8x8xf32, #tpu.memory_space<vmem>>, vector<1x8x8x8xf32>
    %1 = vector.shape_cast %0 : vector<1x8x8x8xf32> to vector<8x8x8xf32>
    %2 = vector.shape_cast %1 : vector<8x8x8xf32> to vector<64x8xf32>
    %c0_3 = arith.constant 0 : index
    %c0_4 = arith.constant 0 : index
    %3 = vector.load %arg2[%c0_3, %c0_4] : memref<8x18xf32, #tpu.memory_space<vmem>>, vector<8x18xf32>
    %cst = arith.constant dense<0.000000e+00> : vector<64x18xf32>
    %4 = tpu.matmul %2, %3, %cst {dimension_numbers = #tpu.dot_dimension_numbers<[1], [0], [0], [1], [0, 0, 1, 1], [], []>} : vector<64x8xf32>, vector<8x18xf32>, vector<64x18xf32> -> vector<64x18xf32>
    %5 = vector.extract_strided_slice %4 {offsets = [0, 0], sizes = [8, 18], strides = [1, 1]} : vector<64x18xf32> to vector<8x18xf32>
    %cst_5 = arith.constant 7.500000e-01 : f32
    %6 = vector.broadcast %cst_5 : f32 to vector<8x18xf32>
    %7 = arith.mulf %6, %5 : vector<8x18xf32>
    %8 = vector.extract_strided_slice %4 {offsets = [8, 0], sizes = [8, 18], strides = [1, 1]} : vector<64x18xf32> to vector<8x18xf32>
    %cst_6 = arith.constant 2.500000e-01 : f32
    %9 = vector.broadcast %cst_6 : f32 to vector<8x18xf32>
    %10 = arith.mulf %9, %8 : vector<8x18xf32>
    %11 = arith.addf %7, %10 : vector<8x18xf32>
    %12 = arith.truncf %11 : vector<8x18xf32> to vector<8x18xbf16>
    %c0_7 = arith.constant 0 : index
    %c0_8 = arith.constant 0 : index
    %13 = vector.load %arg9[%c0_7, %c0_8] : memref<8x326xbf16, #tpu.memory_space<vmem>>, vector<8x18xbf16>
    tpu.vector_store %arg9[%c0_7, %c0_8], %12 {strides = array<i32>} : memref<8x326xbf16, #tpu.memory_space<vmem>>, vector<8x18xbf16>,
    %14 = vector.extract_strided_slice %4 {offsets = [0, 0], sizes = [8, 18], strides = [1, 1]} : vector<64x18xf32> to vector<8x18xf32>
    %cst_9 = arith.constant 2.500000e-01 : f32
    %15 = vector.broadcast %cst_9 : f32 to vector<8x18xf32>
    %16 = arith.mulf %15, %14 : vector<8x18xf32>
    %17 = vector.extract_strided_slice %4 {offsets = [0, 0], sizes = [8, 18], strides = [1, 1]} : vector<64x18xf32> to vector<8x18xf32>
    %cst_10 = arith.constant 7.500000e-01 : f32
    %18 = vector.broadcast %cst_10 : f32 to vector<8x18xf32>
    %19 = arith.mulf %18, %17 : vector<8x18xf32>
    %20 = arith.addf %16, %19 : vector<8x18xf32>
    %21 = arith.truncf %20 : vector<8x18xf32> to vector<8x18xbf16>
    %c0_11 = arith.constant 0 : index
    %c18 = arith.constant 18 : index
    %22 = vector.load %arg9[%c0_11, %c18] : memref<8x326xbf16, #tpu.memory_space<vmem>>, vector<8x18xbf16>
    tpu.vector_store %arg9[%c0_11, %c18], %21 {strides = array<i32>} : memref<8x326xbf16, #tpu.memory_space<vmem>>, vector<8x18xbf16>,
    %23 = vector.extract_strided_slice %4 {offsets = [0, 0], sizes = [8, 18], strides = [1, 1]} : vector<64x18xf32> to vector<8x18xf32>
    %cst_12 = arith.constant 7.500000e-01 : f32
    %24 = vector.broadcast %cst_12 : f32 to vector<8x18xf32>
    %25 = arith.mulf %24, %23 : vector<8x18xf32>
    %26 = vector.extract_strided_slice %4 {offsets = [8, 0], sizes = [8, 18], strides = [1, 1]} : vector<64x18xf32> to vector<8x18xf32>
    %cst_13 = arith.constant 2.500000e-01 : f32
    %27 = vector.broadcast %cst_13 : f32 to vector<8x18xf32>
    %28 = arith.mulf %27, %26 : vector<8x18xf32>
    %29 = arith.addf %25, %28 : vector<8x18xf32>
    %30 = arith.truncf %29 : vector<8x18xf32> to vector<8x18xbf16>
    %c0_14 = arith.constant 0 : index
    %c36 = arith.constant 36 : index
    %31 = vector.load %arg9[%c0_14, %c36] : memref<8x326xbf16, #tpu.memory_space<vmem>>, vector<8x18xbf16>
    tpu.vector_store %arg9[%c0_14, %c36], %30 {strides = array<i32>} : memref<8x326xbf16, #tpu.memory_space<vmem>>, vector<8x18xbf16>,
    %32 = vector.extract_strided_slice %4 {offsets = [0, 0], sizes = [8, 18], strides = [1, 1]} : vector<64x18xf32> to vector<8x18xf32>
    %cst_15 = arith.constant 2.500000e-01 : f32
    %33 = vector.broadcast %cst_15 : f32 to vector<8x18xf32>
    %34 = arith.mulf %33, %32 : vector<8x18xf32>
    %35 = vector.extract_strided_slice %4 {offsets = [8, 0], sizes = [8, 18], strides = [1, 1]} : vector<64x18xf32> to vector<8x18xf32>
    %cst_16 = arith.constant 7.500000e-01 : f32
    %36 = vector.broadcast %cst_16 : f32 to vector<8x18xf32>
    %37 = arith.mulf %36, %35 : vector<8x18xf32>
    %38 = arith.addf %34, %37 : vector<8x18xf32>
    %39 = arith.truncf %38 : vector<8x18xf32> to vector<8x18xbf16>
    %c0_17 = arith.constant 0 : index
    %c54 = arith.constant 54 : index
    %40 = vector.load %arg9[%c0_17, %c54] : memref<8x326xbf16, #tpu.memory_space<vmem>>, vector<8x18xbf16>
    tpu.vector_store %arg9[%c0_17, %c54], %39 {strides = array<i32>} : memref<8x326xbf16, #tpu.memory_space<vmem>>, vector<8x18xbf16>,
    %41 = vector.extract_strided_slice %4 {offsets = [8, 0], sizes = [8, 18], strides = [1, 1]} : vector<64x18xf32> to vector<8x18xf32>
    %cst_18 = arith.constant 7.500000e-01 : f32
    %42 = vector.broadcast %cst_18 : f32 to vector<8x18xf32>
    %43 = arith.mulf %42, %41 : vector<8x18xf32>
    %44 = vector.extract_strided_slice %4 {offsets = [16, 0], sizes = [8, 18], strides = [1, 1]} : vector<64x18xf32> to vector<8x18xf32>
    %cst_19 = arith.constant 2.500000e-01 : f32
    %45 = vector.broadcast %cst_19 : f32 to vector<8x18xf32>
    %46 = arith.mulf %45, %44 : vector<8x18xf32>
    %47 = arith.addf %43, %46 : vector<8x18xf32>
    %48 = arith.truncf %47 : vector<8x18xf32> to vector<8x18xbf16>
    %c0_20 = arith.constant 0 : index
    %c72 = arith.constant 72 : index
    %49 = vector.load %arg9[%c0_20, %c72] : memref<8x326xbf16, #tpu.memory_space<vmem>>, vector<8x18xbf16>
    tpu.vector_store %arg9[%c0_20, %c72], %48 {strides = array<i32>} : memref<8x326xbf16, #tpu.memory_space<vmem>>, vector<8x18xbf16>,
    %50 = vector.extract_strided_slice %4 {offsets = [8, 0], sizes = [8, 18], strides = [1, 1]} : vector<64x18xf32> to vector<8x18xf32>
    %cst_21 = arith.constant 2.500000e-01 : f32
    %51 = vector.broadcast %cst_21 : f32 to vector<8x18xf32>
    %52 = arith.mulf %51, %50 : vector<8x18xf32>
    %53 = vector.extract_strided_slice %4 {offsets = [16, 0], sizes = [8, 18], strides = [1, 1]} : vector<64x18xf32> to vector<8x18xf32>
    %cst_22 = arith.constant 7.500000e-01 : f32
    %54 = vector.broadcast %cst_22 : f32 to vector<8x18xf32>
    %55 = arith.mulf %54, %53 : vector<8x18xf32>
    %56 = arith.addf %52, %55 : vector<8x18xf32>
    %57 = arith.truncf %56 : vector<8x18xf32> to vector<8x18xbf16>
    %c0_23 = arith.constant 0 : index
    %c90 = arith.constant 90 : index
    %58 = vector.load %arg9[%c0_23, %c90] : memref<8x326xbf16, #tpu.memory_space<vmem>>, vector<8x18xbf16>
    tpu.vector_store %arg9[%c0_23, %c90], %57 {strides = array<i32>} : memref<8x326xbf16, #tpu.memory_space<vmem>>, vector<8x18xbf16>,
    %59 = vector.extract_strided_slice %4 {offsets = [16, 0], sizes = [8, 18], strides = [1, 1]} : vector<64x18xf32> to vector<8x18xf32>
    %cst_24 = arith.constant 7.500000e-01 : f32
    %60 = vector.broadcast %cst_24 : f32 to vector<8x18xf32>
    %61 = arith.mulf %60, %59 : vector<8x18xf32>
    %62 = vector.extract_strided_slice %4 {offsets = [24, 0], sizes = [8, 18], strides = [1, 1]} : vector<64x18xf32> to vector<8x18xf32>
    %cst_25 = arith.constant 2.500000e-01 : f32
    %63 = vector.broadcast %cst_25 : f32 to vector<8x18xf32>
    %64 = arith.mulf %63, %62 : vector<8x18xf32>
    %65 = arith.addf %61, %64 : vector<8x18xf32>
    %66 = arith.truncf %65 : vector<8x18xf32> to vector<8x18xbf16>
    %c0_26 = arith.constant 0 : index
    %c108 = arith.constant 108 : index
    %67 = vector.load %arg9[%c0_26, %c108] : memref<8x326xbf16, #tpu.memory_space<vmem>>, vector<8x18xbf16>
    tpu.vector_store %arg9[%c0_26, %c108], %66 {strides = array<i32>} : memref<8x326xbf16, #tpu.memory_space<vmem>>, vector<8x18xbf16>,
    %68 = vector.extract_strided_slice %4 {offsets = [16, 0], sizes = [8, 18], strides = [1, 1]} : vector<64x18xf32> to vector<8x18xf32>
    %cst_27 = arith.constant 2.500000e-01 : f32
    %69 = vector.broadcast %cst_27 : f32 to vector<8x18xf32>
    %70 = arith.mulf %69, %68 : vector<8x18xf32>
    %71 = vector.extract_strided_slice %4 {offsets = [24, 0], sizes = [8, 18], strides = [1, 1]} : vector<64x18xf32> to vector<8x18xf32>
    %cst_28 = arith.constant 7.500000e-01 : f32
    %72 = vector.broadcast %cst_28 : f32 to vector<8x18xf32>
    %73 = arith.mulf %72, %71 : vector<8x18xf32>
    %74 = arith.addf %70, %73 : vector<8x18xf32>
    %75 = arith.truncf %74 : vector<8x18xf32> to vector<8x18xbf16>
    %c0_29 = arith.constant 0 : index
    %c126 = arith.constant 126 : index
    %76 = vector.load %arg9[%c0_29, %c126] : memref<8x326xbf16, #tpu.memory_space<vmem>>, vector<8x18xbf16>
    tpu.vector_store %arg9[%c0_29, %c126], %75 {strides = array<i32>} : memref<8x326xbf16, #tpu.memory_space<vmem>>, vector<8x18xbf16>,
    %77 = vector.extract_strided_slice %4 {offsets = [24, 0], sizes = [8, 18], strides = [1, 1]} : vector<64x18xf32> to vector<8x18xf32>
    %cst_30 = arith.constant 7.500000e-01 : f32
    %78 = vector.broadcast %cst_30 : f32 to vector<8x18xf32>
    %79 = arith.mulf %78, %77 : vector<8x18xf32>
    %80 = vector.extract_strided_slice %4 {offsets = [32, 0], sizes = [8, 18], strides = [1, 1]} : vector<64x18xf32> to vector<8x18xf32>
    %cst_31 = arith.constant 2.500000e-01 : f32
    %81 = vector.broadcast %cst_31 : f32 to vector<8x18xf32>
    %82 = arith.mulf %81, %80 : vector<8x18xf32>
    %83 = arith.addf %79, %82 : vector<8x18xf32>
    %84 = arith.truncf %83 : vector<8x18xf32> to vector<8x18xbf16>
    %c0_32 = arith.constant 0 : index
    %c144 = arith.constant 144 : index
    %85 = vector.load %arg9[%c0_32, %c144] : memref<8x326xbf16, #tpu.memory_space<vmem>>, vector<8x18xbf16>
    tpu.vector_store %arg9[%c0_32, %c144], %84 {strides = array<i32>} : memref<8x326xbf16, #tpu.memory_space<vmem>>, vector<8x18xbf16>,
    %86 = vector.extract_strided_slice %4 {offsets = [24, 0], sizes = [8, 18], strides = [1, 1]} : vector<64x18xf32> to vector<8x18xf32>
    %cst_33 = arith.constant 2.500000e-01 : f32
    %87 = vector.broadcast %cst_33 : f32 to vector<8x18xf32>
    %88 = arith.mulf %87, %86 : vector<8x18xf32>
    %89 = vector.extract_strided_slice %4 {offsets = [32, 0], sizes = [8, 18], strides = [1, 1]} : vector<64x18xf32> to vector<8x18xf32>
    %cst_34 = arith.constant 7.500000e-01 : f32
    %90 = vector.broadcast %cst_34 : f32 to vector<8x18xf32>
    %91 = arith.mulf %90, %89 : vector<8x18xf32>
    %92 = arith.addf %88, %91 : vector<8x18xf32>
    %93 = arith.truncf %92 : vector<8x18xf32> to vector<8x18xbf16>
    %c0_35 = arith.constant 0 : index
    %c162 = arith.constant 162 : index
    %94 = vector.load %arg9[%c0_35, %c162] : memref<8x326xbf16, #tpu.memory_space<vmem>>, vector<8x18xbf16>
    tpu.vector_store %arg9[%c0_35, %c162], %93 {strides = array<i32>} : memref<8x326xbf16, #tpu.memory_space<vmem>>, vector<8x18xbf16>,
    %95 = vector.extract_strided_slice %4 {offsets = [32, 0], sizes = [8, 18], strides = [1, 1]} : vector<64x18xf32> to vector<8x18xf32>
    %cst_36 = arith.constant 7.500000e-01 : f32
    %96 = vector.broadcast %cst_36 : f32 to vector<8x18xf32>
    %97 = arith.mulf %96, %95 : vector<8x18xf32>
    %98 = vector.extract_strided_slice %4 {offsets = [40, 0], sizes = [8, 18], strides = [1, 1]} : vector<64x18xf32> to vector<8x18xf32>
    %cst_37 = arith.constant 2.500000e-01 : f32
    %99 = vector.broadcast %cst_37 : f32 to vector<8x18xf32>
    %100 = arith.mulf %99, %98 : vector<8x18xf32>
    %101 = arith.addf %97, %100 : vector<8x18xf32>
    %102 = arith.truncf %101 : vector<8x18xf32> to vector<8x18xbf16>
    %c0_38 = arith.constant 0 : index
    %c180 = arith.constant 180 : index
    %103 = vector.load %arg9[%c0_38, %c180] : memref<8x326xbf16, #tpu.memory_space<vmem>>, vector<8x18xbf16>
    tpu.vector_store %arg9[%c0_38, %c180], %102 {strides = array<i32>} : memref<8x326xbf16, #tpu.memory_space<vmem>>, vector<8x18xbf16>,
    %104 = vector.extract_strided_slice %4 {offsets = [32, 0], sizes = [8, 18], strides = [1, 1]} : vector<64x18xf32> to vector<8x18xf32>
    %cst_39 = arith.constant 2.500000e-01 : f32
    %105 = vector.broadcast %cst_39 : f32 to vector<8x18xf32>
    %106 = arith.mulf %105, %104 : vector<8x18xf32>
    %107 = vector.extract_strided_slice %4 {offsets = [40, 0], sizes = [8, 18], strides = [1, 1]} : vector<64x18xf32> to vector<8x18xf32>
    %cst_40 = arith.constant 7.500000e-01 : f32
    %108 = vector.broadcast %cst_40 : f32 to vector<8x18xf32>
    %109 = arith.mulf %108, %107 : vector<8x18xf32>
    %110 = arith.addf %106, %109 : vector<8x18xf32>
    %111 = arith.truncf %110 : vector<8x18xf32> to vector<8x18xbf16>
    %c0_41 = arith.constant 0 : index
    %c198 = arith.constant 198 : index
    %112 = vector.load %arg9[%c0_41, %c198] : memref<8x326xbf16, #tpu.memory_space<vmem>>, vector<8x18xbf16>
    tpu.vector_store %arg9[%c0_41, %c198], %111 {strides = array<i32>} : memref<8x326xbf16, #tpu.memory_space<vmem>>, vector<8x18xbf16>,
    %113 = vector.extract_strided_slice %4 {offsets = [40, 0], sizes = [8, 18], strides = [1, 1]} : vector<64x18xf32> to vector<8x18xf32>
    %cst_42 = arith.constant 7.500000e-01 : f32
    %114 = vector.broadcast %cst_42 : f32 to vector<8x18xf32>
    %115 = arith.mulf %114, %113 : vector<8x18xf32>
    %116 = vector.extract_strided_slice %4 {offsets = [48, 0], sizes = [8, 18], strides = [1, 1]} : vector<64x18xf32> to vector<8x18xf32>
    %cst_43 = arith.constant 2.500000e-01 : f32
    %117 = vector.broadcast %cst_43 : f32 to vector<8x18xf32>
    %118 = arith.mulf %117, %116 : vector<8x18xf32>
    %119 = arith.addf %115, %118 : vector<8x18xf32>
    %120 = arith.truncf %119 : vector<8x18xf32> to vector<8x18xbf16>
    %c0_44 = arith.constant 0 : index
    %c216 = arith.constant 216 : index
    %121 = vector.load %arg9[%c0_44, %c216] : memref<8x326xbf16, #tpu.memory_space<vmem>>, vector<8x18xbf16>
    tpu.vector_store %arg9[%c0_44, %c216], %120 {strides = array<i32>} : memref<8x326xbf16, #tpu.memory_space<vmem>>, vector<8x18xbf16>,
    %122 = vector.extract_strided_slice %4 {offsets = [40, 0], sizes = [8, 18], strides = [1, 1]} : vector<64x18xf32> to vector<8x18xf32>
    %cst_45 = arith.constant 2.500000e-01 : f32
    %123 = vector.broadcast %cst_45 : f32 to vector<8x18xf32>
    %124 = arith.mulf %123, %122 : vector<8x18xf32>
    %125 = vector.extract_strided_slice %4 {offsets = [48, 0], sizes = [8, 18], strides = [1, 1]} : vector<64x18xf32> to vector<8x18xf32>
    %cst_46 = arith.constant 7.500000e-01 : f32
    %126 = vector.broadcast %cst_46 : f32 to vector<8x18xf32>
    %127 = arith.mulf %126, %125 : vector<8x18xf32>
    %128 = arith.addf %124, %127 : vector<8x18xf32>
    %129 = arith.truncf %128 : vector<8x18xf32> to vector<8x18xbf16>
    %c0_47 = arith.constant 0 : index
    %c234 = arith.constant 234 : index
    %130 = vector.load %arg9[%c0_47, %c234] : memref<8x326xbf16, #tpu.memory_space<vmem>>, vector<8x18xbf16>
    tpu.vector_store %arg9[%c0_47, %c234], %129 {strides = array<i32>} : memref<8x326xbf16, #tpu.memory_space<vmem>>, vector<8x18xbf16>,
    %131 = vector.extract_strided_slice %4 {offsets = [48, 0], sizes = [8, 18], strides = [1, 1]} : vector<64x18xf32> to vector<8x18xf32>
    %cst_48 = arith.constant 7.500000e-01 : f32
    %132 = vector.broadcast %cst_48 : f32 to vector<8x18xf32>
    %133 = arith.mulf %132, %131 : vector<8x18xf32>
    %134 = vector.extract_strided_slice %4 {offsets = [56, 0], sizes = [8, 18], strides = [1, 1]} : vector<64x18xf32> to vector<8x18xf32>
    %cst_49 = arith.constant 2.500000e-01 : f32
    %135 = vector.broadcast %cst_49 : f32 to vector<8x18xf32>
    %136 = arith.mulf %135, %134 : vector<8x18xf32>
    %137 = arith.addf %133, %136 : vector<8x18xf32>
    %138 = arith.truncf %137 : vector<8x18xf32> to vector<8x18xbf16>
    %c0_50 = arith.constant 0 : index
    %c252 = arith.constant 252 : index
    %139 = vector.load %arg9[%c0_50, %c252] : memref<8x326xbf16, #tpu.memory_space<vmem>>, vector<8x18xbf16>
    tpu.vector_store %arg9[%c0_50, %c252], %138 {strides = array<i32>} : memref<8x326xbf16, #tpu.memory_space<vmem>>, vector<8x18xbf16>,
    %140 = vector.extract_strided_slice %4 {offsets = [48, 0], sizes = [8, 18], strides = [1, 1]} : vector<64x18xf32> to vector<8x18xf32>
    %cst_51 = arith.constant 2.500000e-01 : f32
    %141 = vector.broadcast %cst_51 : f32 to vector<8x18xf32>
    %142 = arith.mulf %141, %140 : vector<8x18xf32>
    %143 = vector.extract_strided_slice %4 {offsets = [56, 0], sizes = [8, 18], strides = [1, 1]} : vector<64x18xf32> to vector<8x18xf32>
    %cst_52 = arith.constant 7.500000e-01 : f32
    %144 = vector.broadcast %cst_52 : f32 to vector<8x18xf32>
    %145 = arith.mulf %144, %143 : vector<8x18xf32>
    %146 = arith.addf %142, %145 : vector<8x18xf32>
    %147 = arith.truncf %146 : vector<8x18xf32> to vector<8x18xbf16>
    %c0_53 = arith.constant 0 : index
    %c270 = arith.constant 270 : index
    %148 = vector.load %arg9[%c0_53, %c270] : memref<8x326xbf16, #tpu.memory_space<vmem>>, vector<8x18xbf16>
    tpu.vector_store %arg9[%c0_53, %c270], %147 {strides = array<i32>} : memref<8x326xbf16, #tpu.memory_space<vmem>>, vector<8x18xbf16>,
    %149 = vector.extract_strided_slice %4 {offsets = [56, 0], sizes = [8, 18], strides = [1, 1]} : vector<64x18xf32> to vector<8x18xf32>
    %cst_54 = arith.constant 7.500000e-01 : f32
    %150 = vector.broadcast %cst_54 : f32 to vector<8x18xf32>
    %151 = arith.mulf %150, %149 : vector<8x18xf32>
    %152 = vector.extract_strided_slice %4 {offsets = [56, 0], sizes = [8, 18], strides = [1, 1]} : vector<64x18xf32> to vector<8x18xf32>
    %cst_55 = arith.constant 2.500000e-01 : f32
    %153 = vector.broadcast %cst_55 : f32 to vector<8x18xf32>
    %154 = arith.mulf %153, %152 : vector<8x18xf32>
    %155 = arith.addf %151, %154 : vector<8x18xf32>
    %156 = arith.truncf %155 : vector<8x18xf32> to vector<8x18xbf16>
    %c0_56 = arith.constant 0 : index
    %c288 = arith.constant 288 : index
    %157 = vector.load %arg9[%c0_56, %c288] : memref<8x326xbf16, #tpu.memory_space<vmem>>, vector<8x18xbf16>
    tpu.vector_store %arg9[%c0_56, %c288], %156 {strides = array<i32>} : memref<8x326xbf16, #tpu.memory_space<vmem>>, vector<8x18xbf16>,
    %158 = vector.extract_strided_slice %4 {offsets = [48, 0], sizes = [8, 18], strides = [1, 1]} : vector<64x18xf32> to vector<8x18xf32>
    %cst_57 = arith.constant 2.500000e-01 : f32
    %159 = vector.broadcast %cst_57 : f32 to vector<8x18xf32>
    %160 = arith.mulf %159, %158 : vector<8x18xf32>
    %161 = vector.extract_strided_slice %4 {offsets = [56, 0], sizes = [8, 18], strides = [1, 1]} : vector<64x18xf32> to vector<8x18xf32>
    %cst_58 = arith.constant 7.500000e-01 : f32
    %162 = vector.broadcast %cst_58 : f32 to vector<8x18xf32>
    %163 = arith.mulf %162, %161 : vector<8x18xf32>
    %164 = arith.addf %160, %163 : vector<8x18xf32>
    %165 = arith.truncf %164 : vector<8x18xf32> to vector<8x18xbf16>
    %c0_59 = arith.constant 0 : index
    %c306 = arith.constant 306 : index
    %166 = vector.load %arg9[%c0_59, %c306] : memref<8x326xbf16, #tpu.memory_space<vmem>>, vector<8x18xbf16>
    tpu.vector_store %arg9[%c0_59, %c306], %165 {strides = array<i32>} : memref<8x326xbf16, #tpu.memory_space<vmem>>, vector<8x18xbf16>,
    %cst_60 = arith.constant 0.000000e+00 : bf16
    %167 = vector.broadcast %cst_60 : bf16 to vector<8x2xbf16>
    %c0_61 = arith.constant 0 : index
    %c324 = arith.constant 324 : index
    %168 = vector.load %arg9[%c0_61, %c324] : memref<8x326xbf16, #tpu.memory_space<vmem>>, vector<8x2xbf16>
    tpu.vector_store %arg9[%c0_61, %c324], %167 {strides = array<i32>} : memref<8x326xbf16, #tpu.memory_space<vmem>>, vector<8x2xbf16>,
    %c0_62 = arith.constant 0 : index
    %c0_63 = arith.constant 0 : index
    %169 = vector.load %arg9[%c0_62, %c0_63] : memref<8x326xbf16, #tpu.memory_space<vmem>>, vector<8x288xbf16>
    %c0_64 = arith.constant 0 : index
    %c0_65 = arith.constant 0 : index
    %170 = vector.load %arg11[%c0_64, %c0_65] : memref<72x288xbf16, #tpu.memory_space<vmem>>, vector<8x288xbf16>
    tpu.vector_store %arg11[%c0_64, %c0_65], %169 {strides = array<i32>} : memref<72x288xbf16, #tpu.memory_space<vmem>>, vector<8x288xbf16>,
    %c0_66 = arith.constant 0 : index
    %c1 = arith.constant 1 : index
    %171 = vector.load %arg9[%c0_66, %c1] : memref<8x326xbf16, #tpu.memory_space<vmem>>, vector<8x288xbf16>
    %c8 = arith.constant 8 : index
    %c0_67 = arith.constant 0 : index
    %172 = vector.load %arg11[%c8, %c0_67] : memref<72x288xbf16, #tpu.memory_space<vmem>>, vector<8x288xbf16>
    tpu.vector_store %arg11[%c8, %c0_67], %171 {strides = array<i32>} : memref<72x288xbf16, #tpu.memory_space<vmem>>, vector<8x288xbf16>,
    %c0_68 = arith.constant 0 : index
    %c2 = arith.constant 2 : index
    %173 = vector.load %arg9[%c0_68, %c2] : memref<8x326xbf16, #tpu.memory_space<vmem>>, vector<8x288xbf16>
    %c16 = arith.constant 16 : index
    %c0_69 = arith.constant 0 : index
    %174 = vector.load %arg11[%c16, %c0_69] : memref<72x288xbf16, #tpu.memory_space<vmem>>, vector<8x288xbf16>
    tpu.vector_store %arg11[%c16, %c0_69], %173 {strides = array<i32>} : memref<72x288xbf16, #tpu.memory_space<vmem>>, vector<8x288xbf16>,
    %c0_70 = arith.constant 0 : index
    %c18_71 = arith.constant 18 : index
    %175 = vector.load %arg9[%c0_70, %c18_71] : memref<8x326xbf16, #tpu.memory_space<vmem>>, vector<8x288xbf16>
    %c24 = arith.constant 24 : index
    %c0_72 = arith.constant 0 : index
    %176 = vector.load %arg11[%c24, %c0_72] : memref<72x288xbf16, #tpu.memory_space<vmem>>, vector<8x288xbf16>
    tpu.vector_store %arg11[%c24, %c0_72], %175 {strides = array<i32>} : memref<72x288xbf16, #tpu.memory_space<vmem>>, vector<8x288xbf16>,
    %c0_73 = arith.constant 0 : index
    %c19 = arith.constant 19 : index
    %177 = vector.load %arg9[%c0_73, %c19] : memref<8x326xbf16, #tpu.memory_space<vmem>>, vector<8x288xbf16>
    %c32 = arith.constant 32 : index
    %c0_74 = arith.constant 0 : index
    %178 = vector.load %arg11[%c32, %c0_74] : memref<72x288xbf16, #tpu.memory_space<vmem>>, vector<8x288xbf16>
    tpu.vector_store %arg11[%c32, %c0_74], %177 {strides = array<i32>} : memref<72x288xbf16, #tpu.memory_space<vmem>>, vector<8x288xbf16>,
    %c0_75 = arith.constant 0 : index
    %c20 = arith.constant 20 : index
    %179 = vector.load %arg9[%c0_75, %c20] : memref<8x326xbf16, #tpu.memory_space<vmem>>, vector<8x288xbf16>
    %c40 = arith.constant 40 : index
    %c0_76 = arith.constant 0 : index
    %180 = vector.load %arg11[%c40, %c0_76] : memref<72x288xbf16, #tpu.memory_space<vmem>>, vector<8x288xbf16>
    tpu.vector_store %arg11[%c40, %c0_76], %179 {strides = array<i32>} : memref<72x288xbf16, #tpu.memory_space<vmem>>, vector<8x288xbf16>,
    %c0_77 = arith.constant 0 : index
    %c36_78 = arith.constant 36 : index
    %181 = vector.load %arg9[%c0_77, %c36_78] : memref<8x326xbf16, #tpu.memory_space<vmem>>, vector<8x288xbf16>
    %c48 = arith.constant 48 : index
    %c0_79 = arith.constant 0 : index
    %182 = vector.load %arg11[%c48, %c0_79] : memref<72x288xbf16, #tpu.memory_space<vmem>>, vector<8x288xbf16>
    tpu.vector_store %arg11[%c48, %c0_79], %181 {strides = array<i32>} : memref<72x288xbf16, #tpu.memory_space<vmem>>, vector<8x288xbf16>,
    %c0_80 = arith.constant 0 : index
    %c37 = arith.constant 37 : index
    %183 = vector.load %arg9[%c0_80, %c37] : memref<8x326xbf16, #tpu.memory_space<vmem>>, vector<8x288xbf16>
    %c56 = arith.constant 56 : index
    %c0_81 = arith.constant 0 : index
    %184 = vector.load %arg11[%c56, %c0_81] : memref<72x288xbf16, #tpu.memory_space<vmem>>, vector<8x288xbf16>
    tpu.vector_store %arg11[%c56, %c0_81], %183 {strides = array<i32>} : memref<72x288xbf16, #tpu.memory_space<vmem>>, vector<8x288xbf16>,
    %c0_82 = arith.constant 0 : index
    %c38 = arith.constant 38 : index
    %185 = vector.load %arg9[%c0_82, %c38] : memref<8x326xbf16, #tpu.memory_space<vmem>>, vector<8x288xbf16>
    %c64 = arith.constant 64 : index
    %c0_83 = arith.constant 0 : index
    %186 = vector.load %arg11[%c64, %c0_83] : memref<72x288xbf16, #tpu.memory_space<vmem>>, vector<8x288xbf16>
    tpu.vector_store %arg11[%c64, %c0_83], %185 {strides = array<i32>} : memref<72x288xbf16, #tpu.memory_space<vmem>>, vector<8x288xbf16>,
    %c0_84 = arith.constant 0 : index
    %c0_85 = arith.constant 0 : index
    %187 = vector.load %arg3[%c0_84, %c0_85] : memref<8x72xbf16, #tpu.memory_space<vmem>>, vector<8x72xbf16>
    %c0_86 = arith.constant 0 : index
    %c0_87 = arith.constant 0 : index
    %188 = vector.load %arg11[%c0_86, %c0_87] : memref<72x288xbf16, #tpu.memory_space<vmem>>, vector<72x288xbf16>
    %cst_88 = arith.constant dense<0.000000e+00> : vector<8x288xf32>
    %189 = tpu.matmul %187, %188, %cst_88 {dimension_numbers = #tpu.dot_dimension_numbers<[1], [0], [0], [1], [0, 0, 1, 1], [], []>} : vector<8x72xbf16>, vector<72x288xbf16>, vector<8x288xf32> -> vector<8x288xf32>
    %190 = tpu.iota {dimensions = array<i32: 1>} : vector<1x288xi32>
    %c18_i32 = arith.constant 18 : i32
    %c0_i32 = arith.constant 0 : i32
    %191 = arith.cmpi eq, %c18_i32, %c0_i32 : i32
    %c1_i32 = arith.constant 1 : i32
    %192 = arith.select %191, %c1_i32, %c18_i32 : i32
    %193 = vector.broadcast %192 : i32 to vector<1x288xi32>
    %194 = arith.remsi %190, %193 : vector<1x288xi32>
    %c0_i32_89 = arith.constant 0 : i32
    %195 = vector.broadcast %c0_i32_89 : i32 to vector<1x288xi32>
    %196 = arith.cmpi ne, %194, %195 : vector<1x288xi32>
    %c0_i32_90 = arith.constant 0 : i32
    %197 = vector.broadcast %c0_i32_90 : i32 to vector<1x288xi32>
    %198 = arith.cmpi slt, %194, %197 : vector<1x288xi32>
    %c0_i32_91 = arith.constant 0 : i32
    %199 = arith.cmpi slt, %192, %c0_i32_91 : i32
    %200 = vector.broadcast %199 : i1 to vector<1x288xi1>
    %201 = vector.broadcast %200 : vector<1x288xi1> to vector<1x288xi1>
    %202 = arith.xori %198, %201 : vector<1x288xi1>
    %203 = arith.andi %202, %196 : vector<1x288xi1>
    %204 = vector.broadcast %192 : i32 to vector<1x288xi32>
    %205 = arith.addi %194, %204 : vector<1x288xi32>
    %206 = arith.select %203, %205, %194 : vector<1x288xi1>, vector<1x288xi32>
    %c16_i32 = arith.constant 16 : i32
    %207 = vector.broadcast %c16_i32 : i32 to vector<1x288xi32>
    %208 = arith.cmpi slt, %206, %207 : vector<1x288xi32>
    %cst_92 = arith.constant 0.000000e+00 : f32
    %209 = vector.shape_cast %208 : vector<1x288xi1> to vector<1x288xi1>
    %210 = vector.broadcast %209 : vector<1x288xi1> to vector<8x288xi1>
    %211 = vector.broadcast %cst_92 : f32 to vector<8x288xf32>
    %212 = arith.select %210, %189, %211 : vector<8x288xi1>, vector<8x288xf32>
    %cst_93 = arith.constant dense<0.000000e+00> : vector<8xf32>
    %213 = vector.multi_reduction <add>, %212, %cst_93 [1] : vector<8x288xf32> to vector<8xf32>
    %214 = vector.shape_cast %213 : vector<8xf32> to vector<8x1xf32>
    %cst_94 = arith.constant 2.560000e+02 : f32
    %215 = vector.broadcast %cst_94 : f32 to vector<8x1xf32>
    %216 = arith.divf %214, %215 : vector<8x1xf32>
    %217 = arith.mulf %212, %212 : vector<8x288xf32>
    %cst_95 = arith.constant dense<0.000000e+00> : vector<8xf32>
    %218 = vector.multi_reduction <add>, %217, %cst_95 [1] : vector<8x288xf32> to vector<8xf32>
    %219 = vector.shape_cast %218 : vector<8xf32> to vector<8x1xf32>
    %cst_96 = arith.constant 2.560000e+02 : f32
    %220 = vector.broadcast %cst_96 : f32 to vector<8x1xf32>
    %221 = arith.divf %219, %220 : vector<8x1xf32>
    %222 = arith.mulf %216, %216 : vector<8x1xf32>
    %223 = arith.subf %221, %222 : vector<8x1xf32>
    %cst_97 = arith.constant 0.000000e+00 : f32
    %224 = vector.broadcast %cst_97 : f32 to vector<8x1xf32>
    %225 = arith.maximumf %223, %224 : vector<8x1xf32>
    %226 = vector.broadcast %216 : vector<8x1xf32> to vector<8x288xf32>
    %227 = arith.subf %189, %226 : vector<8x288xf32>
    %cst_98 = arith.constant 9.99999974E-6 : f32
    %228 = vector.broadcast %cst_98 : f32 to vector<8x1xf32>
    %229 = arith.addf %225, %228 : vector<8x1xf32>
    %230 = math.rsqrt %229 : vector<8x1xf32>
    %231 = vector.broadcast %230 : vector<8x1xf32> to vector<8x288xf32>
    %232 = arith.mulf %227, %231 : vector<8x288xf32>
    %cst_99 = arith.constant 0.000000e+00 : f32
    %233 = vector.broadcast %cst_99 : f32 to vector<8x288xf32>
    %234 = arith.maximumf %232, %233 : vector<8x288xf32>
    %cst_100 = arith.constant 0.000000e+00 : f32
    %235 = vector.shape_cast %208 : vector<1x288xi1> to vector<1x288xi1>
    %236 = vector.broadcast %235 : vector<1x288xi1> to vector<8x288xi1>
    %237 = vector.broadcast %cst_100 : f32 to vector<8x288xf32>
    %238 = arith.select %236, %234, %237 : vector<8x288xi1>, vector<8x288xf32>
    %cst_101 = arith.constant 0.000000e+00 : bf16
    %239 = vector.broadcast %cst_101 : bf16 to vector<8x19xbf16>
    %c0_102 = arith.constant 0 : index
    %c0_103 = arith.constant 0 : index
    %240 = vector.load %arg10[%c0_102, %c0_103] : memref<8x326xbf16, #tpu.memory_space<vmem>>, vector<8x19xbf16>
    tpu.vector_store %arg10[%c0_102, %c0_103], %239 {strides = array<i32>} : memref<8x326xbf16, #tpu.memory_space<vmem>>, vector<8x19xbf16>,
    %241 = arith.truncf %238 : vector<8x288xf32> to vector<8x288xbf16>
    %c0_104 = arith.constant 0 : index
    %c19_105 = arith.constant 19 : index
    %242 = vector.load %arg10[%c0_104, %c19_105] : memref<8x326xbf16, #tpu.memory_space<vmem>>, vector<8x288xbf16>
    tpu.vector_store %arg10[%c0_104, %c19_105], %241 {strides = array<i32>} : memref<8x326xbf16, #tpu.memory_space<vmem>>, vector<8x288xbf16>,
    %cst_106 = arith.constant 0.000000e+00 : bf16
    %243 = vector.broadcast %cst_106 : bf16 to vector<8x19xbf16>
    %c0_107 = arith.constant 0 : index
    %c307 = arith.constant 307 : index
    %244 = vector.load %arg10[%c0_107, %c307] : memref<8x326xbf16, #tpu.memory_space<vmem>>, vector<8x19xbf16>
    tpu.vector_store %arg10[%c0_107, %c307], %243 {strides = array<i32>} : memref<8x326xbf16, #tpu.memory_space<vmem>>, vector<8x19xbf16>,
    %c0_108 = arith.constant 0 : index
    %c0_109 = arith.constant 0 : index
    %245 = vector.load %arg10[%c0_108, %c0_109] : memref<8x326xbf16, #tpu.memory_space<vmem>>, vector<8x288xbf16>
    %c0_110 = arith.constant 0 : index
    %c0_111 = arith.constant 0 : index
    %246 = vector.load %arg12[%c0_110, %c0_111] : memref<72x288xbf16, #tpu.memory_space<vmem>>, vector<8x288xbf16>
    tpu.vector_store %arg12[%c0_110, %c0_111], %245 {strides = array<i32>} : memref<72x288xbf16, #tpu.memory_space<vmem>>, vector<8x288xbf16>,
    %c0_112 = arith.constant 0 : index
    %c1_113 = arith.constant 1 : index
    %247 = vector.load %arg10[%c0_112, %c1_113] : memref<8x326xbf16, #tpu.memory_space<vmem>>, vector<8x288xbf16>
    %c8_114 = arith.constant 8 : index
    %c0_115 = arith.constant 0 : index
    %248 = vector.load %arg12[%c8_114, %c0_115] : memref<72x288xbf16, #tpu.memory_space<vmem>>, vector<8x288xbf16>
    tpu.vector_store %arg12[%c8_114, %c0_115], %247 {strides = array<i32>} : memref<72x288xbf16, #tpu.memory_space<vmem>>, vector<8x288xbf16>,
    %c0_116 = arith.constant 0 : index
    %c2_117 = arith.constant 2 : index
    %249 = vector.load %arg10[%c0_116, %c2_117] : memref<8x326xbf16, #tpu.memory_space<vmem>>, vector<8x288xbf16>
    %c16_118 = arith.constant 16 : index
    %c0_119 = arith.constant 0 : index
    %250 = vector.load %arg12[%c16_118, %c0_119] : memref<72x288xbf16, #tpu.memory_space<vmem>>, vector<8x288xbf16>
    tpu.vector_store %arg12[%c16_118, %c0_119], %249 {strides = array<i32>} : memref<72x288xbf16, #tpu.memory_space<vmem>>, vector<8x288xbf16>,
    %c0_120 = arith.constant 0 : index
    %c18_121 = arith.constant 18 : index
    %251 = vector.load %arg10[%c0_120, %c18_121] : memref<8x326xbf16, #tpu.memory_space<vmem>>, vector<8x288xbf16>
    %c24_122 = arith.constant 24 : index
    %c0_123 = arith.constant 0 : index
    %252 = vector.load %arg12[%c24_122, %c0_123] : memref<72x288xbf16, #tpu.memory_space<vmem>>, vector<8x288xbf16>
    tpu.vector_store %arg12[%c24_122, %c0_123], %251 {strides = array<i32>} : memref<72x288xbf16, #tpu.memory_space<vmem>>, vector<8x288xbf16>,
    %c0_124 = arith.constant 0 : index
    %c19_125 = arith.constant 19 : index
    %253 = vector.load %arg10[%c0_124, %c19_125] : memref<8x326xbf16, #tpu.memory_space<vmem>>, vector<8x288xbf16>
    %c32_126 = arith.constant 32 : index
    %c0_127 = arith.constant 0 : index
    %254 = vector.load %arg12[%c32_126, %c0_127] : memref<72x288xbf16, #tpu.memory_space<vmem>>, vector<8x288xbf16>
    tpu.vector_store %arg12[%c32_126, %c0_127], %253 {strides = array<i32>} : memref<72x288xbf16, #tpu.memory_space<vmem>>, vector<8x288xbf16>,
    %c0_128 = arith.constant 0 : index
    %c20_129 = arith.constant 20 : index
    %255 = vector.load %arg10[%c0_128, %c20_129] : memref<8x326xbf16, #tpu.memory_space<vmem>>, vector<8x288xbf16>
    %c40_130 = arith.constant 40 : index
    %c0_131 = arith.constant 0 : index
    %256 = vector.load %arg12[%c40_130, %c0_131] : memref<72x288xbf16, #tpu.memory_space<vmem>>, vector<8x288xbf16>
    tpu.vector_store %arg12[%c40_130, %c0_131], %255 {strides = array<i32>} : memref<72x288xbf16, #tpu.memory_space<vmem>>, vector<8x288xbf16>,
    %c0_132 = arith.constant 0 : index
    %c36_133 = arith.constant 36 : index
    %257 = vector.load %arg10[%c0_132, %c36_133] : memref<8x326xbf16, #tpu.memory_space<vmem>>, vector<8x288xbf16>
    %c48_134 = arith.constant 48 : index
    %c0_135 = arith.constant 0 : index
    %258 = vector.load %arg12[%c48_134, %c0_135] : memref<72x288xbf16, #tpu.memory_space<vmem>>, vector<8x288xbf16>
    tpu.vector_store %arg12[%c48_134, %c0_135], %257 {strides = array<i32>} : memref<72x288xbf16, #tpu.memory_space<vmem>>, vector<8x288xbf16>,
    %c0_136 = arith.constant 0 : index
    %c37_137 = arith.constant 37 : index
    %259 = vector.load %arg10[%c0_136, %c37_137] : memref<8x326xbf16, #tpu.memory_space<vmem>>, vector<8x288xbf16>
    %c56_138 = arith.constant 56 : index
    %c0_139 = arith.constant 0 : index
    %260 = vector.load %arg12[%c56_138, %c0_139] : memref<72x288xbf16, #tpu.memory_space<vmem>>, vector<8x288xbf16>
    tpu.vector_store %arg12[%c56_138, %c0_139], %259 {strides = array<i32>} : memref<72x288xbf16, #tpu.memory_space<vmem>>, vector<8x288xbf16>,
    %c0_140 = arith.constant 0 : index
    %c38_141 = arith.constant 38 : index
    %261 = vector.load %arg10[%c0_140, %c38_141] : memref<8x326xbf16, #tpu.memory_space<vmem>>, vector<8x288xbf16>
    %c64_142 = arith.constant 64 : index
    %c0_143 = arith.constant 0 : index
    %262 = vector.load %arg12[%c64_142, %c0_143] : memref<72x288xbf16, #tpu.memory_space<vmem>>, vector<8x288xbf16>
    tpu.vector_store %arg12[%c64_142, %c0_143], %261 {strides = array<i32>} : memref<72x288xbf16, #tpu.memory_space<vmem>>, vector<8x288xbf16>,
    %c0_144 = arith.constant 0 : index
    %c0_145 = arith.constant 0 : index
    %263 = vector.load %arg4[%c0_144, %c0_145] : memref<16x72xbf16, #tpu.memory_space<vmem>>, vector<16x72xbf16>
    %c0_146 = arith.constant 0 : index
    %c0_147 = arith.constant 0 : index
    %264 = vector.load %arg12[%c0_146, %c0_147] : memref<72x288xbf16, #tpu.memory_space<vmem>>, vector<72x288xbf16>
    %cst_148 = arith.constant dense<0.000000e+00> : vector<16x288xf32>
    %265 = tpu.matmul %263, %264, %cst_148 {dimension_numbers = #tpu.dot_dimension_numbers<[1], [0], [0], [1], [0, 0, 1, 1], [], []>} : vector<16x72xbf16>, vector<72x288xbf16>, vector<16x288xf32> -> vector<16x288xf32>
    %cst_149 = arith.constant 0.000000e+00 : f32
    %266 = vector.shape_cast %208 : vector<1x288xi1> to vector<1x288xi1>
    %267 = vector.broadcast %266 : vector<1x288xi1> to vector<16x288xi1>
    %268 = vector.broadcast %cst_149 : f32 to vector<16x288xf32>
    %269 = arith.select %267, %265, %268 : vector<16x288xi1>, vector<16x288xf32>
    %cst_150 = arith.constant dense<0.000000e+00> : vector<16xf32>
    %270 = vector.multi_reduction <add>, %269, %cst_150 [1] : vector<16x288xf32> to vector<16xf32>
    %271 = vector.shape_cast %270 : vector<16xf32> to vector<16x1xf32>
    %272 = arith.mulf %269, %269 : vector<16x288xf32>
    %cst_151 = arith.constant dense<0.000000e+00> : vector<16xf32>
    %273 = vector.multi_reduction <add>, %272, %cst_151 [1] : vector<16x288xf32> to vector<16xf32>
    %274 = vector.shape_cast %273 : vector<16xf32> to vector<16x1xf32>
    %275 = vector.extract_strided_slice %271 {offsets = [0, 0], sizes = [4, 1], strides = [1, 1]} : vector<16x1xf32> to vector<4x1xf32>
    %276 = vector.extract_strided_slice %271 {offsets = [4, 0], sizes = [4, 1], strides = [1, 1]} : vector<16x1xf32> to vector<4x1xf32>
    %277 = arith.addf %275, %276 : vector<4x1xf32>
    %278 = vector.extract_strided_slice %271 {offsets = [8, 0], sizes = [4, 1], strides = [1, 1]} : vector<16x1xf32> to vector<4x1xf32>
    %279 = arith.addf %277, %278 : vector<4x1xf32>
    %280 = vector.extract_strided_slice %271 {offsets = [12, 0], sizes = [4, 1], strides = [1, 1]} : vector<16x1xf32> to vector<4x1xf32>
    %281 = arith.addf %279, %280 : vector<4x1xf32>
    %282 = vector.extract_strided_slice %274 {offsets = [0, 0], sizes = [4, 1], strides = [1, 1]} : vector<16x1xf32> to vector<4x1xf32>
    %283 = vector.extract_strided_slice %274 {offsets = [4, 0], sizes = [4, 1], strides = [1, 1]} : vector<16x1xf32> to vector<4x1xf32>
    %284 = arith.addf %282, %283 : vector<4x1xf32>
    %285 = vector.extract_strided_slice %274 {offsets = [8, 0], sizes = [4, 1], strides = [1, 1]} : vector<16x1xf32> to vector<4x1xf32>
    %286 = arith.addf %284, %285 : vector<4x1xf32>
    %287 = vector.extract_strided_slice %274 {offsets = [12, 0], sizes = [4, 1], strides = [1, 1]} : vector<16x1xf32> to vector<4x1xf32>
    %288 = arith.addf %286, %287 : vector<4x1xf32>
    %cst_152 = arith.constant 1.024000e+03 : f32
    %289 = vector.broadcast %cst_152 : f32 to vector<4x1xf32>
    %290 = arith.divf %281, %289 : vector<4x1xf32>
    %cst_153 = arith.constant 1.024000e+03 : f32
    %291 = vector.broadcast %cst_153 : f32 to vector<4x1xf32>
    %292 = arith.divf %288, %291 : vector<4x1xf32>
    %293 = arith.mulf %290, %290 : vector<4x1xf32>
    %294 = arith.subf %292, %293 : vector<4x1xf32>
    %cst_154 = arith.constant 0.000000e+00 : f32
    %295 = vector.broadcast %cst_154 : f32 to vector<4x1xf32>
    %296 = arith.maximumf %294, %295 : vector<4x1xf32>
    %cst_155 = arith.constant 9.99999974E-6 : f32
    %297 = vector.broadcast %cst_155 : f32 to vector<4x1xf32>
    %298 = arith.addf %296, %297 : vector<4x1xf32>
    %299 = math.rsqrt %298 : vector<4x1xf32>
    %300 = tpu.concatenate %290, %290, %290, %290 in 0 : vector<4x1xf32>, vector<4x1xf32>, vector<4x1xf32>, vector<4x1xf32> -> vector<16x1xf32>
    %301 = tpu.concatenate %299, %299, %299, %299 in 0 : vector<4x1xf32>, vector<4x1xf32>, vector<4x1xf32>, vector<4x1xf32> -> vector<16x1xf32>
    %302 = vector.broadcast %300 : vector<16x1xf32> to vector<16x288xf32>
    %303 = arith.subf %265, %302 : vector<16x288xf32>
    %304 = vector.broadcast %301 : vector<16x1xf32> to vector<16x288xf32>
    %305 = arith.mulf %303, %304 : vector<16x288xf32>
    %cst_156 = arith.constant 0.000000e+00 : f32
    %306 = vector.broadcast %cst_156 : f32 to vector<16x288xf32>
    %307 = arith.maximumf %305, %306 : vector<16x288xf32>
    %cst_157 = arith.constant 0.000000e+00 : f32
    %308 = vector.shape_cast %208 : vector<1x288xi1> to vector<1x288xi1>
    %309 = vector.broadcast %308 : vector<1x288xi1> to vector<16x288xi1>
    %310 = vector.broadcast %cst_157 : f32 to vector<16x288xf32>
    %311 = arith.select %309, %307, %310 : vector<16x288xi1>, vector<16x288xf32>
    %312 = arith.truncf %311 : vector<16x288xf32> to vector<16x288xbf16>
    %c0_158 = arith.constant 0 : index
    %c0_159 = arith.constant 0 : index
    %313 = vector.load %arg13[%c0_158, %c0_159] : memref<16x288xbf16, #tpu.memory_space<vmem>>, vector<16x288xbf16>
    tpu.vector_store %arg13[%c0_158, %c0_159], %312 {strides = array<i32>} : memref<16x288xbf16, #tpu.memory_space<vmem>>, vector<16x288xbf16>,
    %c0_160 = arith.constant 0 : index
    %c0_161 = arith.constant 0 : index
    %314 = vector.load %arg5[%c0_160, %c0_161] : memref<32x42xbf16, #tpu.memory_space<vmem>>, vector<32x42xbf16>
    %cst_162 = arith.constant 0.000000e+00 : bf16
    %315 = vector.broadcast %cst_162 : bf16 to vector<4x42xbf16>
    %c0_163 = arith.constant 0 : index
    %c0_164 = arith.constant 0 : index
    %316 = vector.load %arg14[%c0_163, %c0_164] : memref<4x1766xbf16, #tpu.memory_space<vmem>>, vector<4x42xbf16>
    tpu.vector_store %arg14[%c0_163, %c0_164], %315 {strides = array<i32>} : memref<4x1766xbf16, #tpu.memory_space<vmem>>, vector<4x42xbf16>,
    %c0_165 = arith.constant 0 : index
    %c0_166 = arith.constant 0 : index
    %317 = vector.load %arg13[%c0_165, %c0_166] : memref<16x288xbf16, #tpu.memory_space<vmem>>, vector<4x16xbf16>
    %c4 = arith.constant 4 : index
    %c0_167 = arith.constant 0 : index
    %318 = vector.load %arg13[%c4, %c0_167] : memref<16x288xbf16, #tpu.memory_space<vmem>>, vector<4x16xbf16>
    %319 = tpu.concatenate %317, %318 in 1 : vector<4x16xbf16>, vector<4x16xbf16> -> vector<4x32xbf16>
    %cst_168 = arith.constant dense<0.000000e+00> : vector<4x42xf32>
    %320 = tpu.matmul %319, %314, %cst_168 {dimension_numbers = #tpu.dot_dimension_numbers<[1], [0], [0], [1], [0, 0, 1, 1], [], []>} : vector<4x32xbf16>, vector<32x42xbf16>, vector<4x42xf32> -> vector<4x42xf32>
    %321 = arith.truncf %320 : vector<4x42xf32> to vector<4x42xbf16>
    %c0_169 = arith.constant 0 : index
    %c210 = arith.constant 210 : index
    %322 = vector.load %arg14[%c0_169, %c210] : memref<4x1766xbf16, #tpu.memory_space<vmem>>, vector<4x42xbf16>
    tpu.vector_store %arg14[%c0_169, %c210], %321 {strides = array<i32>} : memref<4x1766xbf16, #tpu.memory_space<vmem>>, vector<4x42xbf16>,
    %c8_170 = arith.constant 8 : index
    %c0_171 = arith.constant 0 : index
    %323 = vector.load %arg13[%c8_170, %c0_171] : memref<16x288xbf16, #tpu.memory_space<vmem>>, vector<4x16xbf16>
    %c12 = arith.constant 12 : index
    %c0_172 = arith.constant 0 : index
    %324 = vector.load %arg13[%c12, %c0_172] : memref<16x288xbf16, #tpu.memory_space<vmem>>, vector<4x16xbf16>
    %325 = tpu.concatenate %323, %324 in 1 : vector<4x16xbf16>, vector<4x16xbf16> -> vector<4x32xbf16>
    %cst_173 = arith.constant dense<0.000000e+00> : vector<4x42xf32>
    %326 = tpu.matmul %325, %314, %cst_173 {dimension_numbers = #tpu.dot_dimension_numbers<[1], [0], [0], [1], [0, 0, 1, 1], [], []>} : vector<4x32xbf16>, vector<32x42xbf16>, vector<4x42xf32> -> vector<4x42xf32>
    %327 = arith.truncf %326 : vector<4x42xf32> to vector<4x42xbf16>
    %c0_174 = arith.constant 0 : index
    %c252_175 = arith.constant 252 : index
    %328 = vector.load %arg14[%c0_174, %c252_175] : memref<4x1766xbf16, #tpu.memory_space<vmem>>, vector<4x42xbf16>
    tpu.vector_store %arg14[%c0_174, %c252_175], %327 {strides = array<i32>} : memref<4x1766xbf16, #tpu.memory_space<vmem>>, vector<4x42xbf16>,
    %c0_176 = arith.constant 0 : index
    %c18_177 = arith.constant 18 : index
    %329 = vector.load %arg13[%c0_176, %c18_177] : memref<16x288xbf16, #tpu.memory_space<vmem>>, vector<4x16xbf16>
    %c4_178 = arith.constant 4 : index
    %c18_179 = arith.constant 18 : index
    %330 = vector.load %arg13[%c4_178, %c18_179] : memref<16x288xbf16, #tpu.memory_space<vmem>>, vector<4x16xbf16>
    %331 = tpu.concatenate %329, %330 in 1 : vector<4x16xbf16>, vector<4x16xbf16> -> vector<4x32xbf16>
    %cst_180 = arith.constant dense<0.000000e+00> : vector<4x42xf32>
    %332 = tpu.matmul %331, %314, %cst_180 {dimension_numbers = #tpu.dot_dimension_numbers<[1], [0], [0], [1], [0, 0, 1, 1], [], []>} : vector<4x32xbf16>, vector<32x42xbf16>, vector<4x42xf32> -> vector<4x42xf32>
    %333 = arith.truncf %332 : vector<4x42xf32> to vector<4x42xbf16>
    %c0_181 = arith.constant 0 : index
    %c294 = arith.constant 294 : index
    %334 = vector.load %arg14[%c0_181, %c294] : memref<4x1766xbf16, #tpu.memory_space<vmem>>, vector<4x42xbf16>
    tpu.vector_store %arg14[%c0_181, %c294], %333 {strides = array<i32>} : memref<4x1766xbf16, #tpu.memory_space<vmem>>, vector<4x42xbf16>,
    %c8_182 = arith.constant 8 : index
    %c18_183 = arith.constant 18 : index
    %335 = vector.load %arg13[%c8_182, %c18_183] : memref<16x288xbf16, #tpu.memory_space<vmem>>, vector<4x16xbf16>
    %c12_184 = arith.constant 12 : index
    %c18_185 = arith.constant 18 : index
    %336 = vector.load %arg13[%c12_184, %c18_185] : memref<16x288xbf16, #tpu.memory_space<vmem>>, vector<4x16xbf16>
    %337 = tpu.concatenate %335, %336 in 1 : vector<4x16xbf16>, vector<4x16xbf16> -> vector<4x32xbf16>
    %cst_186 = arith.constant dense<0.000000e+00> : vector<4x42xf32>
    %338 = tpu.matmul %337, %314, %cst_186 {dimension_numbers = #tpu.dot_dimension_numbers<[1], [0], [0], [1], [0, 0, 1, 1], [], []>} : vector<4x32xbf16>, vector<32x42xbf16>, vector<4x42xf32> -> vector<4x42xf32>
    %339 = arith.truncf %338 : vector<4x42xf32> to vector<4x42xbf16>
    %c0_187 = arith.constant 0 : index
    %c336 = arith.constant 336 : index
    %340 = vector.load %arg14[%c0_187, %c336] : memref<4x1766xbf16, #tpu.memory_space<vmem>>, vector<4x42xbf16>
    tpu.vector_store %arg14[%c0_187, %c336], %339 {strides = array<i32>} : memref<4x1766xbf16, #tpu.memory_space<vmem>>, vector<4x42xbf16>,
    %c0_188 = arith.constant 0 : index
    %c36_189 = arith.constant 36 : index
    %341 = vector.load %arg13[%c0_188, %c36_189] : memref<16x288xbf16, #tpu.memory_space<vmem>>, vector<4x16xbf16>
    %c4_190 = arith.constant 4 : index
    %c36_191 = arith.constant 36 : index
    %342 = vector.load %arg13[%c4_190, %c36_191] : memref<16x288xbf16, #tpu.memory_space<vmem>>, vector<4x16xbf16>
    %343 = tpu.concatenate %341, %342 in 1 : vector<4x16xbf16>, vector<4x16xbf16> -> vector<4x32xbf16>
    %cst_192 = arith.constant dense<0.000000e+00> : vector<4x42xf32>
    %344 = tpu.matmul %343, %314, %cst_192 {dimension_numbers = #tpu.dot_dimension_numbers<[1], [0], [0], [1], [0, 0, 1, 1], [], []>} : vector<4x32xbf16>, vector<32x42xbf16>, vector<4x42xf32> -> vector<4x42xf32>
    %345 = arith.truncf %344 : vector<4x42xf32> to vector<4x42xbf16>
    %c0_193 = arith.constant 0 : index
    %c378 = arith.constant 378 : index
    %346 = vector.load %arg14[%c0_193, %c378] : memref<4x1766xbf16, #tpu.memory_space<vmem>>, vector<4x42xbf16>
    tpu.vector_store %arg14[%c0_193, %c378], %345 {strides = array<i32>} : memref<4x1766xbf16, #tpu.memory_space<vmem>>, vector<4x42xbf16>,
    %c8_194 = arith.constant 8 : index
    %c36_195 = arith.constant 36 : index
    %347 = vector.load %arg13[%c8_194, %c36_195] : memref<16x288xbf16, #tpu.memory_space<vmem>>, vector<4x16xbf16>
    %c12_196 = arith.constant 12 : index
    %c36_197 = arith.constant 36 : index
    %348 = vector.load %arg13[%c12_196, %c36_197] : memref<16x288xbf16, #tpu.memory_space<vmem>>, vector<4x16xbf16>
    %349 = tpu.concatenate %347, %348 in 1 : vector<4x16xbf16>, vector<4x16xbf16> -> vector<4x32xbf16>
    %cst_198 = arith.constant dense<0.000000e+00> : vector<4x42xf32>
    %350 = tpu.matmul %349, %314, %cst_198 {dimension_numbers = #tpu.dot_dimension_numbers<[1], [0], [0], [1], [0, 0, 1, 1], [], []>} : vector<4x32xbf16>, vector<32x42xbf16>, vector<4x42xf32> -> vector<4x42xf32>
    %351 = arith.truncf %350 : vector<4x42xf32> to vector<4x42xbf16>
    %c0_199 = arith.constant 0 : index
    %c420 = arith.constant 420 : index
    %352 = vector.load %arg14[%c0_199, %c420] : memref<4x1766xbf16, #tpu.memory_space<vmem>>, vector<4x42xbf16>
    tpu.vector_store %arg14[%c0_199, %c420], %351 {strides = array<i32>} : memref<4x1766xbf16, #tpu.memory_space<vmem>>, vector<4x42xbf16>,
    %c0_200 = arith.constant 0 : index
    %c54_201 = arith.constant 54 : index
    %353 = vector.load %arg13[%c0_200, %c54_201] : memref<16x288xbf16, #tpu.memory_space<vmem>>, vector<4x16xbf16>
    %c4_202 = arith.constant 4 : index
    %c54_203 = arith.constant 54 : index
    %354 = vector.load %arg13[%c4_202, %c54_203] : memref<16x288xbf16, #tpu.memory_space<vmem>>, vector<4x16xbf16>
    %355 = tpu.concatenate %353, %354 in 1 : vector<4x16xbf16>, vector<4x16xbf16> -> vector<4x32xbf16>
    %cst_204 = arith.constant dense<0.000000e+00> : vector<4x42xf32>
    %356 = tpu.matmul %355, %314, %cst_204 {dimension_numbers = #tpu.dot_dimension_numbers<[1], [0], [0], [1], [0, 0, 1, 1], [], []>} : vector<4x32xbf16>, vector<32x42xbf16>, vector<4x42xf32> -> vector<4x42xf32>
    %357 = arith.truncf %356 : vector<4x42xf32> to vector<4x42xbf16>
    %c0_205 = arith.constant 0 : index
    %c462 = arith.constant 462 : index
    %358 = vector.load %arg14[%c0_205, %c462] : memref<4x1766xbf16, #tpu.memory_space<vmem>>, vector<4x42xbf16>
    tpu.vector_store %arg14[%c0_205, %c462], %357 {strides = array<i32>} : memref<4x1766xbf16, #tpu.memory_space<vmem>>, vector<4x42xbf16>,
    %c8_206 = arith.constant 8 : index
    %c54_207 = arith.constant 54 : index
    %359 = vector.load %arg13[%c8_206, %c54_207] : memref<16x288xbf16, #tpu.memory_space<vmem>>, vector<4x16xbf16>
    %c12_208 = arith.constant 12 : index
    %c54_209 = arith.constant 54 : index
    %360 = vector.load %arg13[%c12_208, %c54_209] : memref<16x288xbf16, #tpu.memory_space<vmem>>, vector<4x16xbf16>
    %361 = tpu.concatenate %359, %360 in 1 : vector<4x16xbf16>, vector<4x16xbf16> -> vector<4x32xbf16>
    %cst_210 = arith.constant dense<0.000000e+00> : vector<4x42xf32>
    %362 = tpu.matmul %361, %314, %cst_210 {dimension_numbers = #tpu.dot_dimension_numbers<[1], [0], [0], [1], [0, 0, 1, 1], [], []>} : vector<4x32xbf16>, vector<32x42xbf16>, vector<4x42xf32> -> vector<4x42xf32>
    %363 = arith.truncf %362 : vector<4x42xf32> to vector<4x42xbf16>
    %c0_211 = arith.constant 0 : index
    %c504 = arith.constant 504 : index
    %364 = vector.load %arg14[%c0_211, %c504] : memref<4x1766xbf16, #tpu.memory_space<vmem>>, vector<4x42xbf16>
    tpu.vector_store %arg14[%c0_211, %c504], %363 {strides = array<i32>} : memref<4x1766xbf16, #tpu.memory_space<vmem>>, vector<4x42xbf16>,
    %c0_212 = arith.constant 0 : index
    %c72_213 = arith.constant 72 : index
    %365 = vector.load %arg13[%c0_212, %c72_213] : memref<16x288xbf16, #tpu.memory_space<vmem>>, vector<4x16xbf16>
    %c4_214 = arith.constant 4 : index
    %c72_215 = arith.constant 72 : index
    %366 = vector.load %arg13[%c4_214, %c72_215] : memref<16x288xbf16, #tpu.memory_space<vmem>>, vector<4x16xbf16>
    %367 = tpu.concatenate %365, %366 in 1 : vector<4x16xbf16>, vector<4x16xbf16> -> vector<4x32xbf16>
    %cst_216 = arith.constant dense<0.000000e+00> : vector<4x42xf32>
    %368 = tpu.matmul %367, %314, %cst_216 {dimension_numbers = #tpu.dot_dimension_numbers<[1], [0], [0], [1], [0, 0, 1, 1], [], []>} : vector<4x32xbf16>, vector<32x42xbf16>, vector<4x42xf32> -> vector<4x42xf32>
    %369 = arith.truncf %368 : vector<4x42xf32> to vector<4x42xbf16>
    %c0_217 = arith.constant 0 : index
    %c546 = arith.constant 546 : index
    %370 = vector.load %arg14[%c0_217, %c546] : memref<4x1766xbf16, #tpu.memory_space<vmem>>, vector<4x42xbf16>
    tpu.vector_store %arg14[%c0_217, %c546], %369 {strides = array<i32>} : memref<4x1766xbf16, #tpu.memory_space<vmem>>, vector<4x42xbf16>,
    %c8_218 = arith.constant 8 : index
    %c72_219 = arith.constant 72 : index
    %371 = vector.load %arg13[%c8_218, %c72_219] : memref<16x288xbf16, #tpu.memory_space<vmem>>, vector<4x16xbf16>
    %c12_220 = arith.constant 12 : index
    %c72_221 = arith.constant 72 : index
    %372 = vector.load %arg13[%c12_220, %c72_221] : memref<16x288xbf16, #tpu.memory_space<vmem>>, vector<4x16xbf16>
    %373 = tpu.concatenate %371, %372 in 1 : vector<4x16xbf16>, vector<4x16xbf16> -> vector<4x32xbf16>
    %cst_222 = arith.constant dense<0.000000e+00> : vector<4x42xf32>
    %374 = tpu.matmul %373, %314, %cst_222 {dimension_numbers = #tpu.dot_dimension_numbers<[1], [0], [0], [1], [0, 0, 1, 1], [], []>} : vector<4x32xbf16>, vector<32x42xbf16>, vector<4x42xf32> -> vector<4x42xf32>
    %375 = arith.truncf %374 : vector<4x42xf32> to vector<4x42xbf16>
    %c0_223 = arith.constant 0 : index
    %c588 = arith.constant 588 : index
    %376 = vector.load %arg14[%c0_223, %c588] : memref<4x1766xbf16, #tpu.memory_space<vmem>>, vector<4x42xbf16>
    tpu.vector_store %arg14[%c0_223, %c588], %375 {strides = array<i32>} : memref<4x1766xbf16, #tpu.memory_space<vmem>>, vector<4x42xbf16>,
    %c0_224 = arith.constant 0 : index
    %c90_225 = arith.constant 90 : index
    %377 = vector.load %arg13[%c0_224, %c90_225] : memref<16x288xbf16, #tpu.memory_space<vmem>>, vector<4x16xbf16>
    %c4_226 = arith.constant 4 : index
    %c90_227 = arith.constant 90 : index
    %378 = vector.load %arg13[%c4_226, %c90_227] : memref<16x288xbf16, #tpu.memory_space<vmem>>, vector<4x16xbf16>
    %379 = tpu.concatenate %377, %378 in 1 : vector<4x16xbf16>, vector<4x16xbf16> -> vector<4x32xbf16>
    %cst_228 = arith.constant dense<0.000000e+00> : vector<4x42xf32>
    %380 = tpu.matmul %379, %314, %cst_228 {dimension_numbers = #tpu.dot_dimension_numbers<[1], [0], [0], [1], [0, 0, 1, 1], [], []>} : vector<4x32xbf16>, vector<32x42xbf16>, vector<4x42xf32> -> vector<4x42xf32>
    %381 = arith.truncf %380 : vector<4x42xf32> to vector<4x42xbf16>
    %c0_229 = arith.constant 0 : index
    %c630 = arith.constant 630 : index
    %382 = vector.load %arg14[%c0_229, %c630] : memref<4x1766xbf16, #tpu.memory_space<vmem>>, vector<4x42xbf16>
    tpu.vector_store %arg14[%c0_229, %c630], %381 {strides = array<i32>} : memref<4x1766xbf16, #tpu.memory_space<vmem>>, vector<4x42xbf16>,
    %c8_230 = arith.constant 8 : index
    %c90_231 = arith.constant 90 : index
    %383 = vector.load %arg13[%c8_230, %c90_231] : memref<16x288xbf16, #tpu.memory_space<vmem>>, vector<4x16xbf16>
    %c12_232 = arith.constant 12 : index
    %c90_233 = arith.constant 90 : index
    %384 = vector.load %arg13[%c12_232, %c90_233] : memref<16x288xbf16, #tpu.memory_space<vmem>>, vector<4x16xbf16>
    %385 = tpu.concatenate %383, %384 in 1 : vector<4x16xbf16>, vector<4x16xbf16> -> vector<4x32xbf16>
    %cst_234 = arith.constant dense<0.000000e+00> : vector<4x42xf32>
    %386 = tpu.matmul %385, %314, %cst_234 {dimension_numbers = #tpu.dot_dimension_numbers<[1], [0], [0], [1], [0, 0, 1, 1], [], []>} : vector<4x32xbf16>, vector<32x42xbf16>, vector<4x42xf32> -> vector<4x42xf32>
    %387 = arith.truncf %386 : vector<4x42xf32> to vector<4x42xbf16>
    %c0_235 = arith.constant 0 : index
    %c672 = arith.constant 672 : index
    %388 = vector.load %arg14[%c0_235, %c672] : memref<4x1766xbf16, #tpu.memory_space<vmem>>, vector<4x42xbf16>
    tpu.vector_store %arg14[%c0_235, %c672], %387 {strides = array<i32>} : memref<4x1766xbf16, #tpu.memory_space<vmem>>, vector<4x42xbf16>,
    %c0_236 = arith.constant 0 : index
    %c108_237 = arith.constant 108 : index
    %389 = vector.load %arg13[%c0_236, %c108_237] : memref<16x288xbf16, #tpu.memory_space<vmem>>, vector<4x16xbf16>
    %c4_238 = arith.constant 4 : index
    %c108_239 = arith.constant 108 : index
    %390 = vector.load %arg13[%c4_238, %c108_239] : memref<16x288xbf16, #tpu.memory_space<vmem>>, vector<4x16xbf16>
    %391 = tpu.concatenate %389, %390 in 1 : vector<4x16xbf16>, vector<4x16xbf16> -> vector<4x32xbf16>
    %cst_240 = arith.constant dense<0.000000e+00> : vector<4x42xf32>
    %392 = tpu.matmul %391, %314, %cst_240 {dimension_numbers = #tpu.dot_dimension_numbers<[1], [0], [0], [1], [0, 0, 1, 1], [], []>} : vector<4x32xbf16>, vector<32x42xbf16>, vector<4x42xf32> -> vector<4x42xf32>
    %393 = arith.truncf %392 : vector<4x42xf32> to vector<4x42xbf16>
    %c0_241 = arith.constant 0 : index
    %c714 = arith.constant 714 : index
    %394 = vector.load %arg14[%c0_241, %c714] : memref<4x1766xbf16, #tpu.memory_space<vmem>>, vector<4x42xbf16>
    tpu.vector_store %arg14[%c0_241, %c714], %393 {strides = array<i32>} : memref<4x1766xbf16, #tpu.memory_space<vmem>>, vector<4x42xbf16>,
    %c8_242 = arith.constant 8 : index
    %c108_243 = arith.constant 108 : index
    %395 = vector.load %arg13[%c8_242, %c108_243] : memref<16x288xbf16, #tpu.memory_space<vmem>>, vector<4x16xbf16>
    %c12_244 = arith.constant 12 : index
    %c108_245 = arith.constant 108 : index
    %396 = vector.load %arg13[%c12_244, %c108_245] : memref<16x288xbf16, #tpu.memory_space<vmem>>, vector<4x16xbf16>
    %397 = tpu.concatenate %395, %396 in 1 : vector<4x16xbf16>, vector<4x16xbf16> -> vector<4x32xbf16>
    %cst_246 = arith.constant dense<0.000000e+00> : vector<4x42xf32>
    %398 = tpu.matmul %397, %314, %cst_246 {dimension_numbers = #tpu.dot_dimension_numbers<[1], [0], [0], [1], [0, 0, 1, 1], [], []>} : vector<4x32xbf16>, vector<32x42xbf16>, vector<4x42xf32> -> vector<4x42xf32>
    %399 = arith.truncf %398 : vector<4x42xf32> to vector<4x42xbf16>
    %c0_247 = arith.constant 0 : index
    %c756 = arith.constant 756 : index
    %400 = vector.load %arg14[%c0_247, %c756] : memref<4x1766xbf16, #tpu.memory_space<vmem>>, vector<4x42xbf16>
    tpu.vector_store %arg14[%c0_247, %c756], %399 {strides = array<i32>} : memref<4x1766xbf16, #tpu.memory_space<vmem>>, vector<4x42xbf16>,
    %c0_248 = arith.constant 0 : index
    %c126_249 = arith.constant 126 : index
    %401 = vector.load %arg13[%c0_248, %c126_249] : memref<16x288xbf16, #tpu.memory_space<vmem>>, vector<4x16xbf16>
    %c4_250 = arith.constant 4 : index
    %c126_251 = arith.constant 126 : index
    %402 = vector.load %arg13[%c4_250, %c126_251] : memref<16x288xbf16, #tpu.memory_space<vmem>>, vector<4x16xbf16>
    %403 = tpu.concatenate %401, %402 in 1 : vector<4x16xbf16>, vector<4x16xbf16> -> vector<4x32xbf16>
    %cst_252 = arith.constant dense<0.000000e+00> : vector<4x42xf32>
    %404 = tpu.matmul %403, %314, %cst_252 {dimension_numbers = #tpu.dot_dimension_numbers<[1], [0], [0], [1], [0, 0, 1, 1], [], []>} : vector<4x32xbf16>, vector<32x42xbf16>, vector<4x42xf32> -> vector<4x42xf32>
    %405 = arith.truncf %404 : vector<4x42xf32> to vector<4x42xbf16>
    %c0_253 = arith.constant 0 : index
    %c798 = arith.constant 798 : index
    %406 = vector.load %arg14[%c0_253, %c798] : memref<4x1766xbf16, #tpu.memory_space<vmem>>, vector<4x42xbf16>
    tpu.vector_store %arg14[%c0_253, %c798], %405 {strides = array<i32>} : memref<4x1766xbf16, #tpu.memory_space<vmem>>, vector<4x42xbf16>,
    %c8_254 = arith.constant 8 : index
    %c126_255 = arith.constant 126 : index
    %407 = vector.load %arg13[%c8_254, %c126_255] : memref<16x288xbf16, #tpu.memory_space<vmem>>, vector<4x16xbf16>
    %c12_256 = arith.constant 12 : index
    %c126_257 = arith.constant 126 : index
    %408 = vector.load %arg13[%c12_256, %c126_257] : memref<16x288xbf16, #tpu.memory_space<vmem>>, vector<4x16xbf16>
    %409 = tpu.concatenate %407, %408 in 1 : vector<4x16xbf16>, vector<4x16xbf16> -> vector<4x32xbf16>
    %cst_258 = arith.constant dense<0.000000e+00> : vector<4x42xf32>
    %410 = tpu.matmul %409, %314, %cst_258 {dimension_numbers = #tpu.dot_dimension_numbers<[1], [0], [0], [1], [0, 0, 1, 1], [], []>} : vector<4x32xbf16>, vector<32x42xbf16>, vector<4x42xf32> -> vector<4x42xf32>
    %411 = arith.truncf %410 : vector<4x42xf32> to vector<4x42xbf16>
    %c0_259 = arith.constant 0 : index
    %c840 = arith.constant 840 : index
    %412 = vector.load %arg14[%c0_259, %c840] : memref<4x1766xbf16, #tpu.memory_space<vmem>>, vector<4x42xbf16>
    tpu.vector_store %arg14[%c0_259, %c840], %411 {strides = array<i32>} : memref<4x1766xbf16, #tpu.memory_space<vmem>>, vector<4x42xbf16>,
    %c0_260 = arith.constant 0 : index
    %c144_261 = arith.constant 144 : index
    %413 = vector.load %arg13[%c0_260, %c144_261] : memref<16x288xbf16, #tpu.memory_space<vmem>>, vector<4x16xbf16>
    %c4_262 = arith.constant 4 : index
    %c144_263 = arith.constant 144 : index
    %414 = vector.load %arg13[%c4_262, %c144_263] : memref<16x288xbf16, #tpu.memory_space<vmem>>, vector<4x16xbf16>
    %415 = tpu.concatenate %413, %414 in 1 : vector<4x16xbf16>, vector<4x16xbf16> -> vector<4x32xbf16>
    %cst_264 = arith.constant dense<0.000000e+00> : vector<4x42xf32>
    %416 = tpu.matmul %415, %314, %cst_264 {dimension_numbers = #tpu.dot_dimension_numbers<[1], [0], [0], [1], [0, 0, 1, 1], [], []>} : vector<4x32xbf16>, vector<32x42xbf16>, vector<4x42xf32> -> vector<4x42xf32>
    %417 = arith.truncf %416 : vector<4x42xf32> to vector<4x42xbf16>
    %c0_265 = arith.constant 0 : index
    %c882 = arith.constant 882 : index
    %418 = vector.load %arg14[%c0_265, %c882] : memref<4x1766xbf16, #tpu.memory_space<vmem>>, vector<4x42xbf16>
    tpu.vector_store %arg14[%c0_265, %c882], %417 {strides = array<i32>} : memref<4x1766xbf16, #tpu.memory_space<vmem>>, vector<4x42xbf16>,
    %c8_266 = arith.constant 8 : index
    %c144_267 = arith.constant 144 : index
    %419 = vector.load %arg13[%c8_266, %c144_267] : memref<16x288xbf16, #tpu.memory_space<vmem>>, vector<4x16xbf16>
    %c12_268 = arith.constant 12 : index
    %c144_269 = arith.constant 144 : index
    %420 = vector.load %arg13[%c12_268, %c144_269] : memref<16x288xbf16, #tpu.memory_space<vmem>>, vector<4x16xbf16>
    %421 = tpu.concatenate %419, %420 in 1 : vector<4x16xbf16>, vector<4x16xbf16> -> vector<4x32xbf16>
    %cst_270 = arith.constant dense<0.000000e+00> : vector<4x42xf32>
    %422 = tpu.matmul %421, %314, %cst_270 {dimension_numbers = #tpu.dot_dimension_numbers<[1], [0], [0], [1], [0, 0, 1, 1], [], []>} : vector<4x32xbf16>, vector<32x42xbf16>, vector<4x42xf32> -> vector<4x42xf32>
    %423 = arith.truncf %422 : vector<4x42xf32> to vector<4x42xbf16>
    %c0_271 = arith.constant 0 : index
    %c924 = arith.constant 924 : index
    %424 = vector.load %arg14[%c0_271, %c924] : memref<4x1766xbf16, #tpu.memory_space<vmem>>, vector<4x42xbf16>
    tpu.vector_store %arg14[%c0_271, %c924], %423 {strides = array<i32>} : memref<4x1766xbf16, #tpu.memory_space<vmem>>, vector<4x42xbf16>,
    %c0_272 = arith.constant 0 : index
    %c162_273 = arith.constant 162 : index
    %425 = vector.load %arg13[%c0_272, %c162_273] : memref<16x288xbf16, #tpu.memory_space<vmem>>, vector<4x16xbf16>
    %c4_274 = arith.constant 4 : index
    %c162_275 = arith.constant 162 : index
    %426 = vector.load %arg13[%c4_274, %c162_275] : memref<16x288xbf16, #tpu.memory_space<vmem>>, vector<4x16xbf16>
    %427 = tpu.concatenate %425, %426 in 1 : vector<4x16xbf16>, vector<4x16xbf16> -> vector<4x32xbf16>
    %cst_276 = arith.constant dense<0.000000e+00> : vector<4x42xf32>
    %428 = tpu.matmul %427, %314, %cst_276 {dimension_numbers = #tpu.dot_dimension_numbers<[1], [0], [0], [1], [0, 0, 1, 1], [], []>} : vector<4x32xbf16>, vector<32x42xbf16>, vector<4x42xf32> -> vector<4x42xf32>
    %429 = arith.truncf %428 : vector<4x42xf32> to vector<4x42xbf16>
    %c0_277 = arith.constant 0 : index
    %c966 = arith.constant 966 : index
    %430 = vector.load %arg14[%c0_277, %c966] : memref<4x1766xbf16, #tpu.memory_space<vmem>>, vector<4x42xbf16>
    tpu.vector_store %arg14[%c0_277, %c966], %429 {strides = array<i32>} : memref<4x1766xbf16, #tpu.memory_space<vmem>>, vector<4x42xbf16>,
    %c8_278 = arith.constant 8 : index
    %c162_279 = arith.constant 162 : index
    %431 = vector.load %arg13[%c8_278, %c162_279] : memref<16x288xbf16, #tpu.memory_space<vmem>>, vector<4x16xbf16>
    %c12_280 = arith.constant 12 : index
    %c162_281 = arith.constant 162 : index
    %432 = vector.load %arg13[%c12_280, %c162_281] : memref<16x288xbf16, #tpu.memory_space<vmem>>, vector<4x16xbf16>
    %433 = tpu.concatenate %431, %432 in 1 : vector<4x16xbf16>, vector<4x16xbf16> -> vector<4x32xbf16>
    %cst_282 = arith.constant dense<0.000000e+00> : vector<4x42xf32>
    %434 = tpu.matmul %433, %314, %cst_282 {dimension_numbers = #tpu.dot_dimension_numbers<[1], [0], [0], [1], [0, 0, 1, 1], [], []>} : vector<4x32xbf16>, vector<32x42xbf16>, vector<4x42xf32> -> vector<4x42xf32>
    %435 = arith.truncf %434 : vector<4x42xf32> to vector<4x42xbf16>
    %c0_283 = arith.constant 0 : index
    %c1008 = arith.constant 1008 : index
    %436 = vector.load %arg14[%c0_283, %c1008] : memref<4x1766xbf16, #tpu.memory_space<vmem>>, vector<4x42xbf16>
    tpu.vector_store %arg14[%c0_283, %c1008], %435 {strides = array<i32>} : memref<4x1766xbf16, #tpu.memory_space<vmem>>, vector<4x42xbf16>,
    %c0_284 = arith.constant 0 : index
    %c180_285 = arith.constant 180 : index
    %437 = vector.load %arg13[%c0_284, %c180_285] : memref<16x288xbf16, #tpu.memory_space<vmem>>, vector<4x16xbf16>
    %c4_286 = arith.constant 4 : index
    %c180_287 = arith.constant 180 : index
    %438 = vector.load %arg13[%c4_286, %c180_287] : memref<16x288xbf16, #tpu.memory_space<vmem>>, vector<4x16xbf16>
    %439 = tpu.concatenate %437, %438 in 1 : vector<4x16xbf16>, vector<4x16xbf16> -> vector<4x32xbf16>
    %cst_288 = arith.constant dense<0.000000e+00> : vector<4x42xf32>
    %440 = tpu.matmul %439, %314, %cst_288 {dimension_numbers = #tpu.dot_dimension_numbers<[1], [0], [0], [1], [0, 0, 1, 1], [], []>} : vector<4x32xbf16>, vector<32x42xbf16>, vector<4x42xf32> -> vector<4x42xf32>
    %441 = arith.truncf %440 : vector<4x42xf32> to vector<4x42xbf16>
    %c0_289 = arith.constant 0 : index
    %c1050 = arith.constant 1050 : index
    %442 = vector.load %arg14[%c0_289, %c1050] : memref<4x1766xbf16, #tpu.memory_space<vmem>>, vector<4x42xbf16>
    tpu.vector_store %arg14[%c0_289, %c1050], %441 {strides = array<i32>} : memref<4x1766xbf16, #tpu.memory_space<vmem>>, vector<4x42xbf16>,
    %c8_290 = arith.constant 8 : index
    %c180_291 = arith.constant 180 : index
    %443 = vector.load %arg13[%c8_290, %c180_291] : memref<16x288xbf16, #tpu.memory_space<vmem>>, vector<4x16xbf16>
    %c12_292 = arith.constant 12 : index
    %c180_293 = arith.constant 180 : index
    %444 = vector.load %arg13[%c12_292, %c180_293] : memref<16x288xbf16, #tpu.memory_space<vmem>>, vector<4x16xbf16>
    %445 = tpu.concatenate %443, %444 in 1 : vector<4x16xbf16>, vector<4x16xbf16> -> vector<4x32xbf16>
    %cst_294 = arith.constant dense<0.000000e+00> : vector<4x42xf32>
    %446 = tpu.matmul %445, %314, %cst_294 {dimension_numbers = #tpu.dot_dimension_numbers<[1], [0], [0], [1], [0, 0, 1, 1], [], []>} : vector<4x32xbf16>, vector<32x42xbf16>, vector<4x42xf32> -> vector<4x42xf32>
    %447 = arith.truncf %446 : vector<4x42xf32> to vector<4x42xbf16>
    %c0_295 = arith.constant 0 : index
    %c1092 = arith.constant 1092 : index
    %448 = vector.load %arg14[%c0_295, %c1092] : memref<4x1766xbf16, #tpu.memory_space<vmem>>, vector<4x42xbf16>
    tpu.vector_store %arg14[%c0_295, %c1092], %447 {strides = array<i32>} : memref<4x1766xbf16, #tpu.memory_space<vmem>>, vector<4x42xbf16>,
    %c0_296 = arith.constant 0 : index
    %c198_297 = arith.constant 198 : index
    %449 = vector.load %arg13[%c0_296, %c198_297] : memref<16x288xbf16, #tpu.memory_space<vmem>>, vector<4x16xbf16>
    %c4_298 = arith.constant 4 : index
    %c198_299 = arith.constant 198 : index
    %450 = vector.load %arg13[%c4_298, %c198_299] : memref<16x288xbf16, #tpu.memory_space<vmem>>, vector<4x16xbf16>
    %451 = tpu.concatenate %449, %450 in 1 : vector<4x16xbf16>, vector<4x16xbf16> -> vector<4x32xbf16>
    %cst_300 = arith.constant dense<0.000000e+00> : vector<4x42xf32>
    %452 = tpu.matmul %451, %314, %cst_300 {dimension_numbers = #tpu.dot_dimension_numbers<[1], [0], [0], [1], [0, 0, 1, 1], [], []>} : vector<4x32xbf16>, vector<32x42xbf16>, vector<4x42xf32> -> vector<4x42xf32>
    %453 = arith.truncf %452 : vector<4x42xf32> to vector<4x42xbf16>
    %c0_301 = arith.constant 0 : index
    %c1134 = arith.constant 1134 : index
    %454 = vector.load %arg14[%c0_301, %c1134] : memref<4x1766xbf16, #tpu.memory_space<vmem>>, vector<4x42xbf16>
    tpu.vector_store %arg14[%c0_301, %c1134], %453 {strides = array<i32>} : memref<4x1766xbf16, #tpu.memory_space<vmem>>, vector<4x42xbf16>,
    %c8_302 = arith.constant 8 : index
    %c198_303 = arith.constant 198 : index
    %455 = vector.load %arg13[%c8_302, %c198_303] : memref<16x288xbf16, #tpu.memory_space<vmem>>, vector<4x16xbf16>
    %c12_304 = arith.constant 12 : index
    %c198_305 = arith.constant 198 : index
    %456 = vector.load %arg13[%c12_304, %c198_305] : memref<16x288xbf16, #tpu.memory_space<vmem>>, vector<4x16xbf16>
    %457 = tpu.concatenate %455, %456 in 1 : vector<4x16xbf16>, vector<4x16xbf16> -> vector<4x32xbf16>
    %cst_306 = arith.constant dense<0.000000e+00> : vector<4x42xf32>
    %458 = tpu.matmul %457, %314, %cst_306 {dimension_numbers = #tpu.dot_dimension_numbers<[1], [0], [0], [1], [0, 0, 1, 1], [], []>} : vector<4x32xbf16>, vector<32x42xbf16>, vector<4x42xf32> -> vector<4x42xf32>
    %459 = arith.truncf %458 : vector<4x42xf32> to vector<4x42xbf16>
    %c0_307 = arith.constant 0 : index
    %c1176 = arith.constant 1176 : index
    %460 = vector.load %arg14[%c0_307, %c1176] : memref<4x1766xbf16, #tpu.memory_space<vmem>>, vector<4x42xbf16>
    tpu.vector_store %arg14[%c0_307, %c1176], %459 {strides = array<i32>} : memref<4x1766xbf16, #tpu.memory_space<vmem>>, vector<4x42xbf16>,
    %c0_308 = arith.constant 0 : index
    %c216_309 = arith.constant 216 : index
    %461 = vector.load %arg13[%c0_308, %c216_309] : memref<16x288xbf16, #tpu.memory_space<vmem>>, vector<4x16xbf16>
    %c4_310 = arith.constant 4 : index
    %c216_311 = arith.constant 216 : index
    %462 = vector.load %arg13[%c4_310, %c216_311] : memref<16x288xbf16, #tpu.memory_space<vmem>>, vector<4x16xbf16>
    %463 = tpu.concatenate %461, %462 in 1 : vector<4x16xbf16>, vector<4x16xbf16> -> vector<4x32xbf16>
    %cst_312 = arith.constant dense<0.000000e+00> : vector<4x42xf32>
    %464 = tpu.matmul %463, %314, %cst_312 {dimension_numbers = #tpu.dot_dimension_numbers<[1], [0], [0], [1], [0, 0, 1, 1], [], []>} : vector<4x32xbf16>, vector<32x42xbf16>, vector<4x42xf32> -> vector<4x42xf32>
    %465 = arith.truncf %464 : vector<4x42xf32> to vector<4x42xbf16>
    %c0_313 = arith.constant 0 : index
    %c1218 = arith.constant 1218 : index
    %466 = vector.load %arg14[%c0_313, %c1218] : memref<4x1766xbf16, #tpu.memory_space<vmem>>, vector<4x42xbf16>
    tpu.vector_store %arg14[%c0_313, %c1218], %465 {strides = array<i32>} : memref<4x1766xbf16, #tpu.memory_space<vmem>>, vector<4x42xbf16>,
    %c8_314 = arith.constant 8 : index
    %c216_315 = arith.constant 216 : index
    %467 = vector.load %arg13[%c8_314, %c216_315] : memref<16x288xbf16, #tpu.memory_space<vmem>>, vector<4x16xbf16>
    %c12_316 = arith.constant 12 : index
    %c216_317 = arith.constant 216 : index
    %468 = vector.load %arg13[%c12_316, %c216_317] : memref<16x288xbf16, #tpu.memory_space<vmem>>, vector<4x16xbf16>
    %469 = tpu.concatenate %467, %468 in 1 : vector<4x16xbf16>, vector<4x16xbf16> -> vector<4x32xbf16>
    %cst_318 = arith.constant dense<0.000000e+00> : vector<4x42xf32>
    %470 = tpu.matmul %469, %314, %cst_318 {dimension_numbers = #tpu.dot_dimension_numbers<[1], [0], [0], [1], [0, 0, 1, 1], [], []>} : vector<4x32xbf16>, vector<32x42xbf16>, vector<4x42xf32> -> vector<4x42xf32>
    %471 = arith.truncf %470 : vector<4x42xf32> to vector<4x42xbf16>
    %c0_319 = arith.constant 0 : index
    %c1260 = arith.constant 1260 : index
    %472 = vector.load %arg14[%c0_319, %c1260] : memref<4x1766xbf16, #tpu.memory_space<vmem>>, vector<4x42xbf16>
    tpu.vector_store %arg14[%c0_319, %c1260], %471 {strides = array<i32>} : memref<4x1766xbf16, #tpu.memory_space<vmem>>, vector<4x42xbf16>,
    %c0_320 = arith.constant 0 : index
    %c234_321 = arith.constant 234 : index
    %473 = vector.load %arg13[%c0_320, %c234_321] : memref<16x288xbf16, #tpu.memory_space<vmem>>, vector<4x16xbf16>
    %c4_322 = arith.constant 4 : index
    %c234_323 = arith.constant 234 : index
    %474 = vector.load %arg13[%c4_322, %c234_323] : memref<16x288xbf16, #tpu.memory_space<vmem>>, vector<4x16xbf16>
    %475 = tpu.concatenate %473, %474 in 1 : vector<4x16xbf16>, vector<4x16xbf16> -> vector<4x32xbf16>
    %cst_324 = arith.constant dense<0.000000e+00> : vector<4x42xf32>
    %476 = tpu.matmul %475, %314, %cst_324 {dimension_numbers = #tpu.dot_dimension_numbers<[1], [0], [0], [1], [0, 0, 1, 1], [], []>} : vector<4x32xbf16>, vector<32x42xbf16>, vector<4x42xf32> -> vector<4x42xf32>
    %477 = arith.truncf %476 : vector<4x42xf32> to vector<4x42xbf16>
    %c0_325 = arith.constant 0 : index
    %c1302 = arith.constant 1302 : index
    %478 = vector.load %arg14[%c0_325, %c1302] : memref<4x1766xbf16, #tpu.memory_space<vmem>>, vector<4x42xbf16>
    tpu.vector_store %arg14[%c0_325, %c1302], %477 {strides = array<i32>} : memref<4x1766xbf16, #tpu.memory_space<vmem>>, vector<4x42xbf16>,
    %c8_326 = arith.constant 8 : index
    %c234_327 = arith.constant 234 : index
    %479 = vector.load %arg13[%c8_326, %c234_327] : memref<16x288xbf16, #tpu.memory_space<vmem>>, vector<4x16xbf16>
    %c12_328 = arith.constant 12 : index
    %c234_329 = arith.constant 234 : index
    %480 = vector.load %arg13[%c12_328, %c234_329] : memref<16x288xbf16, #tpu.memory_space<vmem>>, vector<4x16xbf16>
    %481 = tpu.concatenate %479, %480 in 1 : vector<4x16xbf16>, vector<4x16xbf16> -> vector<4x32xbf16>
    %cst_330 = arith.constant dense<0.000000e+00> : vector<4x42xf32>
    %482 = tpu.matmul %481, %314, %cst_330 {dimension_numbers = #tpu.dot_dimension_numbers<[1], [0], [0], [1], [0, 0, 1, 1], [], []>} : vector<4x32xbf16>, vector<32x42xbf16>, vector<4x42xf32> -> vector<4x42xf32>
    %483 = arith.truncf %482 : vector<4x42xf32> to vector<4x42xbf16>
    %c0_331 = arith.constant 0 : index
    %c1344 = arith.constant 1344 : index
    %484 = vector.load %arg14[%c0_331, %c1344] : memref<4x1766xbf16, #tpu.memory_space<vmem>>, vector<4x42xbf16>
    tpu.vector_store %arg14[%c0_331, %c1344], %483 {strides = array<i32>} : memref<4x1766xbf16, #tpu.memory_space<vmem>>, vector<4x42xbf16>,
    %c0_332 = arith.constant 0 : index
    %c252_333 = arith.constant 252 : index
    %485 = vector.load %arg13[%c0_332, %c252_333] : memref<16x288xbf16, #tpu.memory_space<vmem>>, vector<4x16xbf16>
    %c4_334 = arith.constant 4 : index
    %c252_335 = arith.constant 252 : index
    %486 = vector.load %arg13[%c4_334, %c252_335] : memref<16x288xbf16, #tpu.memory_space<vmem>>, vector<4x16xbf16>
    %487 = tpu.concatenate %485, %486 in 1 : vector<4x16xbf16>, vector<4x16xbf16> -> vector<4x32xbf16>
    %cst_336 = arith.constant dense<0.000000e+00> : vector<4x42xf32>
    %488 = tpu.matmul %487, %314, %cst_336 {dimension_numbers = #tpu.dot_dimension_numbers<[1], [0], [0], [1], [0, 0, 1, 1], [], []>} : vector<4x32xbf16>, vector<32x42xbf16>, vector<4x42xf32> -> vector<4x42xf32>
    %489 = arith.truncf %488 : vector<4x42xf32> to vector<4x42xbf16>
    %c0_337 = arith.constant 0 : index
    %c1386 = arith.constant 1386 : index
    %490 = vector.load %arg14[%c0_337, %c1386] : memref<4x1766xbf16, #tpu.memory_space<vmem>>, vector<4x42xbf16>
    tpu.vector_store %arg14[%c0_337, %c1386], %489 {strides = array<i32>} : memref<4x1766xbf16, #tpu.memory_space<vmem>>, vector<4x42xbf16>,
    %c8_338 = arith.constant 8 : index
    %c252_339 = arith.constant 252 : index
    %491 = vector.load %arg13[%c8_338, %c252_339] : memref<16x288xbf16, #tpu.memory_space<vmem>>, vector<4x16xbf16>
    %c12_340 = arith.constant 12 : index
    %c252_341 = arith.constant 252 : index
    %492 = vector.load %arg13[%c12_340, %c252_341] : memref<16x288xbf16, #tpu.memory_space<vmem>>, vector<4x16xbf16>
    %493 = tpu.concatenate %491, %492 in 1 : vector<4x16xbf16>, vector<4x16xbf16> -> vector<4x32xbf16>
    %cst_342 = arith.constant dense<0.000000e+00> : vector<4x42xf32>
    %494 = tpu.matmul %493, %314, %cst_342 {dimension_numbers = #tpu.dot_dimension_numbers<[1], [0], [0], [1], [0, 0, 1, 1], [], []>} : vector<4x32xbf16>, vector<32x42xbf16>, vector<4x42xf32> -> vector<4x42xf32>
    %495 = arith.truncf %494 : vector<4x42xf32> to vector<4x42xbf16>
    %c0_343 = arith.constant 0 : index
    %c1428 = arith.constant 1428 : index
    %496 = vector.load %arg14[%c0_343, %c1428] : memref<4x1766xbf16, #tpu.memory_space<vmem>>, vector<4x42xbf16>
    tpu.vector_store %arg14[%c0_343, %c1428], %495 {strides = array<i32>} : memref<4x1766xbf16, #tpu.memory_space<vmem>>, vector<4x42xbf16>,
    %c0_344 = arith.constant 0 : index
    %c270_345 = arith.constant 270 : index
    %497 = vector.load %arg13[%c0_344, %c270_345] : memref<16x288xbf16, #tpu.memory_space<vmem>>, vector<4x16xbf16>
    %c4_346 = arith.constant 4 : index
    %c270_347 = arith.constant 270 : index
    %498 = vector.load %arg13[%c4_346, %c270_347] : memref<16x288xbf16, #tpu.memory_space<vmem>>, vector<4x16xbf16>
    %499 = tpu.concatenate %497, %498 in 1 : vector<4x16xbf16>, vector<4x16xbf16> -> vector<4x32xbf16>
    %cst_348 = arith.constant dense<0.000000e+00> : vector<4x42xf32>
    %500 = tpu.matmul %499, %314, %cst_348 {dimension_numbers = #tpu.dot_dimension_numbers<[1], [0], [0], [1], [0, 0, 1, 1], [], []>} : vector<4x32xbf16>, vector<32x42xbf16>, vector<4x42xf32> -> vector<4x42xf32>
    %501 = arith.truncf %500 : vector<4x42xf32> to vector<4x42xbf16>
    %c0_349 = arith.constant 0 : index
    %c1470 = arith.constant 1470 : index
    %502 = vector.load %arg14[%c0_349, %c1470] : memref<4x1766xbf16, #tpu.memory_space<vmem>>, vector<4x42xbf16>
    tpu.vector_store %arg14[%c0_349, %c1470], %501 {strides = array<i32>} : memref<4x1766xbf16, #tpu.memory_space<vmem>>, vector<4x42xbf16>,
    %c8_350 = arith.constant 8 : index
    %c270_351 = arith.constant 270 : index
    %503 = vector.load %arg13[%c8_350, %c270_351] : memref<16x288xbf16, #tpu.memory_space<vmem>>, vector<4x16xbf16>
    %c12_352 = arith.constant 12 : index
    %c270_353 = arith.constant 270 : index
    %504 = vector.load %arg13[%c12_352, %c270_353] : memref<16x288xbf16, #tpu.memory_space<vmem>>, vector<4x16xbf16>
    %505 = tpu.concatenate %503, %504 in 1 : vector<4x16xbf16>, vector<4x16xbf16> -> vector<4x32xbf16>
    %cst_354 = arith.constant dense<0.000000e+00> : vector<4x42xf32>
    %506 = tpu.matmul %505, %314, %cst_354 {dimension_numbers = #tpu.dot_dimension_numbers<[1], [0], [0], [1], [0, 0, 1, 1], [], []>} : vector<4x32xbf16>, vector<32x42xbf16>, vector<4x42xf32> -> vector<4x42xf32>
    %507 = arith.truncf %506 : vector<4x42xf32> to vector<4x42xbf16>
    %c0_355 = arith.constant 0 : index
    %c1512 = arith.constant 1512 : index
    %508 = vector.load %arg14[%c0_355, %c1512] : memref<4x1766xbf16, #tpu.memory_space<vmem>>, vector<4x42xbf16>
    tpu.vector_store %arg14[%c0_355, %c1512], %507 {strides = array<i32>} : memref<4x1766xbf16, #tpu.memory_space<vmem>>, vector<4x42xbf16>,
    %c0_356 = arith.constant 0 : index
    %c378_357 = arith.constant 378 : index
    %509 = vector.load %arg14[%c0_356, %c378_357] : memref<4x1766xbf16, #tpu.memory_space<vmem>>, vector<4x42xbf16>
    %c0_358 = arith.constant 0 : index
    %c42 = arith.constant 42 : index
    %510 = vector.load %arg14[%c0_358, %c42] : memref<4x1766xbf16, #tpu.memory_space<vmem>>, vector<4x42xbf16>
    tpu.vector_store %arg14[%c0_358, %c42], %509 {strides = array<i32>} : memref<4x1766xbf16, #tpu.memory_space<vmem>>, vector<4x42xbf16>,
    %c0_359 = arith.constant 0 : index
    %c336_360 = arith.constant 336 : index
    %511 = vector.load %arg14[%c0_359, %c336_360] : memref<4x1766xbf16, #tpu.memory_space<vmem>>, vector<4x42xbf16>
    %c0_361 = arith.constant 0 : index
    %c84 = arith.constant 84 : index
    %512 = vector.load %arg14[%c0_361, %c84] : memref<4x1766xbf16, #tpu.memory_space<vmem>>, vector<4x42xbf16>
    tpu.vector_store %arg14[%c0_361, %c84], %511 {strides = array<i32>} : memref<4x1766xbf16, #tpu.memory_space<vmem>>, vector<4x42xbf16>,
    %c0_362 = arith.constant 0 : index
    %c294_363 = arith.constant 294 : index
    %513 = vector.load %arg14[%c0_362, %c294_363] : memref<4x1766xbf16, #tpu.memory_space<vmem>>, vector<4x42xbf16>
    %c0_364 = arith.constant 0 : index
    %c126_365 = arith.constant 126 : index
    %514 = vector.load %arg14[%c0_364, %c126_365] : memref<4x1766xbf16, #tpu.memory_space<vmem>>, vector<4x42xbf16>
    tpu.vector_store %arg14[%c0_364, %c126_365], %513 {strides = array<i32>} : memref<4x1766xbf16, #tpu.memory_space<vmem>>, vector<4x42xbf16>,
    %c0_366 = arith.constant 0 : index
    %c252_367 = arith.constant 252 : index
    %515 = vector.load %arg14[%c0_366, %c252_367] : memref<4x1766xbf16, #tpu.memory_space<vmem>>, vector<4x42xbf16>
    %c0_368 = arith.constant 0 : index
    %c168 = arith.constant 168 : index
    %516 = vector.load %arg14[%c0_368, %c168] : memref<4x1766xbf16, #tpu.memory_space<vmem>>, vector<4x42xbf16>
    tpu.vector_store %arg14[%c0_368, %c168], %515 {strides = array<i32>} : memref<4x1766xbf16, #tpu.memory_space<vmem>>, vector<4x42xbf16>,
    %c0_369 = arith.constant 0 : index
    %c1470_370 = arith.constant 1470 : index
    %517 = vector.load %arg14[%c0_369, %c1470_370] : memref<4x1766xbf16, #tpu.memory_space<vmem>>, vector<4x42xbf16>
    %c0_371 = arith.constant 0 : index
    %c1554 = arith.constant 1554 : index
    %518 = vector.load %arg14[%c0_371, %c1554] : memref<4x1766xbf16, #tpu.memory_space<vmem>>, vector<4x42xbf16>
    tpu.vector_store %arg14[%c0_371, %c1554], %517 {strides = array<i32>} : memref<4x1766xbf16, #tpu.memory_space<vmem>>, vector<4x42xbf16>,
    %c0_372 = arith.constant 0 : index
    %c1428_373 = arith.constant 1428 : index
    %519 = vector.load %arg14[%c0_372, %c1428_373] : memref<4x1766xbf16, #tpu.memory_space<vmem>>, vector<4x42xbf16>
    %c0_374 = arith.constant 0 : index
    %c1596 = arith.constant 1596 : index
    %520 = vector.load %arg14[%c0_374, %c1596] : memref<4x1766xbf16, #tpu.memory_space<vmem>>, vector<4x42xbf16>
    tpu.vector_store %arg14[%c0_374, %c1596], %519 {strides = array<i32>} : memref<4x1766xbf16, #tpu.memory_space<vmem>>, vector<4x42xbf16>,
    %c0_375 = arith.constant 0 : index
    %c1386_376 = arith.constant 1386 : index
    %521 = vector.load %arg14[%c0_375, %c1386_376] : memref<4x1766xbf16, #tpu.memory_space<vmem>>, vector<4x42xbf16>
    %c0_377 = arith.constant 0 : index
    %c1638 = arith.constant 1638 : index
    %522 = vector.load %arg14[%c0_377, %c1638] : memref<4x1766xbf16, #tpu.memory_space<vmem>>, vector<4x42xbf16>
    tpu.vector_store %arg14[%c0_377, %c1638], %521 {strides = array<i32>} : memref<4x1766xbf16, #tpu.memory_space<vmem>>, vector<4x42xbf16>,
    %c0_378 = arith.constant 0 : index
    %c1344_379 = arith.constant 1344 : index
    %523 = vector.load %arg14[%c0_378, %c1344_379] : memref<4x1766xbf16, #tpu.memory_space<vmem>>, vector<4x42xbf16>
    %c0_380 = arith.constant 0 : index
    %c1680 = arith.constant 1680 : index
    %524 = vector.load %arg14[%c0_380, %c1680] : memref<4x1766xbf16, #tpu.memory_space<vmem>>, vector<4x42xbf16>
    tpu.vector_store %arg14[%c0_380, %c1680], %523 {strides = array<i32>} : memref<4x1766xbf16, #tpu.memory_space<vmem>>, vector<4x42xbf16>,
    %cst_381 = arith.constant 0.000000e+00 : bf16
    %525 = vector.broadcast %cst_381 : bf16 to vector<4x44xbf16>
    %c0_382 = arith.constant 0 : index
    %c1722 = arith.constant 1722 : index
    %526 = vector.load %arg14[%c0_382, %c1722] : memref<4x1766xbf16, #tpu.memory_space<vmem>>, vector<4x44xbf16>
    tpu.vector_store %arg14[%c0_382, %c1722], %525 {strides = array<i32>} : memref<4x1766xbf16, #tpu.memory_space<vmem>>, vector<4x44xbf16>,
    %c0_383 = arith.constant 0 : index
    %c0_384 = arith.constant 0 : index
    %527 = vector.load %arg14[%c0_383, %c0_384] : memref<4x1766xbf16, #tpu.memory_space<vmem>>, vector<4x1680xbf16>
    %c0_385 = arith.constant 0 : index
    %c0_386 = arith.constant 0 : index
    %528 = vector.load %arg15[%c0_385, %c0_386] : memref<36x1680xbf16, #tpu.memory_space<vmem>>, vector<4x1680xbf16>
    tpu.vector_store %arg15[%c0_385, %c0_386], %527 {strides = array<i32>} : memref<36x1680xbf16, #tpu.memory_space<vmem>>, vector<4x1680xbf16>,
    %c0_387 = arith.constant 0 : index
    %c1_388 = arith.constant 1 : index
    %529 = vector.load %arg14[%c0_387, %c1_388] : memref<4x1766xbf16, #tpu.memory_space<vmem>>, vector<4x1680xbf16>
    %c4_389 = arith.constant 4 : index
    %c0_390 = arith.constant 0 : index
    %530 = vector.load %arg15[%c4_389, %c0_390] : memref<36x1680xbf16, #tpu.memory_space<vmem>>, vector<4x1680xbf16>
    tpu.vector_store %arg15[%c4_389, %c0_390], %529 {strides = array<i32>} : memref<36x1680xbf16, #tpu.memory_space<vmem>>, vector<4x1680xbf16>,
    %c0_391 = arith.constant 0 : index
    %c2_392 = arith.constant 2 : index
    %531 = vector.load %arg14[%c0_391, %c2_392] : memref<4x1766xbf16, #tpu.memory_space<vmem>>, vector<4x1680xbf16>
    %c8_393 = arith.constant 8 : index
    %c0_394 = arith.constant 0 : index
    %532 = vector.load %arg15[%c8_393, %c0_394] : memref<36x1680xbf16, #tpu.memory_space<vmem>>, vector<4x1680xbf16>
    tpu.vector_store %arg15[%c8_393, %c0_394], %531 {strides = array<i32>} : memref<36x1680xbf16, #tpu.memory_space<vmem>>, vector<4x1680xbf16>,
    %c0_395 = arith.constant 0 : index
    %c42_396 = arith.constant 42 : index
    %533 = vector.load %arg14[%c0_395, %c42_396] : memref<4x1766xbf16, #tpu.memory_space<vmem>>, vector<4x1680xbf16>
    %c12_397 = arith.constant 12 : index
    %c0_398 = arith.constant 0 : index
    %534 = vector.load %arg15[%c12_397, %c0_398] : memref<36x1680xbf16, #tpu.memory_space<vmem>>, vector<4x1680xbf16>
    tpu.vector_store %arg15[%c12_397, %c0_398], %533 {strides = array<i32>} : memref<36x1680xbf16, #tpu.memory_space<vmem>>, vector<4x1680xbf16>,
    %c0_399 = arith.constant 0 : index
    %c43 = arith.constant 43 : index
    %535 = vector.load %arg14[%c0_399, %c43] : memref<4x1766xbf16, #tpu.memory_space<vmem>>, vector<4x1680xbf16>
    %c16_400 = arith.constant 16 : index
    %c0_401 = arith.constant 0 : index
    %536 = vector.load %arg15[%c16_400, %c0_401] : memref<36x1680xbf16, #tpu.memory_space<vmem>>, vector<4x1680xbf16>
    tpu.vector_store %arg15[%c16_400, %c0_401], %535 {strides = array<i32>} : memref<36x1680xbf16, #tpu.memory_space<vmem>>, vector<4x1680xbf16>,
    %c0_402 = arith.constant 0 : index
    %c44 = arith.constant 44 : index
    %537 = vector.load %arg14[%c0_402, %c44] : memref<4x1766xbf16, #tpu.memory_space<vmem>>, vector<4x1680xbf16>
    %c20_403 = arith.constant 20 : index
    %c0_404 = arith.constant 0 : index
    %538 = vector.load %arg15[%c20_403, %c0_404] : memref<36x1680xbf16, #tpu.memory_space<vmem>>, vector<4x1680xbf16>
    tpu.vector_store %arg15[%c20_403, %c0_404], %537 {strides = array<i32>} : memref<36x1680xbf16, #tpu.memory_space<vmem>>, vector<4x1680xbf16>,
    %c0_405 = arith.constant 0 : index
    %c84_406 = arith.constant 84 : index
    %539 = vector.load %arg14[%c0_405, %c84_406] : memref<4x1766xbf16, #tpu.memory_space<vmem>>, vector<4x1680xbf16>
    %c24_407 = arith.constant 24 : index
    %c0_408 = arith.constant 0 : index
    %540 = vector.load %arg15[%c24_407, %c0_408] : memref<36x1680xbf16, #tpu.memory_space<vmem>>, vector<4x1680xbf16>
    tpu.vector_store %arg15[%c24_407, %c0_408], %539 {strides = array<i32>} : memref<36x1680xbf16, #tpu.memory_space<vmem>>, vector<4x1680xbf16>,
    %c0_409 = arith.constant 0 : index
    %c85 = arith.constant 85 : index
    %541 = vector.load %arg14[%c0_409, %c85] : memref<4x1766xbf16, #tpu.memory_space<vmem>>, vector<4x1680xbf16>
    %c28 = arith.constant 28 : index
    %c0_410 = arith.constant 0 : index
    %542 = vector.load %arg15[%c28, %c0_410] : memref<36x1680xbf16, #tpu.memory_space<vmem>>, vector<4x1680xbf16>
    tpu.vector_store %arg15[%c28, %c0_410], %541 {strides = array<i32>} : memref<36x1680xbf16, #tpu.memory_space<vmem>>, vector<4x1680xbf16>,
    %c0_411 = arith.constant 0 : index
    %c86 = arith.constant 86 : index
    %543 = vector.load %arg14[%c0_411, %c86] : memref<4x1766xbf16, #tpu.memory_space<vmem>>, vector<4x1680xbf16>
    %c32_412 = arith.constant 32 : index
    %c0_413 = arith.constant 0 : index
    %544 = vector.load %arg15[%c32_412, %c0_413] : memref<36x1680xbf16, #tpu.memory_space<vmem>>, vector<4x1680xbf16>
    tpu.vector_store %arg15[%c32_412, %c0_413], %543 {strides = array<i32>} : memref<36x1680xbf16, #tpu.memory_space<vmem>>, vector<4x1680xbf16>,
    %c0_414 = arith.constant 0 : index
    %c0_415 = arith.constant 0 : index
    %545 = vector.load %arg6[%c0_414, %c0_415] : memref<3x36xbf16, #tpu.memory_space<vmem>>, vector<3x36xbf16>
    %c0_416 = arith.constant 0 : index
    %c0_417 = arith.constant 0 : index
    %546 = vector.load %arg15[%c0_416, %c0_417] : memref<36x1680xbf16, #tpu.memory_space<vmem>>, vector<36x1680xbf16>
    %cst_418 = arith.constant dense<0.000000e+00> : vector<3x1680xf32>
    %547 = tpu.matmul %545, %546, %cst_418 {dimension_numbers = #tpu.dot_dimension_numbers<[1], [0], [0], [1], [0, 0, 1, 1], [], []>} : vector<3x36xbf16>, vector<36x1680xbf16>, vector<3x1680xf32> -> vector<3x1680xf32>
    %c0_419 = arith.constant 0 : index
    %c0_420 = arith.constant 0 : index
    %548 = vector.load %arg7[%c0_419, %c0_420] : memref<3x1xf32, #tpu.memory_space<vmem>>, vector<3x1xf32>
    %549 = vector.broadcast %548 : vector<3x1xf32> to vector<3x1680xf32>
    %550 = arith.addf %547, %549 : vector<3x1680xf32>
    %c0_421 = arith.constant 0 : index
    %c0_422 = arith.constant 0 : index
    %c0_423 = arith.constant 0 : index
    %551 = vector.load %arg8[%c0_421, %c0_422, %c0_423] : memref<1x3x1680xf32, #tpu.memory_space<vmem>>, vector<1x3x1680xf32>
    %552 = vector.shape_cast %551 : vector<1x3x1680xf32> to vector<3x1680xf32>
    %553 = vector.shape_cast %550 : vector<3x1680xf32> to vector<1x3x1680xf32>
    tpu.vector_store %arg8[%c0_421, %c0_422, %c0_423], %553 {strides = array<i32>} : memref<1x3x1680xf32, #tpu.memory_space<vmem>>, vector<1x3x1680xf32>,
    return
  }
  func.func @transform_0(%arg0: i32) -> (i32, i32, i32, i32) {
    %c0_i32 = arith.constant 0 : i32
    %c0_i32_0 = arith.constant 0 : i32
    %c0_i32_1 = arith.constant 0 : i32
    %c0_i32_2 = arith.constant 0 : i32
    return %arg0, %c0_i32, %c0_i32_0, %c0_i32_1 : i32, i32, i32, i32
  }
  func.func @transform_1(%arg0: i32) -> (i32, i32) {
    %c0_i32 = arith.constant 0 : i32
    %c0_i32_0 = arith.constant 0 : i32
    %c0_i32_1 = arith.constant 0 : i32
    return %c0_i32, %c0_i32_0 : i32, i32
  }
  func.func @transform_2(%arg0: i32) -> (i32, i32) {
    %c0_i32 = arith.constant 0 : i32
    %c0_i32_0 = arith.constant 0 : i32
    %c0_i32_1 = arith.constant 0 : i32
    return %c0_i32, %c0_i32_0 : i32, i32
  }
  func.func @transform_3(%arg0: i32) -> (i32, i32) {
    %c0_i32 = arith.constant 0 : i32
    %c0_i32_0 = arith.constant 0 : i32
    %c0_i32_1 = arith.constant 0 : i32
    return %c0_i32, %c0_i32_0 : i32, i32
  }
  func.func @transform_4(%arg0: i32) -> (i32, i32) {
    %c0_i32 = arith.constant 0 : i32
    %c0_i32_0 = arith.constant 0 : i32
    %c0_i32_1 = arith.constant 0 : i32
    return %c0_i32, %c0_i32_0 : i32, i32
  }
  func.func @transform_5(%arg0: i32) -> (i32, i32) {
    %c0_i32 = arith.constant 0 : i32
    %c0_i32_0 = arith.constant 0 : i32
    %c0_i32_1 = arith.constant 0 : i32
    return %c0_i32, %c0_i32_0 : i32, i32
  }
  func.func @transform_6(%arg0: i32) -> (i32, i32) {
    %c0_i32 = arith.constant 0 : i32
    %c0_i32_0 = arith.constant 0 : i32
    %c0_i32_1 = arith.constant 0 : i32
    return %c0_i32, %c0_i32_0 : i32, i32
  }
  func.func @transform_7(%arg0: i32) -> (i32, i32, i32) {
    %c0_i32 = arith.constant 0 : i32
    %c0_i32_0 = arith.constant 0 : i32
    %c0_i32_1 = arith.constant 0 : i32
    return %arg0, %c0_i32, %c0_i32_0 : i32, i32, i32
  }
}

</mosaic_0001>

<bundles_post_ra>
// kernel: decoder_forward.1
= control target key start
LH: loop header
LB: loop body
LE: loop exit
PB: predicated region body
PF: predicated region fallthrough
CT: control target
= control target key end

     0   :  { %s6624_s24 = smov 0   ;;  %s7908_s0 = inlined_call_operand.vmem [shape: f32[2,8,8,8], index: 0, kind: input, shape index: {}]   ;;  %s7909_s1 = inlined_call_operand.vmem [shape: f32[8,18], index: 1, kind: input, shape index: {}]   ;;  %s7910_s2 = inlined_call_operand.vmem [shape: bf16[8,72], index: 2, kind: input, shape index: {}]   ;;  %s7911_s3 = inlined_call_operand.vmem [shape: bf16[16,72], index: 3, kind: input, shape index: {}]   ;;  %s7912_s4 = inlined_call_operand.vmem [shape: bf16[32,42], index: 4, kind: input, shape index: {}]   ;;  %s7913_s5 = inlined_call_operand.vmem [shape: bf16[3,36], index: 5, kind: input, shape index: {}]   ;;  %s7914_s6 = inlined_call_operand.vmem [shape: f32[3,1], index: 6, kind: input, shape index: {}]   ;;  %s7915_s7 = inlined_call_operand.vmem [shape: f32[2,3,1680], index: 7, kind: output, shape index: {}]  }
   0x1 LB: > { %s5597_s25 = sadd.s32 4294967295, %s6519_s24   ;;  %p5601_p0 = scmp.ge.s32.totalorder %s6519_s24, 1  ;;  %s6519_s24 = sphi %s6624_s24, %s17_s24  }
   0x2   : > { %p237_p1 = scmp.lt.s32.totalorder %s6519_s24, 3 }
   0x4   : > { %p238_p2 = pnand %p5601_p0, %p237_p1 }
   0x5   : > { %p269_p3 = scmp.lt.s32.totalorder (!%p238_p2), %s5597_s25, 1  ;;  %s6521_s9 = smov (!%p238_p2), 54  }
   0x6   : > { %241 = sbr.rel (%p238_p2) target bundleno = 2821 (0xb05), region = 48  ;;  %s6522_s10 = smov (!%p238_p2), 18  }
   0x7   : > { %s6523_s11 = smov (!%p238_p2), 72   ;;  %s6524_s12 = smov (!%p238_p2), 36  }
   0x8   : > { %s6525_s13 = smov (!%p238_p2), 90   ;;  %s7926_s14 = smov (!%p238_p2), 126  }
   0x9   : > { %s6527_s15 = smov (!%p238_p2), 16   ;;  %s6528_s16 = smov (!%p238_p2), 108  }
   0xa   : > { %s6529_s17 = smov (!%p238_p2), 52   ;;  %s6530_s18 = smov (!%p238_p2), 34  }
   0xb   : > { %v288_v0 = vld [vmem:[%s7909_s1] sm:$0xff]  ;;  %s7974_s25 = smov (!%p269_p3, %s5597_s25), 1  ;;  %vm289_vm0 = vcmask 64512   ;;  %vm423_vm1 = vcmask 142336   ;;  %v6531_v57 = vmov 0   ;;  %s6532_s19 = smov 124  }
   0xc   : > { %5985 = vmatprep.subr.mxu1 %v288_v0  ;;  %s5845_s28 = sshll.u32 %s7974_s25, 6  ;;  %6361 = vset.pattern.permute.xlu0 %v6531_v57  ;;  %s6533_s20 = smov 70   ;;  %vm434_vm2 = vcmask 289936   ;;  %vm442_vm3 = vcmask 437536   ;;  %vm453_vm4 = vcmask 585136   ;;  %vm464_vm5 = vcmask 732736  }
   0xd   : > { %5986 = vmatpush3.msra.mxu1 %v288_v0  ;;  %s273_s8 = scalar_lea.vmem %s7908_s0, %s5845_s28  ;;  %6362 = vset.pattern.permute.xlu1 %v6531_v57  ;;  %s6534_s21 = smov 106   ;;  %vm475_vm6 = vcmask 880336   ;;  %vm500_vm7 = vcmask 1044464   ;;  %vm501_vm8 = vcmask 130052   ;;  %vm7922_vm9 = vcmask 1031168  }
   0xe   : > { %v280_v1 = vld [vmem:[%s273_s8] sm:$0xff]  ;;  %v281_v2 = vld [vmem:[%s273_s8 + $0x8] sm:$0xff]  ;;  %v282_v3 = vld [vmem:[%s273_s8 + $0x10] sm:$0xff]  ;;  %s6535_s22 = smov 88   ;;  %s6536_s23 = smov 32   ;;  %vm486_vm10 = vcmask 1027936  }
   0xf   : > { %5987 = vmatprep.mubr.msk.f32.mxu1 %vm289_vm0, %v280_v1  ;;  %v283_v4 = vld [vmem:[%s273_s8 + $0x18] sm:$0xff]  ;;  %v284_v5 = vld [vmem:[%s273_s8 + $0x20] sm:$0xff]  ;;  %v285_v6 = vld [vmem:[%s273_s8 + $0x28] sm:$0xff]  ;;  %s6537_s26 = smov 14   ;;  %s6538_s27 = smov 50   ;;  %vm513_vm12 = vcmask 273536  }
  0x10   : > { %5988 = vmatmul.mubr.msk.f32.vlgmr.msra.gmra.mxu1 %vm289_vm0, %v281_v2  ;;  %v286_v7 = vld [vmem:[%s273_s8 + $0x30] sm:$0xff]  ;;  %v287_v8 = vld [vmem:[%s273_s8 + $0x38] sm:$0xff]  ;;  %vm502_vm11 = vmor %vm501_vm8, %vm500_vm7  ;;  %vm524_vm13 = vcmask 421136   ;;  %vm535_vm14 = vcmask 568736   ;;  %vm546_vm15 = vcmask 716336   ;;  %vm605_vm7 = vcmask 404736  }
  0x11   : > { %5990 = vmatprep.mubr.msk.f32.mxu1 %vm289_vm0, %v282_v3  ;;  %vm610_vm8 = vcmask 552336   ;;  %s6540_s28 = smov 92   ;;  %s6541_s29 = smov 91  }
  0x12   : > { %s6542_s30 = smov 109   ;;  %s6543_s8 = smov 110  }
  0x14   : > { %5991 = vmatmul.mubr.msk.f32.gmra.mxu1 %vm289_vm0, %v283_v4 }
  0x15   : > { %5993 = vmatprep.mubr.msk.f32.mxu1 %vm289_vm0, %v284_v5 }
  0x18   : > { %5994 = vmatmul.mubr.msk.f32.gmra.mxu1 %vm289_vm0, %v285_v6 }
  0x19   : > { %5996 = vmatprep.mubr.msk.f32.mxu1 %vm289_vm0, %v286_v7 }
  0x1c   : > { %5997 = vmatmul.mubr.msk.f32.gmra.mxu1 %vm289_vm0, %v287_v8  ;;  %vm582_vm0 = vcmask 1044448  }
  0x1d   : > { %892 = vmatprep.mubr.bf16.mxu1 %v6531_v57 }
  0xd0   : > { %v5989_v9 = vpop.f32.mrf.mxu1 }
  0xd1   : > { %v420_v11 = vmul.f32 0.25, %v5989_v9  ;;  %v444_v12 = vmul.f32 0.75, %v5989_v9 }
  0xd2   : > { %v380_v10 = vpop.f32.mrf.mxu1 }
  0xd3   : > { %v419_v13 = vmul.f32 0.75, %v380_v10  ;;  %v425_v14 = vmul.f32 0.25, %v380_v10 }
  0xd4   : > { %v5992_v15 = vpop.f32.mrf.mxu1 }
  0xd5   : > { %v421_v16 = vadd.f32 %v420_v11, %v419_v13  ;;  %v445_v17 = vadd.f32 %v444_v12, %v425_v14  ;;  %v426_v19 = vadd.f32 %v425_v14, %v419_v13  ;;  %v488_v24 = vmul.f32 0.75, %v5992_v15 }
  0xd6   : > { %v390_v18 = vpop.f32.mrf.mxu1  ;;  %v477_v32 = vmul.f32 0.25, %v5992_v15 }
  0xd7   : > { %v455_v20 = vmul.f32 0.25, %v390_v18  ;;  %v466_v21 = vmul.f32 0.75, %v390_v18  ;;  %v5848_v22 = vpack.c.bf16 %v445_v17, %v445_v17  ;;  %v422_v23 = vpack.c.bf16 %v421_v16, %v421_v16 }
  0xd8   : > { %v5995_v25 = vpop.f32.mrf.mxu1  ;;  %v5846_v26 = vpack.c.bf16 %v426_v19, %v426_v19 }
  0xd9   : > { %v456_v27 = vadd.f32 %v455_v20, %v444_v12  ;;  %450 = vrot.lane.b32.xlu1 %v5848_v22, %s6521_s9  ;;  %424 = vst.msk [vmem:[#allocation2] sm:$0xf] %vm423_vm1, %v422_v23  ;;  %v467_v29 = vadd.f32 %v466_v21, %v420_v11  ;;  %v489_v33 = vadd.f32 %v488_v24, %v455_v20  ;;  %v526_v35 = vmul.f32 0.25, %v5995_v25 }
  0xda   : > { %431 = vrot.lane.b32.xlu0 %v5846_v26, %s6522_s10  ;;  %v400_v28 = vpop.f32.mrf.mxu1  ;;  %v478_v38 = vadd.f32 %v477_v32, %v466_v21  ;;  %v537_v46 = vmul.f32 0.75, %v5995_v25  ;;  %vm583_vm1 = vcmask 113668  }
  0xdb   : > { %v504_v30 = vmul.f32 0.25, %v400_v28  ;;  %v5849_v31 = vpack.c.bf16 %v456_v27, %v456_v27  ;;  %v5850_v37 = vpack.c.bf16 %v467_v29, %v467_v29  ;;  %v515_v39 = vmul.f32 0.75, %v400_v28 }
  0xdc   : > { %v5998_v34 = vpop.f32.mrf.mxu1  ;;  %v5852_v41 = vpack.c.bf16 %v489_v33, %v489_v33  ;;  %v5851_v48 = vpack.c.bf16 %v478_v38, %v478_v38 }
  0xdd   : > { %461 = vrot.lane.b32.xlu1 %v5849_v31, %s6523_s11  ;;  %v505_v36 = vadd.f32 %v504_v30, %v488_v24  ;;  %v570_v42 = vmul.f32 0.25, %v5998_v34  ;;  %v527_v43 = vadd.f32 %v526_v35, %v515_v39  ;;  %v516_v47 = vadd.f32 %v515_v39, %v477_v32 }
  0xde   : > { %439 = vrot.lane.b32.xlu0 %v422_v23, %s6524_s12  ;;  %v410_v40 = vpop.f32.mrf.mxu1  ;;  %v538_v51 = vadd.f32 %v537_v46, %v504_v30  ;;  %v586_v55 = vmul.f32 0.75, %v5998_v34  ;;  %v6539_v24 = vmov 0.0  }
  0xdf   : > { %v559_v44 = vmul.f32 0.75, %v410_v40  ;;  %v5853_v45 = vpack.c.bf16 %v505_v36, %v505_v36  ;;  %v5855_v50 = vpack.c.bf16 %v527_v43, %v527_v43  ;;  %v548_v52 = vmul.f32 0.25, %v410_v40  ;;  %5999 = vmatprep.subr.bf16.mxu0 %v6539_v24 }
  0xe0   : > { %v5854_v53 = vpack.c.bf16 %v516_v47, %v516_v47  ;;  %v5856_v59 = vpack.c.bf16 %v538_v51, %v538_v51  ;;  %v597_v60 = vadd.f32 %v586_v55, %v570_v42 }
  0xe1   : > { %472 = vrot.lane.b32.xlu1 %v5850_v37, %s6525_s13  ;;  %v571_v49 = vadd.f32 %v570_v42, %v559_v44  ;;  %v560_v56 = vadd.f32 %v559_v44, %v526_v35  ;;  %v549_v58 = vadd.f32 %v548_v52, %v537_v46  ;;  %v587_v62 = vadd.f32 %v586_v55, %v548_v52 }
  0xe2   : > { %494 = vrot.lane.b32.xlu0 %v5852_v41, %s7926_s14  ;;  %v5861_v0 = vpack.c.bf16 %v597_v60, %v597_v60 }
  0xe3   : > { %v5859_v54 = vpack.c.bf16 %v571_v49, %v571_v49  ;;  %v5858_v61 = vpack.c.bf16 %v560_v56, %v560_v56  ;;  %v5857_v63 = vpack.c.bf16 %v549_v58, %v549_v58  ;;  %v5860_v1 = vpack.c.bf16 %v587_v62, %v587_v62 }
  0xe5   : > { %510 = vrot.lane.b32.xlu1 %v5853_v45, %s6527_s15 }
  0xe6   : > { %483 = vrot.lane.b32.xlu0 %v5851_v48, %s6528_s16 }
  0xe9   : > { %532 = vrot.lane.b32.xlu1 %v5855_v50, %s6529_s17  ;;  %s7928_s17 = smov 127  }
  0xea   : > { %521 = vrot.lane.b32.xlu0 %v5854_v53, %s6530_s18 }
  0xed   : > { %576 = vrot.lane.b32.xlu1 %v5859_v54, %s6532_s19 }
  0xee   : > { %543 = vrot.lane.b32.xlu0 %v5856_v59, %s6533_s20 }
  0xf1   : > { %565 = vrot.lane.b32.xlu1 %v5858_v61, %s6534_s21 }
  0xf2   : > { %554 = vrot.lane.b32.xlu0 %v5857_v63, %s6535_s22 }
  0xf5   : > { %602 = vrot.lane.b32.xlu1 %v5861_v0, %s6536_s23 }
  0xf6   : > { %592 = vrot.lane.b32.xlu0 %v5860_v1, %s6537_s26  ;;  %s6546_s26 = smov 19  }
  0xfa   : > { %607 = vrot.lane.b32.xlu0 %v5860_v1, %s6538_s27  ;;  %s6549_s27 = smov 74  }
 0x14b   : > { %v451_v2 = vpop.permute.xlu1 %450 }
 0x14c   : > { %v432_v3 = vpop.permute.xlu0 %431 }
 0x14d   : > { %435 = vst.msk [vmem:[#allocation2] sm:$0xf] %vm434_vm2, %v432_v3  ;;  %vm557_vm2 = vcmask 863936  }
 0x14f   : > { %v462_v4 = vpop.permute.xlu1 %461 }
 0x150   : > { %v440_v5 = vpop.permute.xlu0 %439 }
 0x151   : > { %443 = vst.msk [vmem:[#allocation2] sm:$0xf] %vm442_vm3, %v440_v5  ;;  %vm7916_vm3 = vcmask 1014784  }
 0x152   : > { %454 = vst.msk [vmem:[#allocation2] sm:$0xf] %vm453_vm4, %v451_v2  ;;  %vm568_vm4 = vcmask 1011536  }
 0x153   : > { %465 = vst.msk [vmem:[#allocation2] sm:$0xf] %vm464_vm5, %v462_v4  ;;  %v473_v6 = vpop.permute.xlu1 %472  ;;  %vm584_vm5 = vmor %vm583_vm1, %vm582_vm0  ;;  %vm7925_vm0 = vcmask 744448   ;;  %vm7924_vm1 = vcmask 891904  }
 0x154   : > { %v495_v7 = vpop.permute.xlu0 %494  ;;  %476 = vst.msk [vmem:[#allocation2] sm:$0xf] %vm475_vm6, %v473_v6  ;;  %vm595_vm6 = vcmask 257136  }
 0x155   : > { %v496_v8 = vrot.slane %v495_v7, 4 }
 0x157   : > { %v511_v9 = vpop.permute.xlu1 %510  ;;  %v498_v11 = vsel %vm7922_vm9, %v496_v8, %v495_v7 }
 0x158   : > { %v484_v10 = vpop.permute.xlu0 %483 }
 0x159   : > { %487 = vst.msk [vmem:[#allocation2] sm:$0xf] %vm486_vm10, %v484_v10  ;;  %vm612_vm10 = vcmask 568864  }
 0x15a   : > { %503 = vst.msk [vmem:[#allocation2] sm:$0xff] %vm502_vm11, %v498_v11  ;;  %vm617_vm11 = vcmask 257024  }
 0x15b   : > { %514 = vst.msk [vmem:[#allocation2 + $0x4] sm:$0xf] %vm513_vm12, %v511_v9  ;;  %v533_v12 = vpop.permute.xlu1 %532  ;;  %vm7917_vm12 = vmmov 0  }
 0x15c   : > { %v522_v13 = vpop.permute.xlu0 %521  ;;  %6009 = vmatprep.mubr.msk.bf16.mxu0 %vm7917_vm12, %v6539_v24 }
 0x15d   : > { %525 = vst.msk [vmem:[#allocation2 + $0x4] sm:$0xf] %vm524_vm13, %v522_v13  ;;  %vm629_vm13 = vcmask 1043456  }
 0x15e   : > { %536 = vst.msk [vmem:[#allocation2 + $0x4] sm:$0xf] %vm535_vm14, %v533_v12  ;;  %vm749_vm14 = vcmask 736256  }
 0x15f   : > { %v577_v14 = vpop.permute.xlu1 %576 }
 0x160   : > { %v544_v15 = vpop.permute.xlu0 %543  ;;  %v578_v16 = vrot.slane %v577_v14, 4 }
 0x161   : > { %547 = vst.msk [vmem:[#allocation2 + $0x4] sm:$0xf] %vm546_vm15, %v544_v15  ;;  %vm715_vm15 = vcmask 752640  }
 0x162   : > { %v580_v19 = vsel %vm7916_vm3, %v578_v16, %v577_v14 }
 0x163   : > { %v566_v17 = vpop.permute.xlu1 %565 }
 0x164   : > { %v555_v18 = vpop.permute.xlu0 %554 }
 0x165   : > { %558 = vst.msk [vmem:[#allocation2 + $0x4] sm:$0xf] %vm557_vm2, %v555_v18  ;;  %vm7923_vm2 = vcmask 883712  }
 0x166   : > { %569 = vst.msk [vmem:[#allocation2 + $0x4] sm:$0xf] %vm568_vm4, %v566_v17  ;;  %vm7921_vm4 = vcmask 900096  }
 0x167   : > { %585 = vst.msk [vmem:[#allocation2 + $0x4] sm:$0xff] %vm584_vm5, %v580_v19  ;;  %v603_v20 = vpop.permute.xlu1 %602  ;;  %vm7920_vm5 = vcmask 1039360  }
 0x168   : > { %v593_v21 = vpop.permute.xlu0 %592 }
 0x169   : > { %596 = vst.msk [vmem:[#allocation2 + $0x8] sm:$0xf] %vm595_vm6, %v593_v21  ;;  %vm7919_vm6 = vcmask 588800  }
 0x16a   : > { %606 = vst.msk [vmem:[#allocation2 + $0x8] sm:$0xf] %vm605_vm7, %v603_v20 }
 0x16c   : > { %v608_v22 = vpop.permute.xlu0 %607 }
 0x16d   : > { %611 = vst.msk [vmem:[#allocation2 + $0x8] sm:$0xf] %vm610_vm8, %v608_v22 }
 0x16e   : > { %613 = vst.msk [vmem:[#allocation2 + $0x8] sm:$0xf] %vm612_vm10, %v6531_v57  ;;  %v6669_v23 = vld [vmem:[#allocation2] sm:$0xff] }
 0x16f   : > { %742 = vrot.lane.b32.xlu1 %v6669_v23, %s6525_s13 }
 0x173   : > { %708 = vrot.lane.b32.xlu1 %v6669_v23, %s6540_s28 }
 0x175   : > { %v615_v25 = vld [vmem:[#allocation2 + $0x8] sm:$0xf] }
 0x176   : > { %v739_v26 = vld [vmem:[#allocation2 + $0x8] sm:$0xf]  ;;  %618 = vst.msk [vmem:[#allocation4 + $0x8] sm:$0xf] %vm617_vm11, %v615_v25 }
 0x177   : > { %744 = vrot.lane.b32.xlu0 %v739_v26, %s6525_s13  ;;  %725 = vrot.lane.b32.xlu1 %v6669_v23, %s6541_s29  ;;  %v705_v27 = vld [vmem:[#allocation2 + $0x8] sm:$0xf] }
 0x178   : > { %v722_v28 = vld [vmem:[#allocation2 + $0x8] sm:$0xf] }
 0x179   : > { %v671_v29 = vld [vmem:[#allocation2 + $0x8] sm:$0xf] }
 0x17a   : > { %v688_v30 = vld [vmem:[#allocation2 + $0x8] sm:$0xf] }
 0x17b   : > { %710 = vrot.lane.b32.xlu0 %v705_v27, %s6540_s28  ;;  %674 = vrot.lane.b32.xlu1 %v6669_v23, %s6542_s30  ;;  %v638_v31 = vld [vmem:[#allocation2 + $0x8] sm:$0xf] }
 0x17c   : > { %v654_v32 = vld [vmem:[#allocation2 + $0x8] sm:$0xf] }
 0x17d   : > { %v620_v33 = vld [vmem:[#allocation2 + $0x8] sm:$0xf] }
 0x17f   : > { %727 = vrot.lane.b32.xlu0 %v722_v28, %s6541_s29  ;;  %691 = vrot.lane.b32.xlu1 %v6669_v23, %s6528_s16 }
 0x183   : > { %676 = vrot.lane.b32.xlu0 %v671_v29, %s6542_s30  ;;  %641 = vrot.lane.b32.xlu1 %v6669_v23, %s7926_s14 }
 0x187   : > { %693 = vrot.lane.b32.xlu0 %v688_v30, %s6528_s16  ;;  %657 = vrot.lane.b32.xlu1 %v6669_v23, %s6543_s8 }
 0x18b   : > { %643 = vrot.lane.b32.xlu0 %v638_v31, %s7926_s14  ;;  %623 = vrot.lane.b32.xlu1 %v6669_v23, %s7928_s17 }
 0x18f   : > { %659 = vrot.lane.b32.xlu0 %v654_v32, %s6543_s8 }
 0x193   : > { %625 = vrot.lane.b32.xlu0 %v620_v33, %s7928_s17 }
 0x1e1   : > { %v743_v34 = vpop.permute.xlu1 %742 }
 0x1e2   : > { %v746_v37 = vrot.slane %v743_v34, 4 }
 0x1e5   : > { %v709_v35 = vpop.permute.xlu1 %708 }
 0x1e6   : > { %v712_v43 = vrot.slane %v709_v35, 4 }
 0x1e9   : > { %v745_v36 = vpop.permute.xlu0 %744  ;;  %v726_v39 = vpop.permute.xlu1 %725 }
 0x1ea   : > { %v747_v38 = vrot.slane %v745_v36, 4  ;;  %754 = vst.msk [vmem:[#allocation4 + $0x68] sm:$0xf] %vm617_vm11, %v745_v36  ;;  %v729_v53 = vrot.slane %v726_v39, 4 }
 0x1ec   : > { %v748_v40 = vsel %vm629_vm13, %v746_v37, %v747_v38  ;;  %v755_v37 = vld [vmem:[%s7910_s2] sm:$0xf] }
 0x1ed   : > { %v750_v41 = vsel %vm749_vm14, %v743_v34, %v748_v40  ;;  %v711_v42 = vpop.permute.xlu0 %710  ;;  %v675_v45 = vpop.permute.xlu1 %674 }
 0x1ee   : > { %v713_v44 = vrot.slane %v711_v42, 4  ;;  %720 = vst.msk [vmem:[#allocation4 + $0x50] sm:$0xf] %vm617_vm11, %v711_v42  ;;  %v5642_v46 = vcombine.high %v750_v41, %v750_v41  ;;  %v5641_v47 = vcombine.low %v750_v41, %v750_v41  ;;  %v678_v61 = vrot.slane %v675_v45, 4 }
 0x1f0   : > { %v714_v48 = vsel %vm629_vm13, %v712_v43, %v713_v44  ;;  %5644 = vmatprep.subr.msk.bf16.mxu1 %vm629_vm13, %v5642_v46  ;;  %v852_v49 = vsel %vm629_vm13, %v5641_v47, 0 }
 0x1f1   : > { %v716_v50 = vsel %vm715_vm15, %v709_v35, %v714_v48  ;;  %v728_v51 = vpop.permute.xlu0 %727  ;;  %v6363_v52 = vld [vmem:[#allocation4 + $0x68] ss:$0 sps:$4 sm:$0xff]   ;;  %867 = vmatpush1.bf16.msra.mxu1 %v852_v49  ;;  %v692_v55 = vpop.permute.xlu1 %691 }
 0x1f2   : > { %v730_v54 = vrot.slane %v728_v51, 4  ;;  %737 = vst.msk [vmem:[#allocation4 + $0x5c] sm:$0xf] %vm617_vm11, %v728_v51  ;;  %v858_v56 = vsel %vm629_vm13, %v6363_v52, 0  ;;  %v695_v6 = vrot.slane %v692_v55, 4 }
 0x1f3   : > { %6000 = vmatpush3.bf16.msra.mxu0 %v858_v56 }
 0x1f4   : > { %v731_v58 = vsel %vm629_vm13, %v729_v53, %v730_v54  ;;  %6001 = vmatprep.subr.bf16.mxu0 %v6539_v24 }
 0x1f5   : > { %v733_v59 = vsel %vm7925_vm0, %v726_v39, %v731_v58  ;;  %v677_v60 = vpop.permute.xlu0 %676  ;;  %v642_v1 = vpop.permute.xlu1 %641 }
 0x1f6   : > { %v679_v62 = vrot.slane %v677_v60, 4  ;;  %686 = vst.msk [vmem:[#allocation4 + $0x38] sm:$0xf] %vm617_vm11, %v677_v60  ;;  %v5638_v63 = vcombine.low %v716_v50, %v733_v59  ;;  %v5639_v0 = vcombine.high %v716_v50, %v733_v59  ;;  %v645_v12 = vrot.slane %v642_v1, 4 }
 0x1f8   : > { %v680_v2 = vsel %vm629_vm13, %v678_v61, %v679_v62  ;;  %868 = vmatprep.subr.bf16.mxu1 %v5639_v0 }
 0x1f9   : > { %v682_v3 = vsel %vm7924_vm1, %v675_v45, %v680_v2  ;;  %v694_v4 = vpop.permute.xlu0 %693  ;;  %v6364_v5 = vld [vmem:[#allocation4 + $0x50] ss:$12 sps:$4 sm:$0xff]   ;;  %869 = vmatpush1.bf16.msra.mxu1 %v5638_v63  ;;  %v658_v10 = vpop.permute.xlu1 %657 }
 0x1fa   : > { %v696_v7 = vrot.slane %v694_v4, 4  ;;  %703 = vst.msk [vmem:[#allocation4 + $0x44] sm:$0xf] %vm617_vm11, %v694_v4  ;;  %6002 = vmatpush3.bf16.msra.mxu0 %v6364_v5  ;;  %v661_v20 = vrot.slane %v658_v10, 4 }
 0x1fb   : > { %6003 = vmatprep.subr.bf16.mxu0 %v6539_v24 }
 0x1fc   : > { %v697_v8 = vsel %vm629_vm13, %v695_v6, %v696_v7 }
 0x1fd   : > { %v699_v9 = vsel %vm7923_vm2, %v692_v55, %v697_v8  ;;  %v644_v11 = vpop.permute.xlu0 %643  ;;  %v624_v22 = vpop.permute.xlu1 %623 }
 0x1fe   : > { %v646_v13 = vrot.slane %v644_v11, 4  ;;  %652 = vst.msk [vmem:[#allocation4 + $0x20] sm:$0xf] %vm617_vm11, %v644_v11  ;;  %v5635_v14 = vcombine.low %v682_v3, %v699_v9  ;;  %v5636_v15 = vcombine.high %v682_v3, %v699_v9  ;;  %v627_v28 = vrot.slane %v624_v22, 4 }
 0x200   : > { %v647_v16 = vsel %vm629_vm13, %v645_v12, %v646_v13  ;;  %870 = vmatprep.subr.bf16.mxu1 %v5636_v15 }
 0x201   : > { %v648_v17 = vsel %vm7922_vm9, %v642_v1, %v647_v16  ;;  %v660_v18 = vpop.permute.xlu0 %659  ;;  %v6365_v19 = vld [vmem:[#allocation4 + $0x38] ss:$12 sps:$4 sm:$0xff]   ;;  %871 = vmatpush1.bf16.msra.mxu1 %v5635_v14 }
 0x202   : > { %v662_v21 = vrot.slane %v660_v18, 4  ;;  %669 = vst.msk [vmem:[#allocation4 + $0x2c] sm:$0xf] %vm617_vm11, %v660_v18  ;;  %6004 = vmatpush3.bf16.msra.mxu0 %v6365_v19 }
 0x203   : > { %6005 = vmatprep.subr.bf16.mxu0 %v6539_v24 }
 0x204   : > { %v663_v25 = vsel %vm629_vm13, %v661_v20, %v662_v21 }
 0x205   : > { %v665_v26 = vsel %vm7921_vm4, %v658_v10, %v663_v25  ;;  %v626_v27 = vpop.permute.xlu0 %625 }
 0x206   : > { %v628_v29 = vrot.slane %v626_v27, 4  ;;  %636 = vst.msk [vmem:[#allocation4 + $0x14] sm:$0xf] %vm617_vm11, %v626_v27  ;;  %v5632_v30 = vcombine.low %v648_v17, %v665_v26  ;;  %v5633_v31 = vcombine.high %v648_v17, %v665_v26 }
 0x208   : > { %v630_v32 = vsel %vm629_vm13, %v627_v28, %v628_v29  ;;  %872 = vmatprep.subr.bf16.mxu1 %v5633_v31 }
 0x209   : > { %v632_v33 = vsel %vm7920_vm5, %v624_v22, %v630_v32  ;;  %v6366_v34 = vld [vmem:[#allocation4 + $0x20] ss:$12 sps:$4 sm:$0xff]   ;;  %873 = vmatpush1.bf16.msra.mxu1 %v5632_v30 }
 0x20a   : > { %v5629_v35 = vcombine.low %v6669_v23, %v632_v33  ;;  %v5630_v36 = vcombine.high %v6669_v23, %v632_v33  ;;  %6006 = vmatpush3.bf16.msra.mxu0 %v6366_v34  ;;  %v941_v23 = vlaneseq }
 0x20b   : > { %6007 = vmatprep.subr.bf16.mxu0 %v6539_v24 }
 0x20c   : > { %874 = vmatprep.subr.bf16.mxu1 %v5630_v36  ;;  %v942_v39 = vand.u32 127, %v941_v23 }
 0x20d   : > { %v6367_v38 = vld [vmem:[#allocation4 + $0x8] ss:$12 sps:$4 sm:$0xff]   ;;  %875 = vmatpush1.bf16.msra.mxu1 %v5629_v35 }
 0x20e   : > { %6008 = vmatpush3.bf16.msra.mxu0 %v6367_v38  ;;  %v943_v40 = vadd.s32 128, %v942_v39  ;;  %v944_v41 = vadd.s32 256, %v942_v39  ;;  %v6742_v42 = vmul.u32.u64.low 3817748708, %v942_v39  ;;  %v6743_v43 = vmul.u32.u64.high 3817748708, %v942_v39, %v6742_v42 }
 0x20f   : > { %6013 = vmatprep.subr.bf16.mxu0 %v6539_v24 }
 0x210   : > { %5645 = vmatmul.mubr.msk.bf16.vlgmr.msra.gmra.mxu1 %vm7919_vm6, %v755_v37  ;;  %v6745_v44 = vmul.u32.u64.low 3817748708, %v943_v40  ;;  %v6746_v45 = vmul.u32.u64.high 3817748708, %v943_v40, %v6745_v44  ;;  %v6748_v46 = vmul.u32.u64.low 3817748708, %v944_v41  ;;  %v6749_v47 = vmul.u32.u64.high 3817748708, %v944_v41, %v6748_v46 }
 0x211   : > { %1343 = vmatprep.mubr.bf16.mxu1 %v6531_v57  ;;  %6010 = vmatmul.mubr.msk.bf16.vlgmr.msra.gmra.mxu0 %vm7919_vm6, %v755_v37  ;;  %v951_v48 = vshrl.u32 %v6743_v43, 4 }
 0x212   : > { %6023 = vmatprep.mubr.msk.bf16.mxu0 %vm7917_vm12, %v6539_v24  ;;  %v962_v49 = vshrl.u32 %v6746_v45, 4  ;;  %v973_v50 = vshrl.u32 %v6749_v47, 4 }
 0x213   : > { %v952_v51 = vmul.u32 18, %v951_v48 }
 0x214   : > { %v963_v52 = vmul.u32 18, %v962_v49  ;;  %v974_v53 = vmul.u32 18, %v973_v50 }
 0x215   : > { %v953_v54 = vsub.s32 %v942_v39, %v952_v51 }
 0x216   : > { %v964_v55 = vsub.s32 %v943_v40, %v963_v52  ;;  %v975_v56 = vsub.s32 %v944_v41, %v974_v53 }
 0x217   : > { %vm978_vm7 = vcmp.ne.s32.totalorder %v953_v54, 0  ;;  %vm981_vm8 = vcmp.lt.s32.totalorder %v953_v54, 0  ;;  %v987_v58 = vadd.s32 18, %v953_v54 }
 0x218   : > { %vm979_vm10 = vcmp.ne.s32.totalorder %v964_v55, 0  ;;  %vm982_vm3 = vcmp.lt.s32.totalorder %v964_v55, 0  ;;  %vm980_vm12 = vcmp.ne.s32.totalorder %v975_v56, 0  ;;  %vm983_vm6 = vcmp.lt.s32.totalorder %v975_v56, 0  ;;  %vm984_vm5 = vmand %vm981_vm8, %vm978_vm7 }
 0x219   : > { %v989_v59 = vadd.s32 18, %v975_v56  ;;  %vm985_vm4 = vmand %vm982_vm3, %vm979_vm10  ;;  %v988_v60 = vadd.s32 18, %v964_v55  ;;  %v990_v61 = vsel %vm984_vm5, %v987_v58, %v953_v54  ;;  %vm1006_vm3 = vcmask 261120  }
 0x21a   : > { %vm986_vm9 = vmand %vm983_vm6, %vm980_vm12  ;;  %vm6754_vm2 = vcmp.lt.s32.totalorder %v990_v61, 16  ;;  %vm1062_vm12 = vcmask 1043608   ;;  %vm1057_vm5 = vcmask 154624   ;;  %vm1066_vm7 = vcmask 412672  }
 0x21b   : > { %v992_v62 = vsel %vm986_vm9, %v989_v59, %v975_v56  ;;  %v991_v63 = vsel %vm985_vm4, %v988_v60, %v964_v55  ;;  %vm1039_vm9 = vcmask 150528   ;;  %vm1063_vm4 = vcmask 1047556  }
 0x21c   : > { %vm6758_vm1 = vcmp.lt.s32.totalorder %v992_v62, 16  ;;  %vm6762_vm0 = vcmp.lt.s32.totalorder %v991_v63, 16  ;;  %1040 = vst.msk [vmem:[#allocation3] sm:$0xf] %vm1039_vm9, %v6531_v57  ;;  %vm1064_vm6 = vmor %vm1063_vm4, %vm1062_vm12  ;;  %vm1068_vm8 = vcmask 568728   ;;  %vm7940_vm10 = vcmask 883712  }
 0x21d   : > { %vm7941_vm9 = vcmask 1031168   ;;  %vm7942_vm12 = vcmask 900096   ;;  %vm7943_vm4 = vcmask 1039360  }
 0x2d0   : > { %v894_v2 = vpop.f32.mrf.mxu1 }
 0x2d1   : > { %v1002_v4 = vsel %vm6754_vm2, %v894_v2, 0.0  ;;  %v935_v5 = vpop.f32.mrf.mxu0 }
 0x2d2   : > { %v896_v6 = vpop.f32.mrf.mxu1  ;;  %v1004_v7 = vsel %vm6758_vm1, %v935_v5, 0.0  ;;  %v1013_v8 = vmul.f32 %v1002_v4, %v1002_v4 }
 0x2d3   : > { %v1003_v9 = vsel %vm6762_vm0, %v896_v6, 0.0  ;;  %v1015_v10 = vmul.f32 %v1004_v7, %v1004_v7  ;;  %v6011_v11 = vpop.f32.mrf.mxu0  ;;  %v1007_v15 = vsel %vm1006_vm3, %v1004_v7, 0.0 }
 0x2d4   : > { %v1005_v12 = vadd.f32 %v1003_v9, %v1002_v4  ;;  %v1014_v13 = vmul.f32 %v1003_v9, %v1003_v9  ;;  %v898_v14 = vpop.f32.mrf.mxu1 }
 0x2d5   : > { %v938_v16 = vpop.f32.mrf.mxu0  ;;  %v1017_v20 = vsel %vm1006_vm3, %v1015_v10, 0.0 }
 0x2d6   : > { %v899_v17 = vpop.f32.mrf.mxu1  ;;  %v1008_v18 = vadd.f32 %v1007_v15, %v1005_v12  ;;  %v1016_v19 = vadd.f32 %v1014_v13, %v1013_v8 }
 0x2d7   : > { %v6012_v21 = vpop.f32.mrf.mxu0 }
 0x2d8   : > { %1009 = vadd.xlane.f32.xlu1 %v1008_v18  ;;  %v1018_v22 = vadd.f32 %v1017_v20, %v1016_v19 }
 0x2da   : > { %1019 = vadd.xlane.f32.xlu0 %v1018_v22 }
 0x361   : > { %v1010_v25 = vpop.xlane.xlu1 %1009 }
 0x362   : > { %v1012_v26 = vmul.f32 0.00390625, %v1010_v25 }
 0x363   : > { %v1020_v27 = vpop.xlane.xlu0 %1019 }
 0x364   : > { %v1021_v28 = vmul.f32 0.00390625, %v1020_v27  ;;  %v1022_v29 = vmul.f32 %v1012_v26, %v1012_v26  ;;  %v1027_v33 = vsub.f32 %v935_v5, %v1012_v26  ;;  %v1025_v34 = vsub.f32 %v894_v2, %v1012_v26 }
 0x365   : > { %v1026_v35 = vsub.f32 %v896_v6, %v1012_v26 }
 0x366   : > { %v1023_v30 = vsub.f32 %v1021_v28, %v1022_v29 }
 0x368   : > { %v1024_v31 = vmax.f32 %v1023_v30, 0.0 }
 0x36a   : > { %v1028_v32 = vadd.f32 1e-05, %v1024_v31 }
 0x36c   : > { %6507 = vrsqrt.f32 %v1028_v32 }
 0x379   : > { %v6508_v36 = vpop.eup %6507 }
 0x37a   : > { %v1032_v37 = vmul.f32 %v6508_v36, %v1027_v33  ;;  %v1030_v38 = vmul.f32 %v6508_v36, %v1025_v34  ;;  %v1031_v39 = vmul.f32 %v6508_v36, %v1026_v35 }
 0x37c   : > { %v1035_v40 = vmax.f32 %v1032_v37, 0.0  ;;  %v1033_v41 = vmax.f32 %v1030_v38, 0.0  ;;  %v1034_v42 = vmax.f32 %v1031_v39, 0.0 }
 0x37e   : > { %v1038_v43 = vsel %vm6758_vm1, %v1035_v40, 0.0  ;;  %v1036_v44 = vsel %vm6754_vm2, %v1033_v41, 0.0  ;;  %v1037_v45 = vsel %vm6762_vm0, %v1034_v42, 0.0 }
 0x37f   : > { %v5863_v46 = vpack.c.bf16 %v1038_v43, %v1038_v43  ;;  %v5862_v47 = vpack.c.bf16 %v1037_v45, %v1036_v44 }
 0x381   : > { %1054 = vrot.lane.b32.xlu1 %v5863_v46, %s6546_s26  ;;  %1052 = vrot.lane.b32.xlu0 %v5862_v47, %s6546_s26  ;;  %s6550_s26 = smov 56  }
 0x3f3   : > { %v1053_v48 = vpop.permute.xlu0 %1052  ;;  %v1055_v50 = vpop.permute.xlu1 %1054 }
 0x3f4   : > { %v1056_v49 = vrot.slane %v1053_v48, 4 }
 0x3f6   : > { %v1058_v51 = vsel %vm1057_vm5, %v1056_v49, %v1053_v48  ;;  %v1059_v52 = vsel %vm1057_vm5, %v1056_v49, %v1055_v50  ;;  %vm7944_vm5 = vcmask 588800  }
 0x3f7   : > { %1065 = vst.msk [vmem:[#allocation3] sm:$0xff] %vm1064_vm6, %v1058_v51  ;;  %vm7945_vm6 = vmmov 0  }
 0x3f8   : > { %1067 = vst.msk [vmem:[#allocation3 + $0x8] sm:$0xf] %vm1066_vm7, %v1059_v52  ;;  %vm7946_vm7 = vmmov %vm7944_vm5 }
 0x3f9   : > { %1069 = vst.msk [vmem:[#allocation3 + $0x8] sm:$0xf] %vm1068_vm8, %v6531_v57  ;;  %vm3630_vm8 = vcmask 162816  }
 0x3fe   : > { %v6782_v53 = vld [vmem:[#allocation3] sm:$0xff] }
 0x3ff   : > { %1190 = vrot.lane.b32.xlu1 %v6782_v53, %s6525_s13 }
 0x400   : > { %v1187_v54 = vld [vmem:[#allocation3 + $0x8] sm:$0xf] }
 0x401   : > { %1192 = vrot.lane.b32.xlu0 %v1187_v54, %s6525_s13  ;;  %v1155_v55 = vld [vmem:[#allocation3 + $0x8] sm:$0xf] }
 0x402   : > { %v1171_v56 = vld [vmem:[#allocation3 + $0x8] sm:$0xf] }
 0x403   : > { %1158 = vrot.lane.b32.xlu1 %v6782_v53, %s6540_s28  ;;  %v1123_v58 = vld [vmem:[#allocation3 + $0x8] sm:$0xf] }
 0x404   : > { %v1139_v59 = vld [vmem:[#allocation3 + $0x8] sm:$0xf] }
 0x405   : > { %1160 = vrot.lane.b32.xlu0 %v1155_v55, %s6540_s28  ;;  %v1071_v60 = vld [vmem:[#allocation3 + $0x8] sm:$0xf] }
 0x406   : > { %1073 = vst.msk [vmem:[#allocation5 + $0x8] sm:$0xf] %vm617_vm11, %v1071_v60  ;;  %v1091_v61 = vld [vmem:[#allocation3 + $0x8] sm:$0xf] }
 0x407   : > { %1174 = vrot.lane.b32.xlu1 %v6782_v53, %s6541_s29  ;;  %v1107_v62 = vld [vmem:[#allocation3 + $0x8] sm:$0xf] }
 0x408   : > { %v1075_v63 = vld [vmem:[#allocation3 + $0x8] sm:$0xf] }
 0x409   : > { %1176 = vrot.lane.b32.xlu0 %v1171_v56, %s6541_s29  ;;  %s6551_s29 = smov 38  }
 0x40b   : > { %1126 = vrot.lane.b32.xlu1 %v6782_v53, %s6542_s30 }
 0x40d   : > { %1128 = vrot.lane.b32.xlu0 %v1123_v58, %s6542_s30  ;;  %s6553_s30 = smov 4  }
 0x40f   : > { %1142 = vrot.lane.b32.xlu1 %v6782_v53, %s6528_s16 }
 0x411   : > { %1144 = vrot.lane.b32.xlu0 %v1139_v59, %s6528_s16 }
 0x413   : > { %1094 = vrot.lane.b32.xlu1 %v6782_v53, %s7926_s14 }
 0x415   : > { %1096 = vrot.lane.b32.xlu0 %v1091_v61, %s7926_s14 }
 0x417   : > { %1110 = vrot.lane.b32.xlu1 %v6782_v53, %s6543_s8 }
 0x419   : > { %1112 = vrot.lane.b32.xlu0 %v1107_v62, %s6543_s8 }
 0x41b   : > { %1078 = vrot.lane.b32.xlu1 %v6782_v53, %s7928_s17 }
 0x41d   : > { %1080 = vrot.lane.b32.xlu0 %v1075_v63, %s7928_s17  ;;  %s6555_s17 = smov 76  }
 0x471   : > { %v1191_v2 = vpop.permute.xlu1 %1190 }
 0x472   : > { %v1194_v4 = vrot.slane %v1191_v2, 4 }
 0x473   : > { %v1193_v5 = vpop.permute.xlu0 %1192 }
 0x474   : > { %v1195_v6 = vrot.slane %v1193_v5, 4  ;;  %1201 = vst.msk [vmem:[#allocation5 + $0x68] sm:$0xf] %vm617_vm11, %v1193_v5 }
 0x475   : > { %v1159_v8 = vpop.permute.xlu1 %1158 }
 0x476   : > { %v1196_v7 = vsel %vm629_vm13, %v1194_v4, %v1195_v6  ;;  %v1162_v10 = vrot.slane %v1159_v8, 4 }
 0x477   : > { %v1197_v9 = vsel %vm749_vm14, %v1191_v2, %v1196_v7  ;;  %v1161_v11 = vpop.permute.xlu0 %1160  ;;  %vm7938_vm14 = vcmask 744448  }
 0x478   : > { %v1163_v12 = vrot.slane %v1161_v11, 4  ;;  %1169 = vst.msk [vmem:[#allocation5 + $0x50] sm:$0xf] %vm617_vm11, %v1161_v11  ;;  %v5663_v13 = vcombine.high %v1197_v9, %v1197_v9  ;;  %v5662_v14 = vcombine.low %v1197_v9, %v1197_v9 }
 0x479   : > { %v1175_v16 = vpop.permute.xlu1 %1174 }
 0x47a   : > { %v1164_v15 = vsel %vm629_vm13, %v1162_v10, %v1163_v12  ;;  %5665 = vmatprep.subr.msk.bf16.mxu1 %vm629_vm13, %v5663_v13  ;;  %v1303_v17 = vsel %vm629_vm13, %v5662_v14, 0  ;;  %v1178_v19 = vrot.slane %v1175_v16, 4  ;;  %v6373_v10 = vld [vmem:[%s7911_s3] sm:$0xff]  }
 0x47b   : > { %v1165_v18 = vsel %vm715_vm15, %v1159_v8, %v1164_v15  ;;  %v1177_v20 = vpop.permute.xlu0 %1176  ;;  %v6368_v21 = vld [vmem:[#allocation5 + $0x68] ss:$0 sps:$4 sm:$0xff]   ;;  %1318 = vmatpush1.bf16.msra.mxu1 %v1303_v17  ;;  %vm7939_vm15 = vcmask 891904  }
 0x47c   : > { %v1179_v22 = vrot.slane %v1177_v20, 4  ;;  %1185 = vst.msk [vmem:[#allocation5 + $0x5c] sm:$0xf] %vm617_vm11, %v1177_v20  ;;  %v1309_v25 = vsel %vm629_vm13, %v6368_v21, 0 }
 0x47d   : > { %v1127_v27 = vpop.permute.xlu1 %1126  ;;  %6014 = vmatpush3.bf16.msra.mxu0 %v1309_v25 }
 0x47e   : > { %v1180_v26 = vsel %vm629_vm13, %v1178_v19, %v1179_v22  ;;  %v1130_v29 = vrot.slane %v1127_v27, 4  ;;  %6015 = vmatprep.subr.bf16.mxu0 %v6539_v24 }
 0x47f   : > { %v1181_v28 = vsel %vm7938_vm14, %v1175_v16, %v1180_v26  ;;  %v1129_v30 = vpop.permute.xlu0 %1128  ;;  %vm1672_vm14 = vcmask 1042400  }
 0x480   : > { %v1131_v31 = vrot.slane %v1129_v30, 4  ;;  %1137 = vst.msk [vmem:[#allocation5 + $0x38] sm:$0xf] %vm617_vm11, %v1129_v30  ;;  %v5659_v32 = vcombine.low %v1165_v18, %v1181_v28  ;;  %v5660_v33 = vcombine.high %v1165_v18, %v1181_v28 }
 0x481   : > { %v1143_v35 = vpop.permute.xlu1 %1142 }
 0x482   : > { %v1132_v34 = vsel %vm629_vm13, %v1130_v29, %v1131_v31  ;;  %1319 = vmatprep.subr.bf16.mxu1 %v5660_v33  ;;  %v1146_v37 = vrot.slane %v1143_v35, 4 }
 0x483   : > { %v1133_v36 = vsel %vm7939_vm15, %v1127_v27, %v1132_v34  ;;  %v1145_v38 = vpop.permute.xlu0 %1144  ;;  %v6369_v39 = vld [vmem:[#allocation5 + $0x50] ss:$12 sps:$4 sm:$0xff]   ;;  %1320 = vmatpush1.bf16.msra.mxu1 %v5659_v32  ;;  %vm1673_vm15 = vcmask 306178  }
 0x484   : > { %v1147_v40 = vrot.slane %v1145_v38, 4  ;;  %1153 = vst.msk [vmem:[#allocation5 + $0x44] sm:$0xf] %vm617_vm11, %v1145_v38  ;;  %6016 = vmatpush3.bf16.msra.mxu0 %v6369_v39 }
 0x485   : > { %v1095_v42 = vpop.permute.xlu1 %1094  ;;  %6017 = vmatprep.subr.bf16.mxu0 %v6539_v24 }
 0x486   : > { %v1148_v41 = vsel %vm629_vm13, %v1146_v37, %v1147_v40  ;;  %v1098_v44 = vrot.slane %v1095_v42, 4 }
 0x487   : > { %v1149_v43 = vsel %vm7940_vm10, %v1143_v35, %v1148_v41  ;;  %v1097_v45 = vpop.permute.xlu0 %1096  ;;  %vm1674_vm10 = vmor %vm1673_vm15, %vm1672_vm14  ;;  %vm2039_vm14 = vcmask 976496  }
 0x488   : > { %v1099_v46 = vrot.slane %v1097_v45, 4  ;;  %1105 = vst.msk [vmem:[#allocation5 + $0x20] sm:$0xf] %vm617_vm11, %v1097_v45  ;;  %v5656_v47 = vcombine.low %v1133_v36, %v1149_v43  ;;  %v5657_v48 = vcombine.high %v1133_v36, %v1149_v43 }
 0x489   : > { %v1111_v50 = vpop.permute.xlu1 %1110 }
 0x48a   : > { %v1100_v49 = vsel %vm629_vm13, %v1098_v44, %v1099_v46  ;;  %1321 = vmatprep.subr.bf16.mxu1 %v5657_v48  ;;  %v1114_v52 = vrot.slane %v1111_v50, 4 }
 0x48b   : > { %v1101_v51 = vsel %vm7941_vm9, %v1095_v42, %v1100_v49  ;;  %v1113_v54 = vpop.permute.xlu0 %1112  ;;  %v6370_v55 = vld [vmem:[#allocation5 + $0x38] ss:$12 sps:$4 sm:$0xff]   ;;  %1322 = vmatpush1.bf16.msra.mxu1 %v5656_v47  ;;  %vm7947_vm9 = vcmask 1014784  }
 0x48c   : > { %v1115_v56 = vrot.slane %v1113_v54, 4  ;;  %1121 = vst.msk [vmem:[#allocation5 + $0x2c] sm:$0xf] %vm617_vm11, %v1113_v54  ;;  %6018 = vmatpush3.bf16.msra.mxu0 %v6370_v55 }
 0x48d   : > { %v1079_v59 = vpop.permute.xlu1 %1078  ;;  %6019 = vmatprep.subr.bf16.mxu0 %v6539_v24 }
 0x48e   : > { %v1116_v58 = vsel %vm629_vm13, %v1114_v52, %v1115_v56  ;;  %v1082_v61 = vrot.slane %v1079_v59, 4 }
 0x48f   : > { %v1117_v60 = vsel %vm7942_vm12, %v1111_v50, %v1116_v58  ;;  %v1081_v62 = vpop.permute.xlu0 %1080  ;;  %vm1746_vm12 = vcmask 648496  }
 0x490   : > { %v1083_v63 = vrot.slane %v1081_v62, 4  ;;  %1089 = vst.msk [vmem:[#allocation5 + $0x14] sm:$0xf] %vm617_vm11, %v1081_v62  ;;  %v5653_v2 = vcombine.low %v1101_v51, %v1117_v60  ;;  %v5654_v4 = vcombine.high %v1101_v51, %v1117_v60 }
 0x492   : > { %v1084_v5 = vsel %vm629_vm13, %v1082_v61, %v1083_v63  ;;  %1323 = vmatprep.subr.bf16.mxu1 %v5654_v4 }
 0x493   : > { %v1085_v6 = vsel %vm7943_vm4, %v1079_v59, %v1084_v5  ;;  %v6371_v7 = vld [vmem:[#allocation5 + $0x20] ss:$12 sps:$4 sm:$0xff]   ;;  %1324 = vmatpush1.bf16.msra.mxu1 %v5653_v2  ;;  %vm1893_vm4 = vcmask 1042384  }
 0x494   : > { %v5650_v8 = vcombine.low %v6782_v53, %v1085_v6  ;;  %v5651_v9 = vcombine.high %v6782_v53, %v1085_v6  ;;  %6020 = vmatpush3.bf16.msra.mxu0 %v6371_v7 }
 0x495   : > { %6021 = vmatprep.subr.bf16.mxu0 %v6539_v24 }
 0x496   : > { %1325 = vmatprep.subr.bf16.mxu1 %v5651_v9 }
 0x497   : > { %v6372_v11 = vld [vmem:[#allocation5 + $0x8] ss:$12 sps:$4 sm:$0xff]   ;;  %1326 = vmatpush1.bf16.msra.mxu1 %v5650_v8 }
 0x498   : > { %6043 = vmatprep.subr.bf16.mxu1 %v6539_v24  ;;  %6022 = vmatpush3.bf16.msra.mxu0 %v6372_v11 }
 0x499   : > { %6027 = vmatprep.subr.bf16.mxu0 %v6539_v24 }
 0x49a   : > { %5666 = vmatmul.mubr.msk.bf16.vlgmr.msra.gmra.mxu1 %vm7944_vm5, %v6373_v10  ;;  %vm1894_vm5 = vcmask 289794  }
 0x49b   : > { %6047 = vmatprep.mubr.msk.bf16.mxu1 %vm7945_vm6, %v6539_v24  ;;  %6024 = vmatmul.mubr.msk.bf16.vlgmr.msra.gmra.mxu0 %vm7946_vm7, %v6373_v10  ;;  %vm1818_vm7 = vcmask 992896  }
 0x49c   : > { %6031 = vmatprep.mubr.msk.bf16.mxu0 %vm7945_vm6, %v6539_v24 }
 0x55a   : > { %v6853_v53 = vpop.f32.mrf.mxu1 }
 0x55b   : > { %v1395_v12 = vsel %vm6754_vm2, %v6853_v53, 0.0  ;;  %v6858_v13 = vpop.f32.mrf.mxu0 }
 0x55c   : > { %v6860_v14 = vpop.f32.mrf.mxu1  ;;  %v1397_v15 = vsel %vm6758_vm1, %v6858_v13, 0.0  ;;  %v1411_v16 = vmul.f32 %v1395_v12, %v1395_v12 }
 0x55d   : > { %v1396_v17 = vsel %vm6762_vm0, %v6860_v14, 0.0  ;;  %v1413_v18 = vmul.f32 %v1397_v15, %v1397_v15  ;;  %v6025_v19 = vpop.f32.mrf.mxu0  ;;  %v1402_v25 = vsel %vm1006_vm3, %v1397_v15, 0.0 }
 0x55e   : > { %v1401_v20 = vadd.f32 %v1396_v17, %v1395_v12  ;;  %v1412_v21 = vmul.f32 %v1396_v17, %v1396_v17  ;;  %v6868_v22 = vpop.f32.mrf.mxu1 }
 0x55f   : > { %v1398_v26 = vsel %vm6754_vm2, %v6868_v22, 0.0  ;;  %v6874_v27 = vpop.f32.mrf.mxu0  ;;  %v1418_v31 = vsel %vm1006_vm3, %v1413_v18, 0.0 }
 0x560   : > { %v6876_v28 = vpop.f32.mrf.mxu1  ;;  %v1403_v29 = vadd.f32 %v1402_v25, %v1401_v20  ;;  %v1417_v30 = vadd.f32 %v1412_v21, %v1411_v16  ;;  %v1400_v32 = vsel %vm6758_vm1, %v6874_v27, 0.0  ;;  %v1414_v33 = vmul.f32 %v1398_v26, %v1398_v26  ;;  %v6898_v21 = vld [vmem:[%s7912_s4 + $0x8] sm:$0xff]  }
 0x561   : > { %v1399_v34 = vsel %vm6762_vm0, %v6876_v28, 0.0  ;;  %v1416_v35 = vmul.f32 %v1400_v32, %v1400_v32  ;;  %v6026_v36 = vpop.f32.mrf.mxu0  ;;  %v1407_v40 = vsel %vm1006_vm3, %v1400_v32, 0.0  ;;  %6028 = vmatpush3.bf16.msra.mxu0 %v6898_v21  ;;  %6044 = vmatpush3.bf16.msra.mxu1 %v6898_v21 }
 0x562   : > { %v1406_v37 = vadd.f32 %v1399_v34, %v1398_v26  ;;  %v1415_v38 = vmul.f32 %v1399_v34, %v1399_v34  ;;  %1404 = vadd.xlane.f32.xlu1 %v1403_v29  ;;  %v1419_v39 = vadd.f32 %v1418_v31, %v1417_v30  ;;  %6029 = vmatprep.subr.bf16.mxu0 %v6539_v24 }
 0x563   : > { %v1423_v42 = vsel %vm1006_vm3, %v1416_v35, 0.0  ;;  %6045 = vmatprep.subr.bf16.mxu1 %v6539_v24 }
 0x564   : > { %1420 = vadd.xlane.f32.xlu0 %v1419_v39  ;;  %v1422_v41 = vadd.f32 %v1415_v38, %v1414_v33  ;;  %v1408_v44 = vadd.f32 %v1407_v40, %v1406_v37  ;;  %v6907_v33 = vld [vmem:[%s7912_s4] sm:$0xff]  }
 0x565   : > { %6030 = vmatpush3.bf16.msra.mxu0 %v6907_v33  ;;  %6046 = vmatpush3.bf16.msra.mxu1 %v6907_v33 }
 0x566   : > { %v1424_v43 = vadd.f32 %v1423_v42, %v1422_v41  ;;  %6035 = vmatprep.subr.bf16.mxu0 %v6539_v24  ;;  %6059 = vmatprep.subr.bf16.mxu1 %v6539_v24 }
 0x568   : > { %1425 = vadd.xlane.f32.xlu1 %v1424_v43  ;;  %1409 = vadd.xlane.f32.xlu0 %v1408_v44 }
 0x5eb   : > { %v1405_v45 = vpop.xlane.xlu1 %1404 }
 0x5ec   : > { %v1428_v46 = vrot.slane %v1405_v45, 4 }
 0x5ed   : > { %v1421_v47 = vpop.xlane.xlu0 %1420 }
 0x5ee   : > { %v1437_v48 = vrot.slane %v1421_v47, 4  ;;  %v1430_v49 = vadd.f32 %v1428_v46, %v1405_v45 }
 0x5f0   : > { %v1439_v50 = vadd.f32 %v1437_v48, %v1421_v47 }
 0x5f1   : > { %v1426_v51 = vpop.xlane.xlu1 %1425  ;;  %v1410_v52 = vpop.xlane.xlu0 %1409 }
 0x5f2   : > { %v1440_v54 = vadd.f32 %v1439_v50, %v1426_v51  ;;  %v1442_v55 = vrot.slane %v1426_v51, 4  ;;  %v1431_v56 = vadd.f32 %v1430_v49, %v1410_v52  ;;  %v1433_v58 = vrot.slane %v1410_v52, 4 }
 0x5f4   : > { %v1444_v59 = vadd.f32 %v1442_v55, %v1440_v54  ;;  %v1435_v60 = vadd.f32 %v1433_v58, %v1431_v56 }
 0x5f6   : > { %v1446_v61 = vmul.f32 0.0009765625, %v1435_v60  ;;  %v1447_v62 = vmul.f32 0.0009765625, %v1444_v59 }
 0x5f8   : > { %v1448_v63 = vmul.f32 %v1446_v61, %v1446_v61  ;;  %v1454_v2 = vrot.slane %v1446_v61, 4 }
 0x5fa   : > { %v1449_v4 = vsub.f32 %v1447_v62, %v1448_v63  ;;  %v1456_v5 = vsel %vm629_vm13, %v1446_v61, %v1454_v2 }
 0x5fb   : > { %1463 = vperm.xlu0 %6361, %v1456_v5  }
 0x5fc   : > { %v1450_v6 = vmax.f32 %v1449_v4, 0.0 }
 0x5fe   : > { %v1451_v7 = vadd.f32 1e-05, %v1450_v6 }
 0x600   : > { %6509 = vrsqrt.f32 %v1451_v7 }
 0x60d   : > { %v6510_v8 = vpop.eup %6509 }
 0x60e   : > { %v1458_v9 = vrot.slane %v6510_v8, 4 }
 0x610   : > { %v1460_v10 = vsel %vm629_vm13, %v6510_v8, %v1458_v9 }
 0x611   : > { %1474 = vperm.xlu1 %6362, %v1460_v10  }
 0x676   : > { %v1464_v11 = vpop.permute.xlu0 %1463 }
 0x677   : > { %v1466_v12 = vsub.f32 %v6853_v53, %v1464_v11  ;;  %v1467_v15 = vsub.f32 %v6860_v14, %v1464_v11  ;;  %v1468_v16 = vsub.f32 %v6858_v13, %v1464_v11  ;;  %v1469_v17 = vsub.f32 %v6868_v22, %v1464_v11 }
 0x678   : > { %v1470_v18 = vsub.f32 %v6876_v28, %v1464_v11  ;;  %v1471_v19 = vsub.f32 %v6874_v27, %v1464_v11 }
 0x68c   : > { %v1475_v20 = vpop.permute.xlu1 %1474 }
 0x68d   : > { %v1477_v25 = vmul.f32 %v1475_v20, %v1466_v12  ;;  %v1478_v26 = vmul.f32 %v1475_v20, %v1467_v15  ;;  %v1479_v29 = vmul.f32 %v1475_v20, %v1468_v16  ;;  %v1480_v53 = vmul.f32 %v1475_v20, %v1469_v17 }
 0x68e   : > { %v1481_v30 = vmul.f32 %v1475_v20, %v1470_v18  ;;  %v1482_v14 = vmul.f32 %v1475_v20, %v1471_v19 }
 0x68f   : > { %v1483_v13 = vmax.f32 %v1477_v25, 0.0  ;;  %v1484_v22 = vmax.f32 %v1478_v26, 0.0  ;;  %v1485_v28 = vmax.f32 %v1479_v29, 0.0  ;;  %v1486_v27 = vmax.f32 %v1480_v53, 0.0 }
 0x690   : > { %v1487_v31 = vmax.f32 %v1481_v30, 0.0  ;;  %v1488_v32 = vmax.f32 %v1482_v14, 0.0 }
 0x691   : > { %v1489_v34 = vsel %vm6754_vm2, %v1483_v13, 0.0  ;;  %v1490_v35 = vsel %vm6762_vm0, %v1484_v22, 0.0  ;;  %v1491_v36 = vsel %vm6758_vm1, %v1485_v28, 0.0  ;;  %v1492_v37 = vsel %vm6754_vm2, %v1486_v27, 0.0 }
 0x692   : > { %v1493_v38 = vsel %vm6762_vm0, %v1487_v31, 0.0  ;;  %v1494_v39 = vsel %vm6758_vm1, %v1488_v32, 0.0  ;;  %v5864_v40 = vpack.c.bf16 %v1490_v35, %v1489_v34  ;;  %v5865_v41 = vpack.c.bf16 %v1491_v36, %v1491_v36 }
 0x693   : > { %v5866_v42 = vpack.c.bf16 %v1493_v38, %v1492_v37  ;;  %v5867_v43 = vpack.c.bf16 %v1494_v39, %v1494_v39  ;;  %vm2571_vm0 = vcmask 15360   ;;  %vm2584_vm1 = vcmask 146432  }
 0x694   : > { %1515 = vst [vmem:[#allocation6] sm:$0xff] %v5864_v40  ;;  %1516 = vst.msk [vmem:[#allocation6 + $0x8] sm:$0xf] %vm617_vm11, %v5865_v41  ;;  %vm3617_vm2 = vcmask 31744  }
 0x695   : > { %1517 = vst [vmem:[#allocation6 + $0xc] sm:$0xff] %v5866_v42  ;;  %1518 = vst.msk [vmem:[#allocation6 + $0x14] sm:$0xf] %vm617_vm11, %v5867_v43  ;;  %vm1533_vm11 = vcmask 130048  }
 0x69b   : > { %v6375_v0 = vld [vmem:[#allocation6] ss:$0 sps:$4 sm:$0xcc]   ;;  %v6386_v4 = vld [vmem:[#allocation6 + $0x4] ss:$0 sps:$4 sm:$0x33]  }
 0x69c   : > { %v6374_v1 = vld [vmem:[#allocation6 + $0xc] ss:$0 sps:$4 sm:$0xcc]   ;;  %v1530_v3 = vrot.slane %v6375_v0, 2  ;;  %v6940_v62 = vld [vmem:[#allocation6] sm:$0x33] }
 0x69d   : > { %v1907_v44 = vrot.slane %v6374_v1, 2  ;;  %v6376_v45 = vld [vmem:[#allocation6] ss:$0 sps:$4 sm:$0xcc]   ;;  %v6934_v58 = vld [vmem:[#allocation6 + $0xc] sm:$0x33]  ;;  %v5715_v2 = vcombine.high %v6940_v62, %v6940_v62  ;;  %v5714_v42 = vcombine.low %v6940_v62, %v6940_v62 }
 0x69e   : > { %1531 = vrot.lane.b32.xlu1 %v1530_v3, %s6527_s15  ;;  %v6377_v46 = vld [vmem:[#allocation6 + $0xc] ss:$0 sps:$4 sm:$0x33]   ;;  %v1830_v48 = vrot.slane %v6376_v45, 2  ;;  %v5720_v61 = vcombine.high %v6934_v58, %v6934_v58  ;;  %v2646_v53 = vld [vmem:[#allocation6 + $0xc] sm:$0xcc]  ;;  %v5719_v39 = vcombine.low %v6934_v58, %v6934_v58 }
 0x69f   : > { %1908 = vrot.lane.b32.xlu0 %v1907_v44, %s6528_s16  ;;  %v6379_v47 = vld [vmem:[#allocation6 + $0xc] ss:$0 sps:$4 sm:$0xcc]   ;;  %v6380_v52 = vld [vmem:[#allocation6] ss:$0 sps:$4 sm:$0xcc]   ;;  %v5722_v13 = vcombine.high %v2646_v53, %v2646_v53  ;;  %v5721_v3 = vcombine.low %v2646_v53, %v2646_v53 }
 0x6a0   : > { %v6378_v49 = vld [vmem:[#allocation6 + $0xc] ss:$0 sps:$4 sm:$0xcc]   ;;  %v1610_v50 = vrot.slane %v6379_v47, 2  ;;  %v1979_v56 = vrot.slane %v6380_v52, 2 }
 0x6a1   : > { %v2051_v51 = vrot.slane %v6378_v49, 2  ;;  %v6381_v54 = vld [vmem:[#allocation6] ss:$0 sps:$4 sm:$0x33]   ;;  %v2561_v22 = vld [vmem:[#allocation6] sm:$0xcc] }
 0x6a2   : > { %1753 = vrot.lane.b32.xlu1 %v6377_v46, %s6543_s8  ;;  %v6383_v55 = vld [vmem:[#allocation6 + $0xc] ss:$0 sps:$4 sm:$0xcc]   ;;  %v6385_v60 = vld [vmem:[#allocation6] ss:$0 sps:$4 sm:$0xcc]   ;;  %v5717_v31 = vcombine.high %v2561_v22, %v2561_v22  ;;  %v5716_v46 = vcombine.low %v2561_v22, %v2561_v22 }
 0x6a3   : > { %1831 = vrot.lane.b32.xlu0 %v1830_v48, %s6528_s16  ;;  %v1758_v59 = vrot.slane %v6383_v55, 2  ;;  %v1686_v63 = vrot.slane %v6385_v60, 2  ;;  %v6387_v5 = vld [vmem:[#allocation6 + $0xc] ss:$0 sps:$4 sm:$0x33]   ;;  %v2663_v27 = vrot.slane %v5722_v13, 2 }
 0x6a4   : > { %v6388_v6 = vld [vmem:[#allocation6 + $0xc] ss:$0 sps:$4 sm:$0xcc]   ;;  %v6389_v7 = vld [vmem:[#allocation6] ss:$0 sps:$4 sm:$0x33]  }
 0x6a5   : > { %v2200_v8 = vrot.slane %v6388_v6, 2  ;;  %v6390_v9 = vld [vmem:[#allocation6] ss:$0 sps:$4 sm:$0xcc]   ;;  %v2579_v34 = vrot.slane %v5717_v31, 2  ;;  %v2662_v47 = vrot.slane %v5721_v3, 2 }
 0x6a6   : > { %1611 = vrot.lane.b32.xlu1 %v1610_v50, %s6527_s15  ;;  %s6547_s15 = smov 2   ;;  %v6391_v10 = vld [vmem:[#allocation6 + $0xc] ss:$0 sps:$4 sm:$0x33]   ;;  %v2128_v11 = vrot.slane %v6390_v9, 2  ;;  %v2578_v50 = vrot.slane %v5716_v46, 2 }
 0x6a7   : > { %2052 = vrot.lane.b32.xlu0 %v2051_v51, %s6525_s13  ;;  %v6392_v12 = vld [vmem:[#allocation6 + $0xc] ss:$0 sps:$4 sm:$0xcc]   ;;  %v6393_v15 = vld [vmem:[#allocation6] ss:$0 sps:$4 sm:$0x33]  }
 0x6a8   : > { %v2349_v16 = vrot.slane %v6392_v12, 2  ;;  %v6394_v17 = vld [vmem:[#allocation6] ss:$0 sps:$4 sm:$0xcc]   ;;  %v6964_v35 = vld [vmem:[#allocation6 + $0x10] sm:$0x33] }
 0x6a9   : > { %v6395_v18 = vld [vmem:[#allocation6 + $0xc] ss:$0 sps:$4 sm:$0x33]   ;;  %v2272_v19 = vrot.slane %v6394_v17, 2  ;;  %v5766_v37 = vcombine.high %v6964_v35, %v6964_v35  ;;  %v6970_v38 = vld [vmem:[#allocation6 + $0x4] sm:$0x33] }
 0x6aa   : > { %1681 = vrot.lane.b32.xlu1 %v6381_v54, %s6543_s8  ;;  %v6396_v20 = vld [vmem:[#allocation6 + $0xc] ss:$0 sps:$4 sm:$0xcc]   ;;  %v6397_v25 = vld [vmem:[#allocation6] ss:$0 sps:$4 sm:$0x33]   ;;  %v5761_v40 = vcombine.high %v6970_v38, %v6970_v38 }
 0x6ab   : > { %1980 = vrot.lane.b32.xlu0 %v1979_v56, %s6525_s13  ;;  %s6548_s13 = smov 112   ;;  %v2493_v26 = vrot.slane %v6396_v20, 2  ;;  %v6398_v29 = vld [vmem:[#allocation6] ss:$0 sps:$4 sm:$0xcc]  }
 0x6ac   : > { %v6399_v30 = vld [vmem:[#allocation6 + $0xc] ss:$0 sps:$4 sm:$0x33]   ;;  %v2421_v14 = vrot.slane %v6398_v29, 2  ;;  %v3697_v9 = vld [vmem:[#allocation6 + $0x10] sm:$0xcc] }
 0x6ad   : > { %v6401_v28 = vld [vmem:[#allocation6] ss:$0 sps:$4 sm:$0x33]   ;;  %v6404_v32 = vld [vmem:[#allocation6 + $0xc] ss:$0 sps:$4 sm:$0x33]   ;;  %v5768_v12 = vcombine.high %v3697_v9, %v3697_v9 }
 0x6ae   : > { %1759 = vrot.lane.b32.xlu1 %v1758_v59, %s7926_s14  ;;  %v6407_v36 = vld [vmem:[#allocation6] ss:$0 sps:$4 sm:$0x33]   ;;  %v6411_v41 = vld [vmem:[#allocation6 + $0x10] ss:$0 sps:$4 sm:$0xcc]  }
 0x6af   : > { %2654 = vrot.lane.b32.xlu0 %v5720_v61, %s6547_s15  ;;  %v2955_v43 = vrot.slane %v6411_v41, 2  ;;  %v6413_v0 = vld [vmem:[#allocation6 + $0x4] ss:$0 sps:$4 sm:$0xcc]   ;;  %v3714_v17 = vrot.slane %v5768_v12, 2  ;;  %v5760_v41 = vcombine.low %v6970_v38, %v6970_v38 }
 0x6b0   : > { %v6414_v1 = vld [vmem:[#allocation6 + $0x10] ss:$0 sps:$4 sm:$0x33]   ;;  %v2883_v44 = vrot.slane %v6413_v0, 2  ;;  %v1525_v29 = vld [vmem:[#allocation6] sm:$0x3] }
 0x6b1   : > { %v6415_v45 = vld [vmem:[#allocation6 + $0x10] ss:$0 sps:$4 sm:$0xcc]   ;;  %v6417_v49 = vld [vmem:[#allocation6 + $0x4] ss:$0 sps:$4 sm:$0xcc]  }
 0x6b2   : > { %1687 = vrot.lane.b32.xlu1 %v1686_v63, %s7926_s14  ;;  %v3104_v48 = vrot.slane %v6415_v45, 2  ;;  %v3032_v51 = vrot.slane %v6417_v49, 2  ;;  %v6418_v52 = vld [vmem:[#allocation6 + $0x10] ss:$0 sps:$4 sm:$0xcc]   ;;  %s6554_s14 = smov 94  }
 0x6b3   : > { %2569 = vrot.lane.b32.xlu0 %v5715_v2, %s6547_s15  ;;  %v6419_v54 = vld [vmem:[#allocation6 + $0x10] ss:$0 sps:$4 sm:$0x33]   ;;  %v3252_v55 = vrot.slane %v6418_v52, 2 }
 0x6b4   : > { %v6420_v56 = vld [vmem:[#allocation6 + $0x4] ss:$0 sps:$4 sm:$0xcc]   ;;  %v6422_v60 = vld [vmem:[#allocation6 + $0x10] ss:$0 sps:$4 sm:$0xcc]  }
 0x6b5   : > { %v6421_v58 = vld [vmem:[#allocation6 + $0x4] ss:$0 sps:$4 sm:$0x33]   ;;  %v3176_v59 = vrot.slane %v6420_v56, 2  ;;  %v3396_v62 = vrot.slane %v6422_v60, 2 }
 0x6b6   : > { %1902 = vrot.lane.b32.xlu1 %v6387_v5, %s6540_s28  ;;  %v6423_v61 = vld [vmem:[#allocation6 + $0x10] ss:$0 sps:$4 sm:$0x33]   ;;  %v6424_v63 = vld [vmem:[#allocation6 + $0x4] ss:$0 sps:$4 sm:$0xcc]  }
 0x6b7   : > { %2733 = vrot.lane.b32.xlu0 %v6386_v4, %s6548_s13  ;;  %v6425_v2 = vld [vmem:[#allocation6 + $0x4] ss:$0 sps:$4 sm:$0x33]   ;;  %v3324_v4 = vrot.slane %v6424_v63, 2 }
 0x6b8   : > { %v6426_v5 = vld [vmem:[#allocation6 + $0x10] ss:$0 sps:$4 sm:$0xcc]   ;;  %v6438_v22 = vld [vmem:[#allocation6 + $0x8] ss:$0 sps:$4 sm:$0xcc]  }
 0x6b9   : > { %v6427_v6 = vld [vmem:[#allocation6 + $0x10] ss:$0 sps:$4 sm:$0x33]  }
 0x6ba   : > { %1825 = vrot.lane.b32.xlu1 %v6389_v7, %s6540_s28  ;;  %v3544_v7 = vrot.slane %v6426_v5, 2  ;;  %v6437_v53 = vld [vmem:[#allocation6 + $0x10] ss:$0 sps:$4 sm:$0x33]  }
 0x6bb   : > { %2201 = vrot.lane.b32.xlu0 %v2200_v8, %s6523_s11  ;;  %v6428_v8 = vld [vmem:[#allocation6 + $0x4] ss:$0 sps:$4 sm:$0xcc]  }
 0x6be   : > { %2046 = vrot.lane.b32.xlu1 %v6391_v10, %s6549_s27  ;;  %v6429_v10 = vld [vmem:[#allocation6 + $0x4] ss:$0 sps:$4 sm:$0x33]  }
 0x6bf   : > { %2129 = vrot.lane.b32.xlu0 %v2128_v11, %s6523_s11  ;;  %v3472_v11 = vrot.slane %v6428_v8, 2 }
 0x6c2   : > { %1974 = vrot.lane.b32.xlu1 %v6393_v15, %s6549_s27  ;;  %v6996_v15 = vld [vmem:[#allocation6 + $0x4] sm:$0xcc] }
 0x6c3   : > { %2350 = vrot.lane.b32.xlu0 %v2349_v16, %s6521_s9  ;;  %v6431_v16 = vld [vmem:[#allocation6 + $0x10] ss:$0 sps:$4 sm:$0x33]   ;;  %v5762_v3 = vcombine.low %v6996_v15, %v6996_v15 }
 0x6c5   : > { %v3624_v46 = vrot.slane %v5762_v3, 2 }
 0x6c6   : > { %2195 = vrot.lane.b32.xlu1 %v6395_v18, %s6550_s26  ;;  %v5763_v18 = vcombine.high %v6996_v15, %v6996_v15 }
 0x6c7   : > { %2273 = vrot.lane.b32.xlu0 %v2272_v19, %s6521_s9  ;;  %s6552_s9 = smov 20   ;;  %v6434_v19 = vld [vmem:[#allocation6 + $0x4] ss:$0 sps:$4 sm:$0x33]  }
 0x6c8   : > { %v3625_v20 = vrot.slane %v5763_v18, 2 }
 0x6ca   : > { %2123 = vrot.lane.b32.xlu1 %v6397_v25, %s6550_s26  ;;  %v6436_v25 = vld [vmem:[#allocation6 + $0x14] ss:$0 sps:$4 sm:$0xcc]  }
 0x6cb   : > { %2494 = vrot.lane.b32.xlu0 %v2493_v26, %s6524_s12  ;;  %v3861_v13 = vrot.slane %v6436_v25, 2 }
 0x6ce   : > { %2344 = vrot.lane.b32.xlu1 %v6399_v30, %s6551_s29 }
 0x6cf   : > { %2422 = vrot.lane.b32.xlu0 %v2421_v14, %s6524_s12 }
 0x6d2   : > { %2267 = vrot.lane.b32.xlu1 %v6401_v28, %s6551_s29 }
 0x6d3   : > { %2666 = vrot.lane.b32.xlu0 %v2663_v27, %s6522_s10  ;;  %v6439_v27 = vld [vmem:[#allocation6 + $0x4] ss:$0 sps:$4 sm:$0x33]  }
 0x6d6   : > { %2488 = vrot.lane.b32.xlu1 %v6404_v32, %s6552_s9  ;;  %v3789_v32 = vrot.slane %v6438_v22, 2 }
 0x6d7   : > { %2582 = vrot.lane.b32.xlu0 %v2579_v34, %s6522_s10  ;;  %v5765_v34 = vcombine.low %v6964_v35, %v6964_v35 }
 0x6da   : > { %2416 = vrot.lane.b32.xlu1 %v6407_v36, %s6552_s9  ;;  %v1605_v36 = vld [vmem:[#allocation6 + $0xc] sm:$0x3] }
 0x6db   : > { %3705 = vrot.lane.b32.xlu0 %v5766_v37, %s6553_s30 }
 0x6de   : > { %2652 = vrot.lane.b32.xlu1 %v5719_v39, %s6547_s15 }
 0x6df   : > { %3615 = vrot.lane.b32.xlu0 %v5761_v40, %s6553_s30 }
 0x6e2   : > { %2567 = vrot.lane.b32.xlu1 %v5714_v42, %s6547_s15  ;;  %v5767_v42 = vcombine.low %v3697_v9, %v3697_v9 }
 0x6e3   : > { %2956 = vrot.lane.b32.xlu0 %v2955_v43, %s6543_s8 }
 0x6e6   : > { %2808 = vrot.lane.b32.xlu1 %v6414_v1, %s6548_s13  ;;  %v3713_v1 = vrot.slane %v5767_v42, 2  ;;  %v6442_v42 = vld [vmem:[#allocation6 + $0x4] ss:$0 sps:$4 sm:$0xcc]  }
 0x6e7   : > { %2884 = vrot.lane.b32.xlu0 %v2883_v44, %s6543_s8 }
 0x6ea   : > { %2664 = vrot.lane.b32.xlu1 %v2662_v47, %s6522_s10 }
 0x6eb   : > { %3105 = vrot.lane.b32.xlu0 %v3104_v48, %s6540_s28 }
 0x6ee   : > { %2580 = vrot.lane.b32.xlu1 %v2578_v50, %s6522_s10  ;;  %s6556_s10 = smov 58   ;;  %v6443_v50 = vld [vmem:[#allocation6 + $0x14] ss:$0 sps:$4 sm:$0x33]  }
 0x6ef   : > { %3033 = vrot.lane.b32.xlu0 %v3032_v51, %s6540_s28  ;;  %s7931_s28 = smov 22  }
 0x6f2   : > { %2950 = vrot.lane.b32.xlu1 %v6419_v54, %s6554_s14 }
 0x6f3   : > { %3253 = vrot.lane.b32.xlu0 %v3252_v55, %s6549_s27  ;;  %v6444_v55 = vld [vmem:[#allocation6 + $0x8] ss:$0 sps:$4 sm:$0x33]  }
 0x6f6   : > { %2878 = vrot.lane.b32.xlu1 %v6421_v58, %s6554_s14  ;;  %s7930_s14 = smov 40  }
 0x6f7   : > { %3177 = vrot.lane.b32.xlu0 %v3176_v59, %s6549_s27 }
 0x6fa   : > { %3099 = vrot.lane.b32.xlu1 %v6423_v61, %s6555_s17 }
 0x6fb   : > { %3397 = vrot.lane.b32.xlu0 %v3396_v62, %s6550_s26 }
 0x6fe   : > { %3027 = vrot.lane.b32.xlu1 %v6425_v2, %s6555_s17 }
 0x6ff   : > { %3325 = vrot.lane.b32.xlu0 %v3324_v4, %s6550_s26  ;;  %s6564_s26 = smov 120  }
 0x702   : > { %3247 = vrot.lane.b32.xlu1 %v6427_v6, %s6556_s10 }
 0x703   : > { %3545 = vrot.lane.b32.xlu0 %v3544_v7, %s6551_s29 }
 0x706   : > { %3171 = vrot.lane.b32.xlu1 %v6429_v10, %s6556_s10  ;;  %s6565_s10 = smov 78  }
 0x707   : > { %3473 = vrot.lane.b32.xlu0 %v3472_v11, %s6551_s29 }
 0x70a   : > { %3391 = vrot.lane.b32.xlu1 %v6431_v16, %s7930_s14 }
 0x70b   : > { %3717 = vrot.lane.b32.xlu0 %v3714_v17, %s6552_s9 }
 0x70e   : > { %3319 = vrot.lane.b32.xlu1 %v6434_v19, %s7930_s14  ;;  %s6561_s14 = smov 82  }
 0x70f   : > { %3628 = vrot.lane.b32.xlu0 %v3625_v20, %s6552_s9 }
 0x710   : > { %v1532_v26 = vpop.permute.xlu1 %1531 }
 0x711   : > { %v1909_v30 = vpop.permute.xlu0 %1908  ;;  %v1536_v14 = vsel %vm1533_vm11, %v1525_v29, %v1532_v26 }
 0x712   : > { %3539 = vrot.lane.b32.xlu1 %v6437_v53, %s7931_s28  ;;  %6032 = vmatmul.mubr.msk.bf16.vlgmr.msra.gmra.mxu0 %vm1006_vm3, %v1536_v14 }
 0x713   : > { %3862 = vrot.lane.b32.xlu0 %v3861_v13, %s6547_s15  ;;  %6036 = vmatpush3.bf16.msra.mxu0 %v6898_v21 }
 0x714   : > { %v1754_v28 = vpop.permute.xlu1 %1753  ;;  %6037 = vmatprep.subr.bf16.mxu0 %v6539_v24  ;;  %6039 = vmatprep.mubr.msk.bf16.mxu0 %vm7945_vm6, %v6539_v24 }
 0x715   : > { %v1832_v31 = vpop.permute.xlu0 %1831 }
 0x716   : > { %3467 = vrot.lane.b32.xlu1 %v6439_v27, %s7931_s28  ;;  %s6562_s28 = smov 122  }
 0x717   : > { %3790 = vrot.lane.b32.xlu0 %v3789_v32, %s6547_s15  ;;  %6038 = vmatpush3.bf16.msra.mxu0 %v6907_v33  ;;  %s6559_s15 = smov 114  }
 0x718   : > { %v1612_v37 = vpop.permute.xlu1 %1611  ;;  %6051 = vmatprep.subr.bf16.mxu0 %v6539_v24 }
 0x719   : > { %v2053_v39 = vpop.permute.xlu0 %2052  ;;  %v1615_v40 = vsel %vm1533_vm11, %v1605_v36, %v1612_v37  ;;  %v6445_v37 = vld [vmem:[#allocation6 + $0x10] ss:$0 sps:$4 sm:$0xcc]  }
 0x71a   : > { %3703 = vrot.lane.b32.xlu1 %v5765_v34, %s6553_s30  ;;  %6040 = vmatmul.mubr.msk.bf16.vlgmr.msra.gmra.mxu0 %vm1006_vm3, %v1615_v40 }
 0x71b   : > { %6052 = vmatpush3.bf16.msra.mxu0 %v6898_v21  ;;  %6055 = vmatprep.mubr.msk.bf16.mxu0 %vm7945_vm6, %v6539_v24 }
 0x71c   : > { %v1682_v35 = vpop.permute.xlu1 %1681  ;;  %6053 = vmatprep.subr.bf16.mxu0 %v6539_v24 }
 0x71d   : > { %v1981_v43 = vpop.permute.xlu0 %1980 }
 0x71e   : > { %3613 = vrot.lane.b32.xlu1 %v5760_v41, %s6553_s30 }
 0x71f   : > { %6054 = vmatpush3.bf16.msra.mxu0 %v6907_v33 }
 0x720   : > { %v1760_v0 = vpop.permute.xlu1 %1759  ;;  %6067 = vmatprep.subr.bf16.mxu0 %v6539_v24 }
 0x721   : > { %v7033_v44 = vpop.permute.xlu0 %2654  ;;  %v1763_v38 = vsel %vm1533_vm11, %v1754_v28, %v1760_v0 }
 0x722   : > { %3715 = vrot.lane.b32.xlu1 %v3713_v1, %s6552_s9  ;;  %6056 = vmatmul.mubr.msk.bf16.vlgmr.msra.gmra.mxu0 %vm1006_vm3, %v1763_v38 }
 0x723   : > { %6068 = vmatpush3.bf16.msra.mxu0 %v6898_v21  ;;  %6071 = vmatprep.mubr.msk.bf16.mxu0 %vm7945_vm6, %v6539_v24 }
 0x724   : > { %v1688_v45 = vpop.permute.xlu1 %1687  ;;  %6069 = vmatprep.subr.bf16.mxu0 %v6539_v24 }
 0x725   : > { %v7042_v47 = vpop.permute.xlu0 %2569  ;;  %v1691_v48 = vsel %vm1533_vm11, %v1682_v35, %v1688_v45 }
 0x726   : > { %3626 = vrot.lane.b32.xlu1 %v3624_v46, %s6552_s9  ;;  %6048 = vmatmul.mubr.msk.bf16.vlgmr.msra.gmra.mxu1 %vm1006_vm3, %v1691_v48 }
 0x727   : > { %6060 = vmatpush3.bf16.msra.mxu1 %v6898_v21  ;;  %6070 = vmatpush3.bf16.msra.mxu0 %v6907_v33 }
 0x728   : > { %v1903_v49 = vpop.permute.xlu1 %1902  ;;  %6061 = vmatprep.subr.bf16.mxu1 %v6539_v24  ;;  %6083 = vmatprep.subr.bf16.mxu0 %v6539_v24 }
 0x729   : > { %v7051_v51 = vpop.permute.xlu0 %2733  ;;  %v1912_v52 = vsel %vm1533_vm11, %v1903_v49, %v1909_v30  ;;  %6063 = vmatprep.mubr.msk.bf16.mxu1 %vm7945_vm6, %v6539_v24 }
 0x72a   : > { %3856 = vrot.lane.b32.xlu1 %v6443_v50, %s6559_s15  ;;  %6072 = vmatmul.mubr.msk.bf16.vlgmr.msra.gmra.mxu0 %vm1006_vm3, %v1912_v52 }
 0x72b   : > { %6062 = vmatpush3.bf16.msra.mxu1 %v6907_v33  ;;  %6084 = vmatpush3.bf16.msra.mxu0 %v6898_v21 }
 0x72c   : > { %v1826_v54 = vpop.permute.xlu1 %1825  ;;  %6075 = vmatprep.subr.bf16.mxu1 %v6539_v24  ;;  %6085 = vmatprep.subr.bf16.mxu0 %v6539_v24 }
 0x72d   : > { %v2202_v56 = vpop.permute.xlu0 %2201  ;;  %v1835_v58 = vsel %vm1533_vm11, %v1826_v54, %v1832_v31  ;;  %6087 = vmatprep.mubr.msk.bf16.mxu0 %vm7945_vm6, %v6539_v24 }
 0x72e   : > { %3784 = vrot.lane.b32.xlu1 %v6444_v55, %s6559_s15  ;;  %6064 = vmatmul.mubr.msk.bf16.vlgmr.msra.gmra.mxu1 %vm1006_vm3, %v1835_v58 }
 0x72f   : > { %6076 = vmatpush3.bf16.msra.mxu1 %v6898_v21  ;;  %6086 = vmatpush3.bf16.msra.mxu0 %v6907_v33 }
 0x730   : > { %v2047_v59 = vpop.permute.xlu1 %2046  ;;  %6077 = vmatprep.subr.bf16.mxu1 %v6539_v24  ;;  %6099 = vmatprep.subr.bf16.mxu0 %v6539_v24 }
 0x731   : > { %v2130_v60 = vpop.permute.xlu0 %2129  ;;  %v2056_v61 = vsel %vm1533_vm11, %v2047_v59, %v2053_v39  ;;  %6079 = vmatprep.mubr.msk.bf16.mxu1 %vm7945_vm6, %v6539_v24 }
 0x732   : > { %6088 = vmatmul.mubr.msk.bf16.vlgmr.msra.gmra.mxu0 %vm1006_vm3, %v2056_v61 }
 0x733   : > { %6078 = vmatpush3.bf16.msra.mxu1 %v6907_v33  ;;  %6100 = vmatpush3.bf16.msra.mxu0 %v6898_v21 }
 0x734   : > { %v1975_v62 = vpop.permute.xlu1 %1974  ;;  %6091 = vmatprep.subr.bf16.mxu1 %v6539_v24  ;;  %6101 = vmatprep.subr.bf16.mxu0 %v6539_v24 }
 0x735   : > { %v2351_v63 = vpop.permute.xlu0 %2350  ;;  %v1984_v2 = vsel %vm1533_vm11, %v1975_v62, %v1981_v43  ;;  %6103 = vmatprep.mubr.msk.bf16.mxu0 %vm7945_vm6, %v6539_v24  ;;  %v2813_v43 = vrot.slane %v6445_v37, 2 }
 0x736   : > { %6080 = vmatmul.mubr.msk.bf16.vlgmr.msra.gmra.mxu1 %vm1006_vm3, %v1984_v2 }
 0x737   : > { %6092 = vmatpush3.bf16.msra.mxu1 %v6898_v21  ;;  %6102 = vmatpush3.bf16.msra.mxu0 %v6907_v33 }
 0x738   : > { %v2196_v4 = vpop.permute.xlu1 %2195  ;;  %6093 = vmatprep.subr.bf16.mxu1 %v6539_v24  ;;  %6115 = vmatprep.subr.bf16.mxu0 %v6539_v24 }
 0x739   : > { %v2274_v5 = vpop.permute.xlu0 %2273  ;;  %v2205_v6 = vsel %vm1533_vm11, %v2196_v4, %v2202_v56  ;;  %6095 = vmatprep.mubr.msk.bf16.mxu1 %vm7945_vm6, %v6539_v24 }
 0x73a   : > { %6104 = vmatmul.mubr.msk.bf16.vlgmr.msra.gmra.mxu0 %vm1006_vm3, %v2205_v6 }
 0x73b   : > { %6094 = vmatpush3.bf16.msra.mxu1 %v6907_v33  ;;  %6116 = vmatpush3.bf16.msra.mxu0 %v6898_v21 }
 0x73c   : > { %v2124_v7 = vpop.permute.xlu1 %2123  ;;  %6107 = vmatprep.subr.bf16.mxu1 %v6539_v24  ;;  %6117 = vmatprep.subr.bf16.mxu0 %v6539_v24 }
 0x73d   : > { %v2495_v8 = vpop.permute.xlu0 %2494  ;;  %v2133_v9 = vsel %vm1533_vm11, %v2124_v7, %v2130_v60  ;;  %6119 = vmatprep.mubr.msk.bf16.mxu0 %vm7945_vm6, %v6539_v24 }
 0x73e   : > { %6096 = vmatmul.mubr.msk.bf16.vlgmr.msra.gmra.mxu1 %vm1006_vm3, %v2133_v9 }
 0x73f   : > { %6108 = vmatpush3.bf16.msra.mxu1 %v6898_v21  ;;  %6118 = vmatpush3.bf16.msra.mxu0 %v6907_v33 }
 0x740   : > { %v2345_v10 = vpop.permute.xlu1 %2344  ;;  %6109 = vmatprep.subr.bf16.mxu1 %v6539_v24  ;;  %6131 = vmatprep.subr.bf16.mxu0 %v6539_v24 }
 0x741   : > { %v2423_v11 = vpop.permute.xlu0 %2422  ;;  %v2354_v12 = vsel %vm1533_vm11, %v2345_v10, %v2351_v63  ;;  %6111 = vmatprep.mubr.msk.bf16.mxu1 %vm7945_vm6, %v6539_v24 }
 0x742   : > { %6120 = vmatmul.mubr.msk.bf16.vlgmr.msra.gmra.mxu0 %vm1006_vm3, %v2354_v12 }
 0x743   : > { %6110 = vmatpush3.bf16.msra.mxu1 %v6907_v33  ;;  %6132 = vmatpush3.bf16.msra.mxu0 %v6898_v21 }
 0x744   : > { %v2268_v15 = vpop.permute.xlu1 %2267  ;;  %6123 = vmatprep.subr.bf16.mxu1 %v6539_v24  ;;  %6133 = vmatprep.subr.bf16.mxu0 %v6539_v24 }
 0x745   : > { %v2667_v16 = vpop.permute.xlu0 %2666  ;;  %v2277_v17 = vsel %vm1533_vm11, %v2268_v15, %v2274_v5  ;;  %6135 = vmatprep.mubr.msk.bf16.mxu0 %vm7945_vm6, %v6539_v24 }
 0x746   : > { %6112 = vmatmul.mubr.msk.bf16.vlgmr.msra.gmra.mxu1 %vm1006_vm3, %v2277_v17 }
 0x747   : > { %6124 = vmatpush3.bf16.msra.mxu1 %v6898_v21  ;;  %6134 = vmatpush3.bf16.msra.mxu0 %v6907_v33 }
 0x748   : > { %v2489_v18 = vpop.permute.xlu1 %2488  ;;  %6125 = vmatprep.subr.bf16.mxu1 %v6539_v24  ;;  %6127 = vmatprep.mubr.msk.bf16.mxu1 %vm7945_vm6, %v6539_v24 }
 0x749   : > { %v2583_v19 = vpop.permute.xlu0 %2582  ;;  %v2498_v20 = vsel %vm1533_vm11, %v2489_v18, %v2495_v8  ;;  %6147 = vmatprep.subr.bf16.mxu0 %v6539_v24 }
 0x74a   : > { %6136 = vmatmul.mubr.msk.bf16.vlgmr.msra.gmra.mxu0 %vm1006_vm3, %v2498_v20 }
 0x74b   : > { %6126 = vmatpush3.bf16.msra.mxu1 %v6907_v33  ;;  %6148 = vmatpush3.bf16.msra.mxu0 %v6898_v21 }
 0x74c   : > { %v2417_v25 = vpop.permute.xlu1 %2416  ;;  %6139 = vmatprep.subr.bf16.mxu1 %v6539_v24  ;;  %6149 = vmatprep.subr.bf16.mxu0 %v6539_v24 }
 0x74d   : > { %v7127_v26 = vpop.permute.xlu0 %3705  ;;  %v2426_v29 = vsel %vm1533_vm11, %v2417_v25, %v2423_v11  ;;  %6151 = vmatprep.mubr.msk.bf16.mxu0 %vm7945_vm6, %v6539_v24 }
 0x74e   : > { %6128 = vmatmul.mubr.msk.bf16.vlgmr.msra.gmra.mxu1 %vm1006_vm3, %v2426_v29 }
 0x74f   : > { %6140 = vmatpush3.bf16.msra.mxu1 %v6898_v21  ;;  %6150 = vmatpush3.bf16.msra.mxu0 %v6907_v33 }
 0x750   : > { %v2653_v53 = vpop.permute.xlu1 %2652  ;;  %6141 = vmatprep.subr.bf16.mxu1 %v6539_v24  ;;  %6163 = vmatprep.subr.bf16.mxu0 %v6539_v24 }
 0x751   : > { %v7137_v30 = vpop.permute.xlu0 %3615  ;;  %6143 = vmatprep.mubr.msk.bf16.mxu1 %vm7945_vm6, %v6539_v24  ;;  %v2656_v31 = vsel %vm2571_vm0, %v2653_v53, %v7033_v44  ;;  %v2738_v44 = vrot.slane %v6442_v42, 2 }
 0x753   : > { %6142 = vmatpush3.bf16.msra.mxu1 %v6907_v33  ;;  %v2741_v45 = vsel %vm1533_vm11, %v7051_v51, %v2738_v44 }
 0x754   : > { %v2568_v14 = vpop.permute.xlu1 %2567  ;;  %6155 = vmatprep.subr.bf16.mxu1 %v6539_v24 }
 0x755   : > { %v2957_v13 = vpop.permute.xlu0 %2956  ;;  %v2572_v40 = vsel %vm2571_vm0, %v2568_v14, %v7042_v47  ;;  %vm2114_vm0 = vcmask 1042368  }
 0x758   : > { %v2809_v22 = vpop.permute.xlu1 %2808 }
 0x759   : > { %v2885_v28 = vpop.permute.xlu0 %2884  ;;  %v2816_v3 = vsel %vm1533_vm11, %v2809_v22, %v2813_v43 }
 0x75c   : > { %v2665_v27 = vpop.permute.xlu1 %2664 }
 0x75d   : > { %v2668_v32 = vsel %vm2584_vm1, %v2665_v27, %v2667_v16  ;;  %v3106_v34 = vpop.permute.xlu0 %3105 }
 0x75e   : > { %v2671_v36 = vsel %vm1533_vm11, %v2656_v31, %v2668_v32  ;;  %v6560_v31 = vmov 1983009808  }
 0x75f   : > { %6152 = vmatmul.mubr.msk.bf16.vlgmr.msra.gmra.mxu0 %vm1006_vm3, %v2671_v36  ;;  %v1594_v32 = vunpack.c.l.s4 %v6560_v31  ;;  %v1597_v36 = vshrl.u32 %v941_v23, 7 }
 0x760   : > { %v2581_v39 = vpop.permute.xlu1 %2580  ;;  %6164 = vmatpush3.bf16.msra.mxu0 %v6898_v21  ;;  %6167 = vmatprep.mubr.msk.bf16.mxu0 %vm7945_vm6, %v6539_v24 }
 0x761   : > { %v2585_v41 = vsel %vm2584_vm1, %v2581_v39, %v2583_v19  ;;  %6165 = vmatprep.subr.bf16.mxu0 %v6539_v24  ;;  %v3034_v0 = vpop.permute.xlu0 %3033  ;;  %vm2115_vm1 = vcmask 273410  }
 0x762   : > { %v2588_v35 = vsel %vm1533_vm11, %v2572_v40, %v2585_v41  ;;  %vm2116_vm15 = vmor %vm2115_vm1, %vm2114_vm0  ;;  %vm3953_vm0 = vcmask 1042416   ;;  %vm3954_vm1 = vcmask 322562  }
 0x763   : > { %6144 = vmatmul.mubr.msk.bf16.vlgmr.msra.gmra.mxu1 %vm1006_vm3, %v2588_v35 }
 0x764   : > { %6156 = vmatpush3.bf16.msra.mxu1 %v6898_v21  ;;  %v2951_v1 = vpop.permute.xlu1 %2950  ;;  %6166 = vmatpush3.bf16.msra.mxu0 %v6907_v33 }
 0x765   : > { %6157 = vmatprep.subr.bf16.mxu1 %v6539_v24  ;;  %6179 = vmatprep.subr.bf16.mxu0 %v6539_v24  ;;  %v3254_v46 = vpop.permute.xlu0 %3253  ;;  %v2960_v48 = vsel %vm1533_vm11, %v2951_v1, %v2957_v13 }
 0x766   : > { %6159 = vmatprep.mubr.msk.bf16.mxu1 %vm7945_vm6, %v6539_v24 }
 0x767   : > { %6168 = vmatmul.mubr.msk.bf16.vlgmr.msra.gmra.mxu0 %vm1006_vm3, %v2816_v3 }
 0x768   : > { %6158 = vmatpush3.bf16.msra.mxu1 %v6907_v33  ;;  %v2879_v38 = vpop.permute.xlu1 %2878  ;;  %6180 = vmatpush3.bf16.msra.mxu0 %v6898_v21 }
 0x769   : > { %6171 = vmatprep.subr.bf16.mxu1 %v6539_v24  ;;  %6181 = vmatprep.subr.bf16.mxu0 %v6539_v24  ;;  %v3178_v49 = vpop.permute.xlu0 %3177  ;;  %v2888_v51 = vsel %vm1533_vm11, %v2879_v38, %v2885_v28 }
 0x76a   : > { %6183 = vmatprep.mubr.msk.bf16.mxu0 %vm7945_vm6, %v6539_v24 }
 0x76b   : > { %6160 = vmatmul.mubr.msk.bf16.vlgmr.msra.gmra.mxu1 %vm1006_vm3, %v2741_v45 }
 0x76c   : > { %6172 = vmatpush3.bf16.msra.mxu1 %v6898_v21  ;;  %v3100_v47 = vpop.permute.xlu1 %3099  ;;  %6182 = vmatpush3.bf16.msra.mxu0 %v6907_v33 }
 0x76d   : > { %6173 = vmatprep.subr.bf16.mxu1 %v6539_v24  ;;  %6195 = vmatprep.subr.bf16.mxu0 %v6539_v24  ;;  %v3398_v54 = vpop.permute.xlu0 %3397  ;;  %v3109_v55 = vsel %vm1533_vm11, %v3100_v47, %v3106_v34  ;;  %v1595_v34 = vunpack.c.0.s8 %v1594_v32 }
 0x76e   : > { %6175 = vmatprep.mubr.msk.bf16.mxu1 %vm7945_vm6, %v6539_v24 }
 0x76f   : > { %6184 = vmatmul.mubr.msk.bf16.vlgmr.msra.gmra.mxu0 %vm1006_vm3, %v2960_v48  ;;  %v7279_v37 = vsub.s32 %v1595_v34, %v1597_v36 }
 0x770   : > { %6174 = vmatpush3.bf16.msra.mxu1 %v6907_v33  ;;  %v3028_v50 = vpop.permute.xlu1 %3027  ;;  %6196 = vmatpush3.bf16.msra.mxu0 %v6898_v21 }
 0x771   : > { %6187 = vmatprep.subr.bf16.mxu1 %v6539_v24  ;;  %6197 = vmatprep.subr.bf16.mxu0 %v6539_v24  ;;  %v3037_v58 = vsel %vm1533_vm11, %v3028_v50, %v3034_v0  ;;  %v3326_v59 = vpop.permute.xlu0 %3325 }
 0x772   : > { %6199 = vmatprep.mubr.msk.bf16.mxu0 %vm7945_vm6, %v6539_v24 }
 0x773   : > { %6176 = vmatmul.mubr.msk.bf16.vlgmr.msra.gmra.mxu1 %vm1006_vm3, %v2888_v51 }
 0x774   : > { %6188 = vmatpush3.bf16.msra.mxu1 %v6898_v21  ;;  %v3248_v52 = vpop.permute.xlu1 %3247  ;;  %6198 = vmatpush3.bf16.msra.mxu0 %v6907_v33 }
 0x775   : > { %6189 = vmatprep.subr.bf16.mxu1 %v6539_v24  ;;  %6211 = vmatprep.subr.bf16.mxu0 %v6539_v24  ;;  %v3257_v61 = vsel %vm1533_vm11, %v3248_v52, %v3254_v46  ;;  %v3546_v63 = vpop.permute.xlu0 %3545 }
 0x776   : > { %6191 = vmatprep.mubr.msk.bf16.mxu1 %vm7945_vm6, %v6539_v24 }
 0x777   : > { %6200 = vmatmul.mubr.msk.bf16.vlgmr.msra.gmra.mxu0 %vm1006_vm3, %v3109_v55 }
 0x778   : > { %6190 = vmatpush3.bf16.msra.mxu1 %v6907_v33  ;;  %v3172_v56 = vpop.permute.xlu1 %3171  ;;  %6212 = vmatpush3.bf16.msra.mxu0 %v6898_v21 }
 0x779   : > { %6203 = vmatprep.subr.bf16.mxu1 %v6539_v24  ;;  %6213 = vmatprep.subr.bf16.mxu0 %v6539_v24  ;;  %v3181_v2 = vsel %vm1533_vm11, %v3172_v56, %v3178_v49  ;;  %v3474_v6 = vpop.permute.xlu0 %3473 }
 0x77a   : > { %6215 = vmatprep.mubr.msk.bf16.mxu0 %vm7945_vm6, %v6539_v24 }
 0x77b   : > { %6192 = vmatmul.mubr.msk.bf16.vlgmr.msra.gmra.mxu1 %vm1006_vm3, %v3037_v58 }
 0x77c   : > { %6204 = vmatpush3.bf16.msra.mxu1 %v6898_v21  ;;  %v3392_v60 = vpop.permute.xlu1 %3391  ;;  %6214 = vmatpush3.bf16.msra.mxu0 %v6907_v33 }
 0x77d   : > { %6205 = vmatprep.subr.bf16.mxu1 %v6539_v24  ;;  %6227 = vmatprep.subr.bf16.mxu0 %v6539_v24  ;;  %v3401_v5 = vsel %vm1533_vm11, %v3392_v60, %v3398_v54  ;;  %v3718_v10 = vpop.permute.xlu0 %3717 }
 0x77e   : > { %6207 = vmatprep.mubr.msk.bf16.mxu1 %vm7945_vm6, %v6539_v24 }
 0x77f   : > { %6216 = vmatmul.mubr.msk.bf16.vlgmr.msra.gmra.mxu0 %vm1006_vm3, %v3257_v61 }
 0x780   : > { %6206 = vmatpush3.bf16.msra.mxu1 %v6907_v33  ;;  %v3320_v62 = vpop.permute.xlu1 %3319  ;;  %6228 = vmatpush3.bf16.msra.mxu0 %v6898_v21 }
 0x781   : > { %6219 = vmatprep.subr.bf16.mxu1 %v6539_v24  ;;  %6229 = vmatprep.subr.bf16.mxu0 %v6539_v24  ;;  %v3329_v8 = vsel %vm1533_vm11, %v3320_v62, %v3326_v59  ;;  %v3629_v16 = vpop.permute.xlu0 %3628 }
 0x782   : > { %6231 = vmatprep.mubr.msk.bf16.mxu0 %vm7945_vm6, %v6539_v24 }
 0x783   : > { %6208 = vmatmul.mubr.msk.bf16.vlgmr.msra.gmra.mxu1 %vm1006_vm3, %v3181_v2 }
 0x784   : > { %6220 = vmatpush3.bf16.msra.mxu1 %v6898_v21  ;;  %v3540_v4 = vpop.permute.xlu1 %3539  ;;  %6230 = vmatpush3.bf16.msra.mxu0 %v6907_v33  ;;  %v6511_v21 = vld [vmem:[%s7912_s4 + $0x8] sm:$0xff]  }
 0x785   : > { %6221 = vmatprep.subr.bf16.mxu1 %v6539_v24  ;;  %6243 = vmatprep.subr.bf16.mxu0 %v6539_v24  ;;  %v3549_v11 = vsel %vm1533_vm11, %v3540_v4, %v3546_v63  ;;  %v3863_v53 = vpop.permute.xlu0 %3862 }
 0x786   : > { %6223 = vmatprep.mubr.msk.bf16.mxu1 %vm7945_vm6, %v6539_v24 }
 0x787   : > { %6232 = vmatmul.mubr.msk.bf16.vlgmr.msra.gmra.mxu0 %vm1006_vm3, %v3401_v5 }
 0x788   : > { %6222 = vmatpush3.bf16.msra.mxu1 %v6907_v33  ;;  %v3468_v7 = vpop.permute.xlu1 %3467  ;;  %6244 = vmatpush3.bf16.msra.mxu0 %v6511_v21  ;;  %v6512_v33 = vld [vmem:[%s7912_s4] sm:$0xff]  }
 0x789   : > { %6235 = vmatprep.subr.bf16.mxu1 %v6539_v24  ;;  %6245 = vmatprep.subr.bf16.mxu0 %v6539_v24  ;;  %v3477_v15 = vsel %vm1533_vm11, %v3468_v7, %v3474_v6 }
 0x78a   : > { %6247 = vmatprep.mubr.msk.bf16.mxu0 %vm7945_vm6, %v6539_v24 }
 0x78b   : > { %6224 = vmatmul.mubr.msk.bf16.vlgmr.msra.gmra.mxu1 %vm1006_vm3, %v3329_v8 }
 0x78c   : > { %6236 = vmatpush3.bf16.msra.mxu1 %v6511_v21  ;;  %v3704_v9 = vpop.permute.xlu1 %3703  ;;  %6246 = vmatpush3.bf16.msra.mxu0 %v6512_v33 }
 0x78d   : > { %6237 = vmatprep.subr.bf16.mxu1 %v6539_v24  ;;  %6259 = vmatprep.subr.bf16.mxu0 %v6539_v24  ;;  %v3707_v18 = vsel %vm3617_vm2, %v3704_v9, %v7127_v26 }
 0x78e   : > { %6239 = vmatprep.mubr.msk.bf16.mxu1 %vm7945_vm6, %v6539_v24 }
 0x78f   : > { %6248 = vmatmul.mubr.msk.bf16.vlgmr.msra.gmra.mxu0 %vm1006_vm3, %v3549_v11 }
 0x790   : > { %6238 = vmatpush3.bf16.msra.mxu1 %v6512_v33  ;;  %v3614_v12 = vpop.permute.xlu1 %3613  ;;  %6260 = vmatpush3.bf16.msra.mxu0 %v6511_v21 }
 0x791   : > { %6251 = vmatprep.subr.bf16.mxu1 %v6539_v24  ;;  %6261 = vmatprep.subr.bf16.mxu0 %v6539_v24  ;;  %v3618_v29 = vsel %vm3617_vm2, %v3614_v12, %v7137_v30  ;;  %v3791_v30 = vpop.permute.xlu0 %3790  ;;  %vm1523_vm2 = vcmask 336896  }
 0x792   : > { %6263 = vmatprep.mubr.msk.bf16.mxu0 %vm7945_vm6, %v6539_v24  ;;  %1524 = vst.msk [vmem:[#allocation7] sm:$0x3] %vm1523_vm2, %v6531_v57  ;;  %vm3936_vm2 = vcmask 681296  }
 0x793   : > { %6240 = vmatmul.mubr.msk.bf16.vlgmr.msra.gmra.mxu1 %vm1006_vm3, %v3477_v15 }
 0x794   : > { %6252 = vmatpush3.bf16.msra.mxu1 %v6511_v21  ;;  %v3716_v17 = vpop.permute.xlu1 %3715  ;;  %6262 = vmatpush3.bf16.msra.mxu0 %v6512_v33 }
 0x795   : > { %v3719_v19 = vsel %vm3630_vm8, %v3716_v17, %v3718_v10  ;;  %6253 = vmatprep.subr.bf16.mxu1 %v6539_v24  ;;  %6275 = vmatprep.subr.bf16.mxu0 %v6539_v24 }
 0x796   : > { %v3722_v20 = vsel %vm1533_vm11, %v3707_v18, %v3719_v19  ;;  %6255 = vmatprep.mubr.msk.bf16.mxu1 %vm7945_vm6, %v6539_v24 }
 0x797   : > { %6264 = vmatmul.mubr.msk.bf16.vlgmr.msra.gmra.mxu0 %vm1006_vm3, %v3722_v20 }
 0x798   : > { %6254 = vmatpush3.bf16.msra.mxu1 %v6512_v33  ;;  %v3627_v25 = vpop.permute.xlu1 %3626  ;;  %6276 = vmatpush3.bf16.msra.mxu0 %v6511_v21 }
 0x799   : > { %v3631_v26 = vsel %vm3630_vm8, %v3627_v25, %v3629_v16  ;;  %6267 = vmatprep.subr.bf16.mxu1 %v6539_v24  ;;  %6277 = vmatprep.subr.bf16.mxu0 %v6539_v24  ;;  %vm1967_vm8 = vcmask 632096  }
 0x79a   : > { %v3634_v14 = vsel %vm1533_vm11, %v3618_v29, %v3631_v26  ;;  %6279 = vmatprep.mubr.msk.bf16.mxu0 %vm7945_vm6, %v6539_v24 }
 0x79b   : > { %6256 = vmatmul.mubr.msk.bf16.vlgmr.msra.gmra.mxu1 %vm1006_vm3, %v3634_v14 }
 0x79c   : > { %6268 = vmatpush3.bf16.msra.mxu1 %v6511_v21  ;;  %v3857_v13 = vpop.permute.xlu1 %3856  ;;  %6278 = vmatpush3.bf16.msra.mxu0 %v6512_v33 }
 0x79d   : > { %v3866_v22 = vsel %vm1533_vm11, %v3857_v13, %v3863_v53  ;;  %6269 = vmatprep.subr.bf16.mxu1 %v6539_v24  ;;  %6271 = vmatprep.mubr.msk.bf16.mxu1 %vm7945_vm6, %v6539_v24  ;;  %vm1890_vm6 = vcmask 998400  }
 0x79f   : > { %6280 = vmatmul.mubr.msk.bf16.vlgmr.msra.gmra.mxu0 %vm1006_vm3, %v3866_v22 }
 0x7a0   : > { %6270 = vmatpush3.bf16.msra.mxu1 %v6512_v33  ;;  %v3785_v28 = vpop.permute.xlu1 %3784  ;;  %5290 = vmatprep.mubr.bf16.mxu0 %v6531_v57 }
 0x7a1   : > { %v3794_v27 = vsel %vm1533_vm11, %v3785_v28, %v3791_v30  ;;  %vm1895_vm11 = vmor %vm1894_vm5, %vm1893_vm4  ;;  %vm2332_vm4 = vcmask 965632   ;;  %vm2260_vm5 = vcmask 960096  }
 0x7a3   : > { %6272 = vmatmul.mubr.msk.bf16.vlgmr.msra.gmra.mxu1 %vm1006_vm3, %v3794_v27  ;;  %vm1603_vm3 = vcmask 1009296  }
 0x7a4   : > { %5249 = vmatprep.mubr.bf16.mxu1 %v6531_v57 }
 0x7d2   : > { %v1585_v24 = vpop.f32.mrf.mxu0 }
 0x7d3   : > { %v1591_v39 = vpack.c.bf16 %v1585_v24, %v1585_v24 }
 0x7d4   : > { %v6033_v40 = vpop.f32.mrf.mxu0 }
 0x7d5   : > { %v1599_v41 = vrot.slane %v1591_v39, %v7279_v37 }
 0x7d6   : > { %v1588_v35 = vpop.f32.mrf.mxu0 }
 0x7d7   : > { %1600 = vrot.lane.b32.xlu0 %v1599_v41, %s6561_s14  ;;  %s7951_s14 = smov 40  }
 0x7d8   : > { %v6034_v42 = vpop.f32.mrf.mxu0 }
 0x7da   : > { %v1652_v43 = vpop.f32.mrf.mxu0 }
 0x7db   : > { %v1658_v0 = vpack.c.bf16 %v1652_v43, %v1652_v43 }
 0x7dc   : > { %v6041_v1 = vpop.f32.mrf.mxu0 }
 0x7dd   : > { %v1666_v3 = vrot.slane %v1658_v0, %v7279_v37 }
 0x7de   : > { %v1655_v44 = vpop.f32.mrf.mxu0 }
 0x7df   : > { %1667 = vrot.lane.b32.xlu1 %v1666_v3, %s6532_s19 }
 0x7e0   : > { %v6042_v23 = vpop.f32.mrf.mxu0 }
 0x7e2   : > { %v1800_v38 = vpop.f32.mrf.mxu0 }
 0x7e3   : > { %v1806_v63 = vpack.c.bf16 %v1800_v38, %v1800_v38 }
 0x7e4   : > { %v6057_v45 = vpop.f32.mrf.mxu0 }
 0x7e5   : > { %v1814_v8 = vrot.slane %v1806_v63, %v7279_v37 }
 0x7e6   : > { %v1728_v46 = vpop.f32.mrf.mxu1  ;;  %v1803_v47 = vpop.f32.mrf.mxu0 }
 0x7e7   : > { %v1734_v48 = vpack.c.bf16 %v1728_v46, %v1728_v46 }
 0x7e8   : > { %v6049_v49 = vpop.f32.mrf.mxu1  ;;  %v6058_v50 = vpop.f32.mrf.mxu0 }
 0x7e9   : > { %v1742_v51 = vrot.slane %v1734_v48, %v7279_v37 }
 0x7ea   : > { %v1731_v52 = vpop.f32.mrf.mxu1  ;;  %v1949_v54 = vpop.f32.mrf.mxu0 }
 0x7eb   : > { %1743 = vrot.lane.b32.xlu0 %v1742_v51, %s6551_s29  ;;  %v1955_v9 = vpack.c.bf16 %v1949_v54, %v1949_v54  ;;  %s6563_s29 = smov 80  }
 0x7ec   : > { %v6050_v55 = vpop.f32.mrf.mxu1  ;;  %v6073_v56 = vpop.f32.mrf.mxu0 }
 0x7ed   : > { %v1963_v17 = vrot.slane %v1955_v9, %v7279_v37 }
 0x7ee   : > { %v1872_v58 = vpop.f32.mrf.mxu1  ;;  %v1952_v59 = vpop.f32.mrf.mxu0 }
 0x7ef   : > { %v1878_v60 = vpack.c.bf16 %v1872_v58, %v1872_v58 }
 0x7f0   : > { %v6065_v61 = vpop.f32.mrf.mxu1  ;;  %v6074_v62 = vpop.f32.mrf.mxu0 }
 0x7f1   : > { %v1886_v2 = vrot.slane %v1878_v60, %v7279_v37 }
 0x7f2   : > { %v1875_v4 = vpop.f32.mrf.mxu1  ;;  %v2093_v5 = vpop.f32.mrf.mxu0 }
 0x7f3   : > { %v2099_v6 = vpack.c.bf16 %v2093_v5, %v2093_v5  ;;  %1887 = vrot.lane.b32.xlu1 %v1886_v2, %s6562_s28  ;;  %s6580_s28 = smov 42  }
 0x7f4   : > { %v6066_v7 = vpop.f32.mrf.mxu1  ;;  %v6089_v21 = vpop.f32.mrf.mxu0 }
 0x7f5   : > { %v2107_v33 = vrot.slane %v2099_v6, %v7279_v37 }
 0x7f6   : > { %v2021_v10 = vpop.f32.mrf.mxu1  ;;  %v2096_v11 = vpop.f32.mrf.mxu0 }
 0x7f7   : > { %v2027_v12 = vpack.c.bf16 %v2021_v10, %v2021_v10  ;;  %1815 = vrot.lane.b32.xlu1 %v1814_v8, %s6563_s29  ;;  %2108 = vrot.lane.b32.xlu0 %v2107_v33, %s6564_s26  ;;  %s7952_s26 = smov 127  }
 0x7f8   : > { %v6081_v15 = vpop.f32.mrf.mxu1  ;;  %v6090_v16 = vpop.f32.mrf.mxu0 }
 0x7f9   : > { %v2035_v18 = vrot.slane %v2027_v12, %v7279_v37 }
 0x7fa   : > { %v2024_v19 = vpop.f32.mrf.mxu1  ;;  %v2242_v20 = vpop.f32.mrf.mxu0 }
 0x7fb   : > { %1964 = vrot.lane.b32.xlu1 %v1963_v17, %s6524_s12  ;;  %2036 = vrot.lane.b32.xlu0 %v2035_v18, %s6565_s10  ;;  %v2248_v41 = vpack.c.bf16 %v2242_v20, %v2242_v20  ;;  %s6566_s12 = smov 118   ;;  %s7953_s10 = smov 126  }
 0x7fc   : > { %v6082_v25 = vpop.f32.mrf.mxu1  ;;  %v6105_v29 = vpop.f32.mrf.mxu0 }
 0x7fd   : > { %v2256_v3 = vrot.slane %v2248_v41, %v7279_v37 }
 0x7fe   : > { %v2170_v26 = vpop.f32.mrf.mxu1  ;;  %v2245_v53 = vpop.f32.mrf.mxu0 }
 0x7ff   : > { %v2176_v14 = vpack.c.bf16 %v2170_v26, %v2170_v26 }
 0x800   : > { %v6097_v13 = vpop.f32.mrf.mxu1  ;;  %v6106_v22 = vpop.f32.mrf.mxu0 }
 0x801   : > { %v2184_v30 = vrot.slane %v2176_v14, %v7279_v37 }
 0x802   : > { %v2173_v28 = vpop.f32.mrf.mxu1  ;;  %v7294_v27 = vpop.f32.mrf.mxu0 }
 0x803   : > { %2185 = vrot.lane.b32.xlu1 %v2184_v30, %s6530_s18  ;;  %s6567_s18 = smov 48  }
 0x804   : > { %v6098_v31 = vpop.f32.mrf.mxu1  ;;  %v6121_v32 = vpop.f32.mrf.mxu0 }
 0x806   : > { %v2314_v34 = vpop.f32.mrf.mxu1  ;;  %v2394_v36 = vpop.f32.mrf.mxu0 }
 0x807   : > { %v2320_v24 = vpack.c.bf16 %v2314_v34, %v2314_v34 }
 0x808   : > { %v6113_v39 = vpop.f32.mrf.mxu1  ;;  %v6122_v40 = vpop.f32.mrf.mxu0 }
 0x809   : > { %v2328_v35 = vrot.slane %v2320_v24, %v7279_v37 }
 0x80a   : > { %v2317_v42 = vpop.f32.mrf.mxu1  ;;  %v7298_v43 = vpop.f32.mrf.mxu0 }
 0x80b   : > { %2329 = vrot.lane.b32.xlu0 %v2328_v35, %s6566_s12  ;;  %s6583_s12 = smov 86  }
 0x80c   : > { %v6114_v0 = vpop.f32.mrf.mxu1  ;;  %v6137_v1 = vpop.f32.mrf.mxu0 }
 0x80e   : > { %v7301_v44 = vpop.f32.mrf.mxu1  ;;  %v2538_v23 = vpop.f32.mrf.mxu0 }
 0x80f   : > { %2257 = vrot.lane.b32.xlu0 %v2256_v3, %s6555_s17  ;;  %s6571_s17 = smov 68  }
 0x810   : > { %v6129_v38 = vpop.f32.mrf.mxu1  ;;  %v6138_v45 = vpop.f32.mrf.mxu0 }
 0x812   : > { %v2466_v46 = vpop.f32.mrf.mxu1 }
 0x814   : > { %v6130_v47 = vpop.f32.mrf.mxu1 }
 0x81f   : > { %v7304_v48 = vpop.f32.mrf.mxu0 }
 0x821   : > { %v6153_v49 = vpop.f32.mrf.mxu0 }
 0x823   : > { %v7306_v50 = vpop.f32.mrf.mxu1  ;;  %v2711_v51 = vpop.f32.mrf.mxu0 }
 0x825   : > { %v6145_v52 = vpop.f32.mrf.mxu1  ;;  %v6154_v54 = vpop.f32.mrf.mxu0 }
 0x827   : > { %v2628_v55 = vpop.f32.mrf.mxu1  ;;  %v7308_v56 = vpop.f32.mrf.mxu0 }
 0x829   : > { %v6146_v58 = vpop.f32.mrf.mxu1  ;;  %v6169_v59 = vpop.f32.mrf.mxu0 }
 0x82b   : > { %v7310_v60 = vpop.f32.mrf.mxu1  ;;  %v2856_v61 = vpop.f32.mrf.mxu0 }
 0x82d   : > { %v6161_v62 = vpop.f32.mrf.mxu1  ;;  %v6170_v63 = vpop.f32.mrf.mxu0 }
 0x82f   : > { %v2781_v2 = vpop.f32.mrf.mxu1  ;;  %v7312_v4 = vpop.f32.mrf.mxu0 }
 0x831   : > { %v6162_v5 = vpop.f32.mrf.mxu1  ;;  %v6185_v6 = vpop.f32.mrf.mxu0 }
 0x833   : > { %v7314_v7 = vpop.f32.mrf.mxu1  ;;  %v3000_v21 = vpop.f32.mrf.mxu0 }
 0x835   : > { %v6177_v8 = vpop.f32.mrf.mxu1  ;;  %v6186_v9 = vpop.f32.mrf.mxu0 }
 0x837   : > { %v2928_v33 = vpop.f32.mrf.mxu1  ;;  %v7316_v10 = vpop.f32.mrf.mxu0 }
 0x839   : > { %v6178_v11 = vpop.f32.mrf.mxu1  ;;  %v6201_v12 = vpop.f32.mrf.mxu0 }
 0x83b   : > { %v7318_v15 = vpop.f32.mrf.mxu1  ;;  %v3149_v16 = vpop.f32.mrf.mxu0 }
 0x83d   : > { %v6193_v17 = vpop.f32.mrf.mxu1  ;;  %v6202_v18 = vpop.f32.mrf.mxu0 }
 0x83f   : > { %v3077_v19 = vpop.f32.mrf.mxu1  ;;  %v7320_v20 = vpop.f32.mrf.mxu0 }
 0x841   : > { %v6194_v25 = vpop.f32.mrf.mxu1  ;;  %v6217_v29 = vpop.f32.mrf.mxu0 }
 0x843   : > { %v7322_v26 = vpop.f32.mrf.mxu1  ;;  %v3297_v53 = vpop.f32.mrf.mxu0 }
 0x845   : > { %v6209_v14 = vpop.f32.mrf.mxu1  ;;  %v6218_v13 = vpop.f32.mrf.mxu0 }
 0x846   : > { %v2397_v13 = vpack.c.bf16 %v7294_v27, %v7294_v27 }
 0x847   : > { %v3221_v22 = vpop.f32.mrf.mxu1  ;;  %v7324_v30 = vpop.f32.mrf.mxu0 }
 0x849   : > { %v6210_v28 = vpop.f32.mrf.mxu1  ;;  %v1601_v31 = vpop.permute.xlu0 %1600 }
 0x84a   : > { %1604 = vst.msk [vmem:[#allocation7 + $0x2] sm:$0x3] %vm1603_vm3, %v1601_v31  ;;  %v6233_v32 = vpop.f32.mrf.mxu0  ;;  %vm2111_vm3 = vcmask 982016   ;;  %v2405_v31 = vrot.slane %v2397_v13, %v7279_v37 }
 0x84b   : > { %v7326_v34 = vpop.f32.mrf.mxu1  ;;  %v2784_v32 = vpack.c.bf16 %v7310_v60, %v7310_v60  ;;  %v2469_v60 = vpack.c.bf16 %v7301_v44, %v7301_v44 }
 0x84c   : > { %v3441_v36 = vpop.f32.mrf.mxu0 }
 0x84d   : > { %v6225_v24 = vpop.f32.mrf.mxu1 }
 0x84e   : > { %v6234_v39 = vpop.f32.mrf.mxu0  ;;  %v2541_v24 = vpack.c.bf16 %v7298_v43, %v7298_v43 }
 0x84f   : > { %v3369_v40 = vpop.f32.mrf.mxu1  ;;  %v2714_v39 = vpack.c.bf16 %v7304_v48, %v7304_v48  ;;  %v2477_v48 = vrot.slane %v2469_v60, %v7279_v37 }
 0x850   : > { %v7328_v41 = vpop.f32.mrf.mxu0  ;;  %v2792_v40 = vrot.slane %v2784_v32, %v7279_v37 }
 0x851   : > { %v6226_v35 = vpop.f32.mrf.mxu1  ;;  %v1668_v42 = vpop.permute.xlu1 %1667  ;;  %v2722_v43 = vrot.slane %v2714_v39, %v7279_v37 }
 0x852   : > { %v1669_v0 = vrot.slane %v1668_v42, 6  ;;  %v6249_v1 = vpop.f32.mrf.mxu0  ;;  %v2549_v35 = vrot.slane %v2541_v24, %v7279_v37 }
 0x853   : > { %v7330_v3 = vpop.f32.mrf.mxu1  ;;  %v2631_v1 = vpack.c.bf16 %v7306_v50, %v7306_v50 }
 0x854   : > { %v1670_v23 = vsel %vm7947_vm9, %v1669_v0, %v1668_v42  ;;  %v3589_v38 = vpop.f32.mrf.mxu0  ;;  %v2859_v42 = vpack.c.bf16 %v7308_v56, %v7308_v56  ;;  %vm2335_vm9 = vcmask 1042352   ;;  %v3224_v56 = vpack.c.bf16 %v7322_v26, %v7322_v26 }
 0x855   : > { %v6241_v45 = vpop.f32.mrf.mxu1  ;;  %1675 = vst.msk [vmem:[#allocation7 + $0x2] sm:$0xf] %vm1674_vm10, %v1670_v23  ;;  %vm2188_vm10 = vcmask 615696  }
 0x856   : > { %v6250_v46 = vpop.f32.mrf.mxu0  ;;  %v2867_v44 = vrot.slane %v2859_v42, %v7279_v37  ;;  %v2639_v45 = vrot.slane %v2631_v1, %v7279_v37 }
 0x857   : > { %v3517_v47 = vpop.f32.mrf.mxu1  ;;  %v3003_v46 = vpack.c.bf16 %v7312_v4, %v7312_v4 }
 0x858   : > { %v7333_v49 = vpop.f32.mrf.mxu0  ;;  %v3152_v47 = vpack.c.bf16 %v7316_v10, %v7316_v10  ;;  %v3080_v10 = vpack.c.bf16 %v7318_v15, %v7318_v15  ;;  %v3592_v15 = vpack.c.bf16 %v7328_v41, %v7328_v41  ;;  %v3520_v41 = vpack.c.bf16 %v7330_v3, %v7330_v3 }
 0x859   : > { %v6242_v51 = vpop.f32.mrf.mxu1  ;;  %v3011_v26 = vrot.slane %v3003_v46, %v7279_v37 }
 0x85a   : > { %v6265_v52 = vpop.f32.mrf.mxu0  ;;  %v3232_v51 = vrot.slane %v3224_v56, %v7279_v37  ;;  %v3160_v4 = vrot.slane %v3152_v47, %v7279_v37 }
 0x85b   : > { %v7335_v54 = vpop.f32.mrf.mxu1  ;;  %v2931_v52 = vpack.c.bf16 %v7314_v7, %v7314_v7 }
 0x85c   : > { %v3762_v55 = vpop.f32.mrf.mxu0 }
 0x85d   : > { %v6257_v58 = vpop.f32.mrf.mxu1  ;;  %v1744_v59 = vpop.permute.xlu0 %1743  ;;  %v3300_v55 = vpack.c.bf16 %v7320_v20, %v7320_v20 }
 0x85e   : > { %1747 = vst.msk [vmem:[#allocation7 + $0x4] sm:$0x3] %vm1746_vm12, %v1744_v59  ;;  %v6266_v61 = vpop.f32.mrf.mxu0  ;;  %vm2336_vm12 = vcmask 257026   ;;  %v2939_v58 = vrot.slane %v2931_v52, %v7279_v37  ;;  %v3677_v59 = vpack.c.bf16 %v7335_v54, %v7335_v54  ;;  %v3765_v54 = vpack.c.bf16 %v7333_v49, %v7333_v49 }
 0x85f   : > { %v3674_v62 = vpop.f32.mrf.mxu1  ;;  %v3308_v7 = vrot.slane %v3300_v55, %v7279_v37  ;;  %v3088_v61 = vrot.slane %v3080_v10, %v7279_v37 }
 0x860   : > { %v7337_v63 = vpop.f32.mrf.mxu0  ;;  %v3444_v62 = vpack.c.bf16 %v7324_v30, %v7324_v30  ;;  %v3685_v20 = vrot.slane %v3677_v59, %v7279_v37  ;;  %v3600_v30 = vrot.slane %v3592_v15, %v7279_v37 }
 0x861   : > { %v6258_v2 = vpop.f32.mrf.mxu1 }
 0x862   : > { %v6281_v5 = vpop.f32.mrf.mxu0  ;;  %v3452_v2 = vrot.slane %v3444_v62, %v7279_v37 }
 0x863   : > { %v7339_v6 = vpop.f32.mrf.mxu1  ;;  %v3372_v5 = vpack.c.bf16 %v7326_v34, %v7326_v34  ;;  %v3773_v34 = vrot.slane %v3765_v54, %v7279_v37 }
 0x864   : > { %v3906_v21 = vpop.f32.mrf.mxu0  ;;  %v3837_v3 = vpack.c.bf16 %v7339_v6, %v7339_v6 }
 0x865   : > { %v6273_v8 = vpop.f32.mrf.mxu1  ;;  %v1888_v9 = vpop.permute.xlu1 %1887  ;;  %v3380_v21 = vrot.slane %v3372_v5, %v7279_v37 }
 0x866   : > { %v1889_v33 = vrot.slane %v1888_v9, 6  ;;  %v6282_v11 = vpop.f32.mrf.mxu0  ;;  %v3528_v8 = vrot.slane %v3520_v41, %v7279_v37 }
 0x867   : > { %v3834_v12 = vpop.f32.mrf.mxu1 }
 0x868   : > { %v1891_v18 = vsel %vm1890_vm6, %v1889_v33, %v1888_v9  ;;  %vm2337_vm6 = vmor %vm2336_vm12, %vm2335_vm9  ;;  %v3909_v9 = vpack.c.bf16 %v7337_v63, %v7337_v63  ;;  %v3845_v33 = vrot.slane %v3837_v3, %v7279_v37  ;;  %vm2553_vm9 = vcmask 949248  }
 0x869   : > { %v6274_v16 = vpop.f32.mrf.mxu1  ;;  %v1816_v17 = vpop.permute.xlu1 %1815  ;;  %vm2481_vm12 = vcmask 943696  }
 0x86a   : > { %1819 = vst.msk [vmem:[#allocation7 + $0x4] sm:$0x3] %vm1818_vm7, %v1816_v17  ;;  %v2109_v19 = vpop.permute.xlu0 %2108  ;;  %v3917_v49 = vrot.slane %v3909_v9, %v7279_v37  ;;  %vm2409_vm7 = vcmask 599296  }
 0x86b   : > { %1896 = vst.msk [vmem:[#allocation7 + $0x4] sm:$0xf] %vm1895_vm11, %v1891_v18  ;;  %v2110_v25 = vrot.slane %v2109_v19, 6  ;;  %vm3933_vm11 = vcmask 392192  }
 0x86d   : > { %v1965_v29 = vpop.permute.xlu1 %1964  ;;  %v2112_v14 = vsel %vm2111_vm3, %v2110_v25, %v2109_v19  ;;  %vm3943_vm3 = vcmask 1025696  }
 0x86e   : > { %1968 = vst.msk [vmem:[#allocation7 + $0x6] sm:$0x3] %vm1967_vm8, %v1965_v29  ;;  %v2037_v53 = vpop.permute.xlu0 %2036  ;;  %vm3950_vm8 = vcmask 719872  }
 0x86f   : > { %2040 = vst.msk [vmem:[#allocation7 + $0x6] sm:$0x3] %vm2039_vm14, %v2037_v53  ;;  %vm3955_vm14 = vmor %vm3954_vm1, %vm3953_vm0  ;;  %vm2726_vm0 = vcmask 927296  }
 0x870   : > { %2117 = vst.msk [vmem:[#allocation7 + $0x6] sm:$0xf] %vm2116_vm15, %v2112_v14  ;;  %vm2556_vm15 = vcmask 1042336  }
 0x872   : > { %v3938_v22 = vld [vmem:[#allocation7 + $0x4] sm:$0x3] }
 0x873   : > { %v3945_v28 = vld [vmem:[#allocation7 + $0x4] sm:$0x3]  ;;  %3940 = vrot.lane.b32.xlu1 %v3938_v22, %s6553_s30  ;;  %s6577_s30 = smov 62  }
 0x874   : > { %3947 = vrot.lane.b32.xlu0 %v3945_v28, %s6535_s22  ;;  %s6568_s22 = smov 116  }
 0x875   : > { %v2186_v36 = vpop.permute.xlu1 %2185 }
 0x876   : > { %2189 = vst.msk [vmem:[#allocation7 + $0x8] sm:$0x3] %vm2188_vm10, %v2186_v36  ;;  %vm2557_vm10 = vcmask 240642  }
 0x877   : > { %v3928_v27 = vld [vmem:[#allocation7 + $0x4] sm:$0xf] }
 0x878   : > { %2406 = vrot.lane.b32.xlu0 %v2405_v31, %s6536_s23  ;;  %3930 = vrot.lane.b32.xlu1 %v3928_v27, %s6567_s18  ;;  %s6569_s23 = smov 28  }
 0x87c   : > { %2793 = vrot.lane.b32.xlu0 %v2792_v40, %s6559_s15  ;;  %2550 = vrot.lane.b32.xlu1 %v2549_v35, %s6568_s22  ;;  %s6579_s15 = smov 84  }
 0x87d   : > { %v2330_v0 = vpop.permute.xlu0 %2329 }
 0x87e   : > { %v2331_v23 = vrot.slane %v2330_v0, 6 }
 0x880   : > { %2723 = vrot.lane.b32.xlu0 %v2722_v43, %s6523_s11  ;;  %2478 = vrot.lane.b32.xlu1 %v2477_v48, %s6549_s27  ;;  %v2333_v50 = vsel %vm2332_vm4, %v2331_v23, %v2330_v0  ;;  %s6570_s11 = smov 30   ;;  %s6575_s27 = smov 66   ;;  %vm2558_vm4 = vmor %vm2557_vm10, %vm2556_vm15  ;;  %vm2943_vm15 = vcmask 910896  }
 0x881   : > { %v2258_v38 = vpop.permute.xlu0 %2257 }
 0x882   : > { %2261 = vst.msk [vmem:[#allocation7 + $0x8] sm:$0x3] %vm2260_vm5, %v2258_v38  ;;  %vm2799_vm5 = vcmask 1042320  }
 0x883   : > { %2338 = vst.msk [vmem:[#allocation7 + $0x8] sm:$0xf] %vm2337_vm6, %v2333_v50  ;;  %vm2800_vm6 = vcmask 224258  }
 0x884   : > { %2868 = vrot.lane.b32.xlu0 %v2867_v44, %s6569_s23  ;;  %2640 = vrot.lane.b32.xlu1 %v2639_v45, %s6570_s11  ;;  %vm2801_vm1 = vmor %vm2800_vm6, %vm2799_vm5  ;;  %vm3164_vm5 = vcmask 894496  }
 0x888   : > { %3233 = vrot.lane.b32.xlu0 %v3232_v51, %s6543_s8  ;;  %3012 = vrot.lane.b32.xlu1 %v3011_v26, %s6548_s13  ;;  %s6572_s8 = smov 24   ;;  %s6573_s13 = smov 26  }
 0x88c   : > { %3161 = vrot.lane.b32.xlu0 %v3160_v4, %s6571_s17  ;;  %2940 = vrot.lane.b32.xlu1 %v2939_v58, %s6533_s20  ;;  %s6574_s20 = smov 64   ;;  %s6283_s17 = smul.u32 56, %s7974_s25 }
 0x890   : > { %3309 = vrot.lane.b32.xlu0 %v3308_v7, %s6572_s8  ;;  %3089 = vrot.lane.b32.xlu1 %v3088_v61, %s6573_s13 }
 0x894   : > { %3686 = vrot.lane.b32.xlu0 %v3685_v20, %s6534_s21  ;;  %3453 = vrot.lane.b32.xlu1 %v3452_v2, %s6528_s16  ;;  %s7948_s16 = smov 22   ;;  %s6576_s21 = smov 104  }
 0x898   : > { %3601 = vrot.lane.b32.xlu0 %v3600_v30, %s6574_s20  ;;  %3381 = vrot.lane.b32.xlu1 %v3380_v21, %s6575_s27  ;;  %s7896_s20 = scalar_lea.vmem %s7915_s7, %s6283_s17 }
 0x89c   : > { %3774 = vrot.lane.b32.xlu0 %v3773_v34, %s6552_s9  ;;  %3529 = vrot.lane.b32.xlu1 %v3528_v8, %s7948_s16  ;;  %s6578_s9 = smov 44  }
 0x8a0   : > { %3918 = vrot.lane.b32.xlu1 %v3917_v49, %s6576_s21 }
 0x8a4   : > { %3846 = vrot.lane.b32.xlu1 %v3845_v33, %s6577_s30 }
 0x8e5   : > { %v3941_v11 = vpop.permute.xlu1 %3940 }
 0x8e6   : > { %v3948_v12 = vpop.permute.xlu0 %3947 }
 0x8e7   : > { %v3949_v17 = vrot.slane %v3948_v12, 6 }
 0x8e9   : > { %v3951_v29 = vsel %vm3950_vm8, %v3949_v17, %v3948_v12  ;;  %vm3018_vm8 = vcmask 1042304  }
 0x8ea   : > { %v2407_v16 = vpop.permute.xlu0 %2406  ;;  %v3931_v63 = vpop.permute.xlu1 %3930 }
 0x8eb   : > { %2410 = vst.msk [vmem:[#allocation7 + $0xa] sm:$0x3] %vm2409_vm7, %v2407_v16  ;;  %v3932_v18 = vrot.slane %v3931_v63, 2  ;;  %vm2643_vm7 = vcmask 582896  }
 0x8ed   : > { %v3934_v6 = vsel %vm3933_vm11, %v3931_v63, %v3932_v18  ;;  %vm2796_vm11 = vcmask 932864  }
 0x8ee   : > { %v2794_v19 = vpop.permute.xlu0 %2793  ;;  %3937 = vst.msk [vmem:[#allocation7] sm:$0x3] %vm3936_vm2, %v3934_v6  ;;  %v2551_v25 = vpop.permute.xlu1 %2550  ;;  %vm2871_vm2 = vcmask 566496  }
 0x8ef   : > { %3944 = vst.msk [vmem:[#allocation7] sm:$0x3] %vm3943_vm3, %v3941_v11  ;;  %v2552_v53 = vrot.slane %v2551_v25, 6  ;;  %v2795_v28 = vrot.slane %v2794_v19, 6  ;;  %vm3019_vm3 = vcmask 207874  }
 0x8f0   : > { %3956 = vst.msk [vmem:[#allocation7] sm:$0xf] %vm3955_vm14, %v3951_v29  ;;  %vm3015_vm14 = vcmask 916480   ;;  %vm3020_vm10 = vmor %vm3019_vm3, %vm3018_vm8  ;;  %vm7950_vm3 = vcmask 883712  }
 0x8f1   : > { %v2554_v22 = vsel %vm2553_vm9, %v2552_v53, %v2551_v25  ;;  %v2797_v24 = vsel %vm2796_vm11, %v2795_v28, %v2794_v19  ;;  %vm3238_vm9 = vcmask 1042288   ;;  %vm7949_vm11 = vcmask 900096  }
 0x8f2   : > { %v2724_v14 = vpop.permute.xlu0 %2723  ;;  %v2479_v13 = vpop.permute.xlu1 %2478 }
 0x8f3   : > { %2482 = vst.msk [vmem:[#allocation7 + $0xa] sm:$0x3] %vm2481_vm12, %v2479_v13  ;;  %vm3239_vm12 = vcmask 191490  }
 0x8f4   : > { %2559 = vst.msk [vmem:[#allocation7 + $0xa] sm:$0xf] %vm2558_vm4, %v2554_v22  ;;  %vm3092_vm4 = vcmask 550096   ;;  %vm3240_vm6 = vmor %vm3239_vm12, %vm3238_vm9  ;;  %vm3689_vm9 = vcmask 867328   ;;  %vm3604_vm12 = vcmask 861696  }
 0x8f6   : > { %v2869_v31 = vpop.permute.xlu0 %2868  ;;  %v2641_v32 = vpop.permute.xlu1 %2640 }
 0x8f7   : > { %2644 = vst.msk [vmem:[#allocation7 + $0xc] sm:$0x3] %vm2643_vm7, %v2641_v32  ;;  %v3957_v36 = vld [vmem:[#allocation7 + $0x2] sm:$0xf]  ;;  %vm3312_vm7 = vcmask 533696  }
 0x8f8   : > { %2727 = vst.msk [vmem:[#allocation7 + $0xc] sm:$0x3] %vm2726_vm0, %v2724_v14  ;;  %3959 = vrot.lane.b32.xlu0 %v3957_v36, %s6578_s9  ;;  %vm3458_vm0 = vcmask 1042272  }
 0x8f9   : > { %2802 = vst.msk [vmem:[#allocation7 + $0xc] sm:$0xf] %vm2801_vm1, %v2797_v24  ;;  %vm3459_vm1 = vcmask 175106  }
 0x8fa   : > { %v3234_v27 = vpop.permute.xlu0 %3233  ;;  %v3013_v39 = vpop.permute.xlu1 %3012  ;;  %2872 = vst.msk [vmem:[#allocation7 + $0xe] sm:$0x3] %vm2871_vm2, %v2869_v31  ;;  %vm3384_vm2 = vcmask 878096   ;;  %vm3460_vm8 = vmor %vm3459_vm1, %vm3458_vm0  ;;  %vm3849_vm0 = vcmask 845296  }
 0x8fb   : > { %v3014_v40 = vrot.slane %v3013_v39, 6  ;;  %v3235_v42 = vrot.slane %v3234_v27, 6 }
 0x8fd   : > { %v3016_v43 = vsel %vm3015_vm14, %v3014_v40, %v3013_v39  ;;  %v3236_v1 = vsel %vm7949_vm11, %v3235_v42, %v3234_v27  ;;  %vm3692_vm14 = vcmask 1042256   ;;  %vm3921_vm11 = vcmask 850944  }
 0x8fe   : > { %v3162_v35 = vpop.permute.xlu0 %3161  ;;  %v2941_v60 = vpop.permute.xlu1 %2940 }
 0x8ff   : > { %2944 = vst.msk [vmem:[#allocation7 + $0xe] sm:$0x3] %vm2943_vm15, %v2941_v60  ;;  %vm3693_vm15 = vcmask 158722  }
 0x900   : > { %3021 = vst.msk [vmem:[#allocation7 + $0xe] sm:$0xf] %vm3020_vm10, %v3016_v43  ;;  %vm3532_vm10 = vcmask 517296  }
 0x902   : > { %v3310_v0 = vpop.permute.xlu0 %3309  ;;  %v3090_v48 = vpop.permute.xlu1 %3089 }
 0x903   : > { %3093 = vst.msk [vmem:[#allocation7 + $0x10] sm:$0x3] %vm3092_vm4, %v3090_v48  ;;  %vm3694_vm4 = vmor %vm3693_vm15, %vm3692_vm14  ;;  %vm3988_vm14 = vcmask 1042224   ;;  %vm3989_vm15 = vcmask 125954  }
 0x904   : > { %3165 = vst.msk [vmem:[#allocation7 + $0x10] sm:$0x3] %vm3164_vm5, %v3162_v35  ;;  %vm3777_vm5 = vcmask 500896  }
 0x905   : > { %3241 = vst.msk [vmem:[#allocation7 + $0x10] sm:$0xf] %vm3240_vm6, %v3236_v1  ;;  %vm3924_vm6 = vcmask 1042240  }
 0x906   : > { %v3687_v23 = vpop.permute.xlu0 %3686  ;;  %v3454_v44 = vpop.permute.xlu1 %3453  ;;  %3313 = vst.msk [vmem:[#allocation7 + $0x12] sm:$0x3] %vm3312_vm7, %v3310_v0  ;;  %vm3925_vm7 = vcmask 142338  }
 0x907   : > { %v4002_v56 = vld [vmem:[#allocation7 + $0x8] sm:$0xff]  ;;  %v3455_v38 = vrot.slane %v3454_v44, 6  ;;  %v3688_v51 = vrot.slane %v3687_v23, 6  ;;  %vm3926_vm1 = vmor %vm3925_vm7, %vm3924_vm6  ;;  %vm4927_vm6 = vcmask 343040   ;;  %vm4074_vm7 = vcmask 1041408  }
 0x908   : > { %v4024_v45 = vcombine.high %v4002_v56, %v4002_v56  ;;  %5779 = vst.sshfl [vmem:[#allocation8 + $0x10] sm:$0xf pattern:$0x76325410] %v4002_v56  ;;  %v4875_v5 = vrot.slane %v4002_v56, %v7279_v37  ;;  %v4540_v54 = vcombine.low %v4002_v56, %v4002_v56 }
 0x909   : > { %v3456_v50 = vsel %vm7950_vm3, %v3455_v38, %v3454_v44  ;;  %v3690_v52 = vsel %vm3689_vm9, %v3688_v51, %v3687_v23  ;;  %vm3972_vm3 = vcmask 484496   ;;  %vm3990_vm9 = vmor %vm3989_vm15, %vm3988_vm14  ;;  %vm7957_vm14 = vcmask 1039360  }
 0x90a   : > { %5780 = vst.sshfl [vmem:[#allocation8 + $0x18] sm:$0xf pattern:$0x76325410] %v4024_v45  ;;  %v3382_v46 = vpop.permute.xlu1 %3381  ;;  %v3602_v47 = vpop.permute.xlu0 %3601  ;;  %v4882_v30 = vrot.slane %v4024_v45, %v7279_v37  ;;  %v4547_v21 = vrot.slane %v4540_v54, %v7279_v37  ;;  %vm7958_vm15 = vcmask 1031168  }
 0x90b   : > { %3385 = vst.msk [vmem:[#allocation7 + $0x12] sm:$0x3] %vm3384_vm2, %v3382_v46  ;;  %vm3962_vm2 = vcmask 359424  }
 0x90c   : > { %3461 = vst.msk [vmem:[#allocation7 + $0x12] sm:$0xf] %vm3460_vm8, %v3456_v50  ;;  %vm3965_vm8 = vcmask 664896  }
 0x90e   : > { %v3530_v26 = vpop.permute.xlu1 %3529  ;;  %v3775_v4 = vpop.permute.xlu0 %3774 }
 0x90f   : > { %3533 = vst.msk [vmem:[#allocation7 + $0x14] sm:$0x3] %vm3532_vm10, %v3530_v26  ;;  %vm3979_vm10 = vcmask 828896  }
 0x910   : > { %3605 = vst.msk [vmem:[#allocation7 + $0x14] sm:$0x3] %vm3604_vm12, %v3602_v47  ;;  %vm3997_vm12 = vcmask 468096  }
 0x911   : > { %3695 = vst.msk [vmem:[#allocation7 + $0x14] sm:$0xf] %vm3694_vm4, %v3690_v52  ;;  %vm7954_vm4 = vcmask 1014784  }
 0x912   : > { %v3919_v55 = vpop.permute.xlu1 %3918  ;;  %3778 = vst.msk [vmem:[#allocation7 + $0x16] sm:$0x3] %vm3777_vm5, %v3775_v4  ;;  %vm3999_vm5 = vcmask 828880  }
 0x913   : > { %v3920_v58 = vrot.slane %v3919_v55, 6 }
 0x915   : > { %v3922_v7 = vsel %vm3921_vm11, %v3920_v58, %v3919_v55  ;;  %vm4075_vm11 = vcmask 128004  }
 0x916   : > { %v3847_v10 = vpop.permute.xlu1 %3846 }
 0x917   : > { %3850 = vst.msk [vmem:[#allocation7 + $0x16] sm:$0x3] %vm3849_vm0, %v3847_v10  ;;  %vm4490_vm0 = vcmask 695296  }
 0x918   : > { %3927 = vst.msk [vmem:[#allocation7 + $0x16] sm:$0xf] %vm3926_vm1, %v3922_v7  ;;  %v3992_v2 = vld [vmem:[#allocation7 + $0x14] sm:$0x3]  ;;  %vm7515_vm1 = vmor %vm4075_vm11, %vm4074_vm7  ;;  %vm5171_vm11 = vcmask 293888  }
 0x91f   : > { %v4003_v59 = vld [vmem:[#allocation7 + $0x10] sm:$0xff] }
 0x920   : > { %v3981_v61 = vld [vmem:[#allocation7 + $0x14] sm:$0xf]  ;;  %v4039_v15 = vcombine.high %v4003_v59, %v4003_v59  ;;  %5781 = vst.sshfl [vmem:[#allocation8 + $0x20] sm:$0xf pattern:$0x76325410] %v4003_v59  ;;  %v7445_v41 = vrot.slane %v4003_v59, %v7279_v37  ;;  %v4555_v8 = vcombine.low %v4003_v59, %v4003_v59 }
 0x921   : > { %v3967_v62 = vld [vmem:[#allocation7 + $0x16] sm:$0x3]  ;;  %3983 = vrot.lane.b32.xlu1 %v3981_v61, %s6532_s19  ;;  %s6581_s19 = smov 85  }
 0x922   : > { %3969 = vrot.lane.b32.xlu0 %v3967_v62, %s6579_s15  ;;  %5782 = vst.sshfl [vmem:[#allocation8 + $0x28] sm:$0xf pattern:$0x76325410] %v4039_v15  ;;  %v3974_v20 = vld [vmem:[#allocation7 + $0x16] sm:$0x3]  ;;  %v7448_v34 = vrot.slane %v4039_v15, %v7279_v37  ;;  %v7459_v9 = vrot.slane %v4555_v8, %v7279_v37 }
 0x925   : > { %3976 = vrot.lane.b32.xlu1 %v3974_v20, %s7951_s14 }
 0x926   : > { %3994 = vrot.lane.b32.xlu0 %v3992_v2, %s6563_s29  ;;  %s6582_s29 = smov 43  }
 0x929   : > { %4909 = vrot.lane.b32.xlu1 %v4875_v5, %s6580_s28 }
 0x92a   : > { %4911 = vrot.lane.b32.xlu0 %v4882_v30, %s6580_s28 }
 0x92d   : > { %4472 = vrot.lane.b32.xlu1 %v4875_v5, %s6581_s19 }
 0x92e   : > { %4474 = vrot.lane.b32.xlu0 %v4882_v30, %s6581_s19 }
 0x931   : > { %4582 = vrot.lane.b32.xlu1 %v4547_v21, %s6579_s15 }
 0x932   : > { %4584 = vrot.lane.b32.xlu0 %v4875_v5, %s6579_s15 }
 0x935   : > { %4691 = vrot.lane.b32.xlu1 %v4875_v5, %s6578_s9 }
 0x936   : > { %4693 = vrot.lane.b32.xlu0 %v4882_v30, %s6578_s9 }
 0x939   : > { %4800 = vrot.lane.b32.xlu1 %v4547_v21, %s6582_s29 }
 0x93a   : > { %4802 = vrot.lane.b32.xlu0 %v4875_v5, %s6582_s29 }
 0x93d   : > { %4143 = vrot.lane.b32.xlu1 %v4547_v21, %s7952_s26 }
 0x93e   : > { %4145 = vrot.lane.b32.xlu0 %v4875_v5, %s7952_s26 }
 0x941   : > { %4254 = vrot.lane.b32.xlu1 %v4875_v5, %s7953_s10 }
 0x942   : > { %4256 = vrot.lane.b32.xlu0 %v4882_v30, %s7953_s10 }
 0x945   : > { %4363 = vrot.lane.b32.xlu1 %v4547_v21, %s6583_s12 }
 0x946   : > { %4365 = vrot.lane.b32.xlu0 %v4875_v5, %s6583_s12 }
 0x949   : > { %4913 = vrot.lane.b32.xlu1 %v7445_v41, %s6580_s28 }
 0x94a   : > { %4915 = vrot.lane.b32.xlu0 %v7448_v34, %s6580_s28 }
 0x94d   : > { %4476 = vrot.lane.b32.xlu1 %v7445_v41, %s6581_s19 }
 0x94e   : > { %4478 = vrot.lane.b32.xlu0 %v7448_v34, %s6581_s19 }
 0x951   : > { %4586 = vrot.lane.b32.xlu1 %v7459_v9, %s6579_s15 }
 0x952   : > { %4588 = vrot.lane.b32.xlu0 %v7445_v41, %s6579_s15 }
 0x96a   : > { %v3960_v49 = vpop.permute.xlu0 %3959 }
 0x96b   : > { %v3961_v3 = vrot.slane %v3960_v49, 2 }
 0x96d   : > { %v3963_v33 = vsel %vm3962_vm2, %v3960_v49, %v3961_v3 }
 0x96e   : > { %3966 = vst.msk [vmem:[#allocation7 + $0x2] sm:$0x3] %vm3965_vm8, %v3963_v33  ;;  %vm4600_vm8 = vcmask 687104  }
 0x975   : > { %v4001_v11 = vld [vmem:[#allocation7] sm:$0xff] }
 0x976   : > { %5777 = vst.sshfl [vmem:[#allocation8] sm:$0xf pattern:$0x76325410] %v4001_v11  ;;  %v4860_v12 = vrot.slane %v4001_v11, %v7279_v37  ;;  %v4853_v16 = vcombine.high %v4001_v11, %v4001_v11  ;;  %v4525_v63 = vcombine.low %v4001_v11, %v4001_v11 }
 0x978   : > { %4905 = vrot.lane.b32.xlu1 %v4860_v12, %s6580_s28  ;;  %4580 = vrot.lane.b32.xlu0 %v4860_v12, %s6579_s15  ;;  %5778 = vst.sshfl [vmem:[#allocation8 + $0x8] sm:$0xf pattern:$0x76325410] %v4853_v16  ;;  %v4532_v17 = vrot.slane %v4525_v63, %v7279_v37  ;;  %v4867_v18 = vrot.slane %v4853_v16, %v7279_v37 }
 0x97c   : > { %4468 = vrot.lane.b32.xlu1 %v4860_v12, %s6581_s19  ;;  %4798 = vrot.lane.b32.xlu0 %v4860_v12, %s6582_s29 }
 0x980   : > { %4687 = vrot.lane.b32.xlu1 %v4860_v12, %s6578_s9  ;;  %4141 = vrot.lane.b32.xlu0 %v4860_v12, %s7952_s26 }
 0x984   : > { %4250 = vrot.lane.b32.xlu1 %v4860_v12, %s7953_s10  ;;  %4361 = vrot.lane.b32.xlu0 %v4860_v12, %s6583_s12 }
 0x988   : > { %4578 = vrot.lane.b32.xlu1 %v4532_v17, %s6579_s15  ;;  %4907 = vrot.lane.b32.xlu0 %v4867_v18, %s6580_s28 }
 0x98c   : > { %4796 = vrot.lane.b32.xlu1 %v4532_v17, %s6582_s29  ;;  %4470 = vrot.lane.b32.xlu0 %v4867_v18, %s6581_s19 }
 0x990   : > { %4139 = vrot.lane.b32.xlu1 %v4532_v17, %s7952_s26  ;;  %4689 = vrot.lane.b32.xlu0 %v4867_v18, %s6578_s9 }
 0x993   : > { %v3984_v6 = vpop.permute.xlu1 %3983 }
 0x994   : > { %v3970_v19 = vpop.permute.xlu0 %3969  ;;  %v3985_v25 = vrot.slane %v3984_v6, 2  ;;  %4359 = vrot.lane.b32.xlu1 %v4532_v17, %s6583_s12  ;;  %4252 = vrot.lane.b32.xlu0 %v4867_v18, %s7953_s10 }
 0x995   : > { %3973 = vst.msk [vmem:[#allocation7 + $0x18] sm:$0x3] %vm3972_vm3, %v3970_v19  ;;  %vm4818_vm3 = vcmask 351232   ;;  %v4990_v19 = vld [vmem:[%s7914_s6] sm:$0x7] }
 0x996   : > { %v3986_v14 = vsel %vm7954_vm4, %v3984_v6, %v3985_v25  ;;  %vm7961_vm4 = vmmov %vm7958_vm15 }
 0x997   : > { %v3977_v29 = vpop.permute.xlu1 %3976 }
 0x998   : > { %v3995_v53 = vpop.permute.xlu0 %3994  ;;  %3980 = vst.msk [vmem:[#allocation7 + $0x18] sm:$0x3] %vm3979_vm10, %v3977_v29  ;;  %4695 = vrot.lane.b32.xlu1 %v7445_v41, %s6578_s9  ;;  %4697 = vrot.lane.b32.xlu0 %v7448_v34, %s6578_s9  ;;  %vm4381_vm10 = vcmask 703488  }
 0x999   : > { %3991 = vst.msk [vmem:[#allocation7 + $0x18] sm:$0xf] %vm3990_vm9, %v3986_v14  ;;  %vm7959_vm9 = vmmov %vm7957_vm14 }
 0x99a   : > { %3998 = vst.msk [vmem:[#allocation7 + $0x1a] sm:$0x3] %vm3997_vm12, %v3995_v53  ;;  %vm7960_vm12 = vmmov %vm7959_vm9 }
 0x99b   : > { %4000 = vst.msk [vmem:[#allocation7 + $0x1a] sm:$0x3] %vm3999_vm5, %v6531_v57  ;;  %v7491_v13 = vpop.permute.xlu1 %4909  ;;  %vm7962_vm5 = vmmov %vm7961_vm4 }
 0x99c   : > { %v7493_v22 = vpop.permute.xlu0 %4911  ;;  %v4921_v28 = vrot.slane %v7491_v13, 4  ;;  %4804 = vrot.lane.b32.xlu1 %v7459_v9, %s6582_s29  ;;  %4806 = vrot.lane.b32.xlu0 %v7445_v41, %s6582_s29 }
 0x99d   : > { %v4922_v31 = vrot.slane %v7493_v22, 4 }
 0x99f   : > { %v4931_v32 = vsel %vm629_vm13, %v4921_v28, %v4922_v31  ;;  %v7508_v24 = vpop.permute.xlu1 %4472 }
 0x9a0   : > { %v4932_v36 = vsel %vm4927_vm6, %v7491_v13, %v4931_v32  ;;  %v7510_v27 = vpop.permute.xlu0 %4474  ;;  %v4484_v39 = vrot.slane %v7508_v24, 4  ;;  %4147 = vrot.lane.b32.xlu1 %v7459_v9, %s7952_s26  ;;  %4149 = vrot.lane.b32.xlu0 %v7445_v41, %s7952_s26  ;;  %v6448_v4 = vld [vmem:[#allocation7 + $0x18] ss:$0 sps:$4 sm:$0xff]  }
 0x9a1   : > { %4949 = vst [vmem:[#allocation8 + $0xf0] sm:$0x33] %v4932_v36  ;;  %v4485_v40 = vrot.slane %v7510_v27, 4  ;;  %v4577_v62 = vrot.slane %v6448_v4, %v7279_v37  ;;  %v6449_v15 = vld [vmem:[#allocation7 + $0x18] ss:$0 sps:$4 sm:$0xff]  }
 0x9a2   : > { %v7528_v43 = vld.sshfl [vmem:[#allocation7 + $0x18] sm:$0x33 pattern:$0x76325410] }
 0x9a3   : > { %v4494_v60 = vsel %vm629_vm13, %v4484_v39, %v4485_v40  ;;  %v7532_v0 = vpop.permute.xlu1 %4582  ;;  %4077 = vst.msk [vmem:[#allocation8 + $0x30] sm:$0x33] %vm7515_vm1, %v7528_v43  ;;  %v6450_v20 = vld [vmem:[#allocation7 + $0x18] ss:$0 sps:$4 sm:$0xff]  }
 0x9a4   : > { %v4495_v42 = vsel %vm4490_vm0, %v7508_v24, %v4494_v60  ;;  %v7534_v48 = vpop.permute.xlu0 %4584  ;;  %v4594_v1 = vrot.slane %v7532_v0, 4  ;;  %4258 = vrot.lane.b32.xlu1 %v7445_v41, %s7953_s10  ;;  %4260 = vrot.lane.b32.xlu0 %v7448_v34, %s7953_s10  ;;  %v4795_v34 = vrot.slane %v6449_v15, %v7279_v37  ;;  %v4138_v8 = vrot.slane %v6450_v20, %v7279_v37 }
 0x9a5   : > { %4512 = vst [vmem:[#allocation8 + $0x80] sm:$0x33] %v4495_v42  ;;  %v4595_v23 = vrot.slane %v7534_v48, 4 }
 0x9a7   : > { %v4604_v44 = vsel %vm629_vm13, %v4594_v1, %v4595_v23  ;;  %v7552_v38 = vpop.permute.xlu1 %4691 }
 0x9a8   : > { %v4605_v56 = vsel %vm4600_vm8, %v7532_v0, %v4604_v44  ;;  %v7554_v45 = vpop.permute.xlu0 %4693  ;;  %v4703_v46 = vrot.slane %v7552_v38, 4  ;;  %4367 = vrot.lane.b32.xlu1 %v7459_v9, %s6583_s12  ;;  %4369 = vrot.lane.b32.xlu0 %v7445_v41, %s6583_s12  ;;  %v6451_v9 = vld [vmem:[#allocation7 + $0x18] ss:$0 sps:$4 sm:$0xff]  }
 0x9a9   : > { %4622 = vst [vmem:[#allocation8 + $0x80] sm:$0xcc] %v4605_v56  ;;  %v4704_v50 = vrot.slane %v7554_v45, 4  ;;  %v4358_v63 = vrot.slane %v6451_v9, %v7279_v37 }
 0x9ab   : > { %v4712_v47 = vsel %vm629_vm13, %v4703_v46, %v4704_v50  ;;  %v7569_v26 = vpop.permute.xlu1 %4800 }
 0x9ac   : > { %v4713_v51 = vsel %vm3962_vm2, %v7552_v38, %v4712_v47  ;;  %v7571_v52 = vpop.permute.xlu0 %4802  ;;  %v4812_v55 = vrot.slane %v7569_v26, 4  ;;  %4917 = vrot.lane.b32.xlu1 %v7528_v43, %s6580_s28  ;;  %4480 = vrot.lane.b32.xlu0 %v7528_v43, %s6581_s19 }
 0x9ad   : > { %4730 = vst [vmem:[#allocation8 + $0xb8] sm:$0x33] %v4713_v51  ;;  %v4813_v58 = vrot.slane %v7571_v52, 4 }
 0x9af   : > { %v4822_v10 = vsel %vm629_vm13, %v4812_v55, %v4813_v58  ;;  %v7586_v59 = vpop.permute.xlu1 %4143 }
 0x9b0   : > { %v4823_v7 = vsel %vm4818_vm3, %v7569_v26, %v4822_v10  ;;  %v7588_v61 = vpop.permute.xlu0 %4145  ;;  %v4155_v2 = vrot.slane %v7586_v59, 4  ;;  %4590 = vrot.lane.b32.xlu1 %v4577_v62, %s6579_s15  ;;  %4699 = vrot.lane.b32.xlu0 %v7528_v43, %s6578_s9 }
 0x9b1   : > { %4840 = vst [vmem:[#allocation8 + $0xb8] sm:$0xcc] %v4823_v7  ;;  %v4156_v5 = vrot.slane %v7588_v61, 4 }
 0x9b3   : > { %v4164_v30 = vsel %vm629_vm13, %v4155_v2, %v4156_v5  ;;  %v7603_v21 = vpop.permute.xlu1 %4254 }
 0x9b4   : > { %v4165_v54 = vsel %vm7957_vm14, %v7586_v59, %v4164_v30  ;;  %v7605_v41 = vpop.permute.xlu0 %4256  ;;  %v4266_v49 = vrot.slane %v7603_v21, 4  ;;  %4808 = vrot.lane.b32.xlu1 %v4795_v34, %s6582_s29  ;;  %4151 = vrot.lane.b32.xlu0 %v4138_v8, %s7952_s26  ;;  %vm7963_vm14 = vmmov %vm7959_vm9 }
 0x9b5   : > { %4182 = vst [vmem:[#allocation8 + $0x10] sm:$0xcc] %v4165_v54  ;;  %v4267_v3 = vrot.slane %v7605_v41, 4 }
 0x9b7   : > { %v4275_v33 = vsel %vm629_vm13, %v4266_v49, %v4267_v3  ;;  %v7620_v12 = vpop.permute.xlu1 %4363 }
 0x9b8   : > { %v4276_v11 = vsel %vm7958_vm15, %v7603_v21, %v4275_v33  ;;  %v7622_v16 = vpop.permute.xlu0 %4365  ;;  %v4375_v17 = vrot.slane %v7620_v12, 4  ;;  %4262 = vrot.lane.b32.xlu1 %v7528_v43, %s7953_s10  ;;  %4371 = vrot.lane.b32.xlu0 %v4358_v63, %s6583_s12  ;;  %vm7964_vm15 = vmmov %vm7959_vm9 }
 0x9b9   : > { %4293 = vst [vmem:[#allocation8 + $0x48] sm:$0x33] %v4276_v11  ;;  %v4376_v18 = vrot.slane %v7622_v16, 4 }
 0x9bb   : > { %v4385_v6 = vsel %vm629_vm13, %v4375_v17, %v4376_v18  ;;  %v4914_v25 = vpop.permute.xlu1 %4913 }
 0x9bc   : > { %v4386_v37 = vsel %vm4381_vm10, %v7620_v12, %v4385_v6  ;;  %v7638_v29 = vpop.permute.xlu0 %4915  ;;  %v4923_v53 = vrot.slane %v4914_v25, 4  ;;  %4993 = vperm.xlu1 %6362, %v4990_v19  }
 0x9bd   : > { %4403 = vst [vmem:[#allocation8 + $0x48] sm:$0xcc] %v4386_v37  ;;  %v4924_v14 = vrot.slane %v7638_v29, 4 }
 0x9be   : > { %v4933_v32 = vsel %vm629_vm13, %v4922_v31, %v4923_v53 }
 0x9bf   : > { %v4935_v36 = vsel %vm629_vm13, %v4923_v53, %v4924_v14  ;;  %v4934_v60 = vsel %vm4927_vm6, %v7493_v22, %v4933_v32  ;;  %v4477_v42 = vpop.permute.xlu1 %4476 }
 0x9c0   : > { %v4936_v43 = vsel %vm4927_vm6, %v4914_v25, %v4935_v36  ;;  %v7650_v44 = vpop.permute.xlu0 %4478  ;;  %4950 = vst [vmem:[#allocation8 + $0xf8] sm:$0x33] %v4934_v60  ;;  %v4486_v56 = vrot.slane %v4477_v42, 4 }
 0x9c1   : > { %4951 = vst [vmem:[#allocation8 + $0x100] sm:$0x33] %v4936_v43  ;;  %v4487_v47 = vrot.slane %v7650_v44, 4 }
 0x9c2   : > { %v4496_v31 = vsel %vm629_vm13, %v4485_v40, %v4486_v56 }
 0x9c3   : > { %v4498_v51 = vsel %vm629_vm13, %v4486_v56, %v4487_v47  ;;  %v4497_v22 = vsel %vm4490_vm0, %v7510_v27, %v4496_v31  ;;  %v4587_v10 = vpop.permute.xlu1 %4586 }
 0x9c4   : > { %v4499_v4 = vsel %vm4490_vm0, %v4477_v42, %v4498_v51  ;;  %v7662_v7 = vpop.permute.xlu0 %4588  ;;  %4513 = vst [vmem:[#allocation8 + $0x88] sm:$0x33] %v4497_v22  ;;  %v4596_v62 = vrot.slane %v4587_v10, 4 }
 0x9c5   : > { %4514 = vst [vmem:[#allocation8 + $0x90] sm:$0x33] %v4499_v4  ;;  %v4597_v15 = vrot.slane %v7662_v7, 4 }
 0x9c6   : > { %v4606_v40 = vsel %vm629_vm13, %v4595_v23, %v4596_v62 }
 0x9c7   : > { %v4608_v20 = vsel %vm629_vm13, %v4596_v62, %v4597_v15  ;;  %v4607_v27 = vsel %vm4600_vm8, %v7534_v48, %v4606_v40 }
 0x9c8   : > { %v4609_v30 = vsel %vm4600_vm8, %v4587_v10, %v4608_v20  ;;  %4623 = vst [vmem:[#allocation8 + $0x88] sm:$0xcc] %v4607_v27 }
 0x9c9   : > { %4624 = vst [vmem:[#allocation8 + $0x90] sm:$0xcc] %v4609_v30 }
 0x9ea   : > { %v4906_v54 = vpop.permute.xlu1 %4905  ;;  %v4581_v34 = vpop.permute.xlu0 %4580 }
 0x9eb   : > { %v4593_v8 = vrot.slane %v4581_v34, 4  ;;  %v4919_v43 = vrot.slane %v4906_v54, 4 }
 0x9ed   : > { %v4602_v9 = vsel %vm629_vm13, %v4593_v8, %v4594_v1 }
 0x9ee   : > { %v4603_v23 = vsel %vm4600_vm8, %v4581_v34, %v4602_v9  ;;  %v4469_v33 = vpop.permute.xlu1 %4468  ;;  %v4799_v11 = vpop.permute.xlu0 %4798 }
 0x9ef   : > { %4621 = vst [vmem:[#allocation8 + $0x78] sm:$0xcc] %v4603_v23  ;;  %v4811_v12 = vrot.slane %v4799_v11, 4  ;;  %v4482_v62 = vrot.slane %v4469_v33, 4 }
 0x9f1   : > { %v4820_v48 = vsel %vm629_vm13, %v4811_v12, %v4812_v55 }
 0x9f2   : > { %v4821_v63 = vsel %vm4818_vm3, %v4799_v11, %v4820_v48  ;;  %v4688_v6 = vpop.permute.xlu1 %4687  ;;  %v4142_v19 = vpop.permute.xlu0 %4141 }
 0x9f3   : > { %4839 = vst [vmem:[#allocation8 + $0xb0] sm:$0xcc] %v4821_v63  ;;  %v4154_v37 = vrot.slane %v4142_v19, 4  ;;  %v4701_v23 = vrot.slane %v4688_v6, 4 }
 0x9f5   : > { %v4162_v0 = vsel %vm629_vm13, %v4154_v37, %v4155_v2 }
 0x9f6   : > { %v4163_v1 = vsel %vm7959_vm9, %v4142_v19, %v4162_v0  ;;  %v7686_v25 = vpop.permute.xlu1 %4250  ;;  %v4362_v53 = vpop.permute.xlu0 %4361  ;;  %vm7965_vm9 = vmmov %vm7961_vm4 }
 0x9f7   : > { %4181 = vst [vmem:[#allocation8 + $0x8] sm:$0xcc] %v4163_v1  ;;  %v4374_v32 = vrot.slane %v4362_v53, 4 }
 0x9f9   : > { %v4383_v26 = vsel %vm629_vm13, %v4374_v32, %v4375_v17 }
 0x9fa   : > { %v4384_v55 = vsel %vm4381_vm10, %v4362_v53, %v4383_v26  ;;  %v4579_v36 = vpop.permute.xlu1 %4578  ;;  %v4908_v60 = vpop.permute.xlu0 %4907 }
 0x9fb   : > { %4402 = vst [vmem:[#allocation8 + $0x40] sm:$0xcc] %v4384_v55  ;;  %v4592_v42 = vrot.slane %v4579_v36, 4  ;;  %v4920_v56 = vrot.slane %v4908_v60, 4 }
 0x9fd   : > { %v4599_v59 = vsel %vm629_vm13, %v4592_v42, %v4593_v8  ;;  %v4926_v2 = vsel %vm629_vm13, %v4919_v43, %v4920_v56  ;;  %v4929_v31 = vsel %vm629_vm13, %v4920_v56, %v4921_v28 }
 0x9fe   : > { %v4601_v51 = vsel %vm4600_vm8, %v4579_v36, %v4599_v59  ;;  %v4928_v17 = vsel %vm4927_vm6, %v4906_v54, %v4926_v2  ;;  %v4930_v22 = vsel %vm4927_vm6, %v4908_v60, %v4929_v31  ;;  %v4797_v4 = vpop.permute.xlu1 %4796  ;;  %v4471_v10 = vpop.permute.xlu0 %4470 }
 0x9ff   : > { %4620 = vst [vmem:[#allocation8 + $0x70] sm:$0xcc] %v4601_v51  ;;  %4947 = vst [vmem:[#allocation8 + $0xe0] sm:$0x33] %v4928_v17  ;;  %v4810_v40 = vrot.slane %v4797_v4, 4  ;;  %v4483_v20 = vrot.slane %v4471_v10, 4 }
 0xa00   : > { %4948 = vst [vmem:[#allocation8 + $0xe8] sm:$0x33] %v4930_v22 }
 0xa01   : > { %v4817_v27 = vsel %vm629_vm13, %v4810_v40, %v4811_v12  ;;  %v4489_v13 = vsel %vm629_vm13, %v4482_v62, %v4483_v20  ;;  %v4492_v28 = vsel %vm629_vm13, %v4483_v20, %v4484_v39 }
 0xa02   : > { %v4819_v30 = vsel %vm4818_vm3, %v4797_v4, %v4817_v27  ;;  %v4491_v54 = vsel %vm4490_vm0, %v4469_v33, %v4489_v13  ;;  %v4493_v34 = vsel %vm4490_vm0, %v4471_v10, %v4492_v28  ;;  %v4140_v8 = vpop.permute.xlu1 %4139  ;;  %v4690_v9 = vpop.permute.xlu0 %4689  ;;  %v4264_v33 = vrot.slane %v7686_v25, 4 }
 0xa03   : > { %4838 = vst [vmem:[#allocation8 + $0xa8] sm:$0xcc] %v4819_v30  ;;  %4510 = vst [vmem:[#allocation8 + $0x70] sm:$0x33] %v4491_v54  ;;  %v4153_v11 = vrot.slane %v4140_v8, 4  ;;  %v4702_v12 = vrot.slane %v4690_v9, 4 }
 0xa04   : > { %4511 = vst [vmem:[#allocation8 + $0x78] sm:$0x33] %v4493_v34 }
 0xa05   : > { %v4160_v48 = vsel %vm629_vm13, %v4153_v11, %v4154_v37  ;;  %v4708_v24 = vsel %vm629_vm13, %v4701_v23, %v4702_v12  ;;  %v4710_v39 = vsel %vm629_vm13, %v4702_v12, %v4703_v46 }
 0xa06   : > { %v4161_v63 = vsel %vm7960_vm12, %v4140_v8, %v4160_v48  ;;  %v4709_v19 = vsel %vm3962_vm2, %v4688_v6, %v4708_v24  ;;  %v4711_v0 = vsel %vm3962_vm2, %v4690_v9, %v4710_v39  ;;  %v4360_v1 = vpop.permute.xlu1 %4359  ;;  %v4253_v53 = vpop.permute.xlu0 %4252  ;;  %v4983_v26 = vld [vmem:[#allocation8 + $0xe0] sm:$0x33]  ;;  %v4985_v8 = vld [vmem:[#allocation8 + $0xf0] sm:$0x33]  ;;  %v4986_v9 = vld [vmem:[#allocation8 + $0xf8] sm:$0x33] }
 0xa07   : > { %v4984_v55 = vld [vmem:[#allocation8 + $0xe8] sm:$0x33]  ;;  %4180 = vst [vmem:[#allocation8] sm:$0xcc] %v4161_v63  ;;  %4728 = vst [vmem:[#allocation8 + $0xa8] sm:$0x33] %v4709_v19  ;;  %v5816_v38 = vcombine.high %v4983_v26, %v4983_v26  ;;  %v5815_v46 = vcombine.low %v4983_v26, %v4983_v26  ;;  %v5822_v26 = vcombine.high %v4986_v9, %v4986_v9 }
 0xa08   : > { %4729 = vst [vmem:[#allocation8 + $0xb0] sm:$0x33] %v4711_v0  ;;  %v4373_v37 = vrot.slane %v4360_v1, 4  ;;  %v4265_v36 = vrot.slane %v4253_v53, 4  ;;  %v5818_v60 = vcombine.high %v4984_v55, %v4984_v55  ;;  %v5817_v43 = vcombine.low %v4984_v55, %v4984_v55  ;;  %v7764_v55 = vld [vmem:[%s7913_s5] sm:$0x3]  ;;  %vm7966_vm12 = vmmov %vm7961_vm4 }
 0xa09   : > { %5829 = vmatprep.subr.msk.bf16.mxu1 %vm4074_vm7, %v5816_v38  ;;  %v5820_v0 = vcombine.high %v4985_v8, %v4985_v8 }
 0xa0a   : > { %v4380_v42 = vsel %vm629_vm13, %v4373_v37, %v4374_v32  ;;  %v4271_v56 = vsel %vm629_vm13, %v4264_v33, %v4265_v36  ;;  %v4273_v6 = vsel %vm629_vm13, %v4265_v36, %v4266_v49  ;;  %5831 = vmatprep.subr.msk.bf16.mxu0 %vm4074_vm7, %v5818_v60  ;;  %v4696_v51 = vpop.permute.xlu1 %4695  ;;  %v5176_v32 = vsel %vm4074_vm7, %v5815_v46, 0  ;;  %v7727_v17 = vpop.permute.xlu0 %4697 }
 0xa0b   : > { %v4382_v59 = vsel %vm4381_vm10, %v4360_v1, %v4380_v42  ;;  %v4272_v2 = vsel %vm7961_vm4, %v7686_v25, %v4271_v56  ;;  %v4274_v31 = vsel %vm7962_vm5, %v4253_v53, %v4273_v6  ;;  %v4705_v21 = vrot.slane %v4696_v51, 4  ;;  %5228 = vmatpush1.bf16.msra.mxu1 %v5176_v32  ;;  %v6474_v42 = vld [vmem:[#allocation8 + $0x84] ss:$56 sps:$4 sm:$0xff]  }
 0xa0c   : > { %4401 = vst [vmem:[#allocation8 + $0x38] sm:$0xcc] %v4382_v59  ;;  %4291 = vst [vmem:[#allocation8 + $0x38] sm:$0x33] %v4272_v2  ;;  %v5182_v49 = vsel %vm4074_vm7, %v5817_v43, 0  ;;  %v4706_v22 = vrot.slane %v7727_v17, 4  ;;  %v5819_v1 = vcombine.low %v4985_v8, %v4985_v8  ;;  %v5821_v60 = vcombine.low %v4986_v9, %v4986_v9 }
 0xa0d   : > { %4292 = vst [vmem:[#allocation8 + $0x40] sm:$0x33] %v4274_v31  ;;  %5269 = vmatpush1.bf16.msra.mxu0 %v5182_v49  ;;  %v4714_v25 = vsel %vm629_vm13, %v4704_v50, %v4705_v21  ;;  %vm4186_vm4 = vcmask 1043458   ;;  %vm4187_vm5 = vcmask 130054  }
 0xa0e   : > { %v4716_v4 = vsel %vm629_vm13, %v4705_v21, %v4706_v22  ;;  %v4715_v10 = vsel %vm3962_vm2, %v7554_v45, %v4714_v25  ;;  %v4805_v40 = vpop.permute.xlu1 %4804  ;;  %v7740_v20 = vpop.permute.xlu0 %4806  ;;  %v6456_v27 = vld [vmem:[#allocation8 + $0x70] ss:$56 sps:$4 sm:$0xff]   ;;  %v6458_v13 = vld [vmem:[#allocation8 + $0x74] ss:$56 sps:$4 sm:$0xff]  }
 0xa0f   : > { %v4717_v62 = vsel %vm3962_vm2, %v4696_v51, %v4716_v4  ;;  %4731 = vst [vmem:[#allocation8 + $0xc0] sm:$0x33] %v4715_v10  ;;  %v4814_v28 = vrot.slane %v4805_v40, 4  ;;  %v4815_v30 = vrot.slane %v7740_v20, 4  ;;  %v6459_v50 = vld [vmem:[#allocation8 + $0x78] ss:$56 sps:$4 sm:$0xff]   ;;  %5229 = vmatprep.subr.bf16.mxu1 %v6458_v13 }
 0xa10   : > { %4732 = vst [vmem:[#allocation8 + $0xc8] sm:$0x33] %v4717_v62  ;;  %v6461_v54 = vld [vmem:[#allocation8 + $0x7c] ss:$56 sps:$4 sm:$0xff]   ;;  %5230 = vmatpush1.bf16.msra.mxu1 %v6456_v27  ;;  %v5194_v51 = vsel %vm4074_vm7, %v5821_v60, 0 }
 0xa11   : > { %v4824_v34 = vsel %vm629_vm13, %v4813_v58, %v4814_v28  ;;  %v4826_v45 = vsel %vm629_vm13, %v4814_v28, %v4815_v30  ;;  %5270 = vmatprep.subr.bf16.mxu0 %v6461_v54  ;;  %v6480_v4 = vld [vmem:[#allocation8 + $0x14] ss:$56 sps:$4 sm:$0xff]  }
 0xa12   : > { %v4825_v23 = vsel %vm4818_vm3, %v7571_v52, %v4824_v34  ;;  %v4827_v11 = vsel %vm4818_vm3, %v4805_v40, %v4826_v45  ;;  %v4148_v12 = vpop.permute.xlu1 %4147  ;;  %v7752_v48 = vpop.permute.xlu0 %4149  ;;  %5271 = vmatpush1.bf16.msra.mxu0 %v6459_v50  ;;  %v4987_v40 = vld [vmem:[#allocation8 + $0x100] sm:$0x33] }
 0xa13   : > { %v6462_v24 = vld [vmem:[#allocation8] ss:$56 sps:$4 sm:$0xff]   ;;  %v6464_v39 = vld [vmem:[#allocation8 + $0x4] ss:$56 sps:$4 sm:$0xff]   ;;  %4841 = vst [vmem:[#allocation8 + $0xc0] sm:$0xcc] %v4825_v23  ;;  %v5824_v45 = vcombine.high %v4987_v40, %v4987_v40  ;;  %v5823_v8 = vcombine.low %v4987_v40, %v4987_v40 }
 0xa14   : > { %4842 = vst [vmem:[#allocation8 + $0xc8] sm:$0xcc] %v4827_v11  ;;  %v4157_v58 = vrot.slane %v4148_v12, 4  ;;  %v4158_v33 = vrot.slane %v7752_v48, 4  ;;  %v6465_v63 = vld [vmem:[#allocation8 + $0x8] ss:$56 sps:$4 sm:$0xff]   ;;  %5231 = vmatprep.subr.bf16.mxu1 %v6464_v39 }
 0xa15   : > { %v6467_v19 = vld [vmem:[#allocation8 + $0xc] ss:$56 sps:$4 sm:$0xff]   ;;  %5232 = vmatpush1.bf16.msra.mxu1 %v6462_v24 }
 0xa16   : > { %v4166_v52 = vsel %vm629_vm13, %v4156_v5, %v4157_v58  ;;  %v4168_v53 = vsel %vm629_vm13, %v4157_v58, %v4158_v33  ;;  %5272 = vmatprep.subr.bf16.mxu0 %v6467_v19  ;;  %v4259_v38 = vpop.permute.xlu1 %4258  ;;  %v7769_v5 = vpop.permute.xlu0 %4260  ;;  %5833 = vmatprep.subr.msk.bf16.mxu1 %vm4074_vm7, %v5820_v0 }
 0xa17   : > { %v4167_v37 = vsel %vm7963_vm14, %v7588_v61, %v4166_v52  ;;  %v4169_v36 = vsel %vm7964_vm15, %v4148_v12, %v4168_v53  ;;  %v4268_v46 = vrot.slane %v4259_v38, 4  ;;  %5273 = vmatpush1.bf16.msra.mxu0 %v6465_v63  ;;  %v4269_v43 = vrot.slane %v7769_v5, 4  ;;  %vm7822_vm14 = vmor %vm4187_vm5, %vm4186_vm4 }
 0xa18   : > { %4183 = vst [vmem:[#allocation8 + $0x18] sm:$0xcc] %v4167_v37  ;;  %4184 = vst [vmem:[#allocation8 + $0x20] sm:$0xcc] %v4169_v36  ;;  %5835 = vmatprep.subr.msk.bf16.mxu0 %vm4074_vm7, %v5822_v26  ;;  %5830 = vmatmul.mubr.msk.bf16.vlgmr.msra.gmra.mxu1 %vm5171_vm11, %v7764_v55  ;;  %v5188_v61 = vsel %vm4074_vm7, %v5819_v1, 0 }
 0xa19   : > { %v4277_v56 = vsel %vm629_vm13, %v4267_v3, %v4268_v46  ;;  %v4279_v6 = vsel %vm629_vm13, %v4268_v46, %v4269_v43  ;;  %5310 = vmatpush1.bf16.msra.mxu1 %v5188_v61  ;;  %5331 = vmatprep.mubr.bf16.mxu1 %v6531_v57  ;;  %v6472_v3 = vld [vmem:[#allocation8 + $0x80] ss:$56 sps:$4 sm:$0xff]  }
 0xa1a   : > { %v4278_v59 = vsel %vm7965_vm9, %v7605_v41, %v4277_v56  ;;  %v4280_v2 = vsel %vm7966_vm12, %v4259_v38, %v4279_v6  ;;  %5832 = vmatmul.mubr.msk.bf16.vlgmr.msra.gmra.mxu0 %vm5171_vm11, %v7764_v55  ;;  %v4368_v31 = vpop.permute.xlu1 %4367  ;;  %v7790_v32 = vpop.permute.xlu0 %4369  ;;  %5311 = vmatprep.subr.bf16.mxu1 %v6474_v42  ;;  %v6477_v21 = vld [vmem:[#allocation8 + $0x8c] ss:$56 sps:$4 sm:$0xff]   ;;  %v6475_v41 = vld [vmem:[#allocation8 + $0x88] ss:$56 sps:$4 sm:$0xff]  }
 0xa1b   : > { %4294 = vst [vmem:[#allocation8 + $0x50] sm:$0x33] %v4278_v59  ;;  %4295 = vst [vmem:[#allocation8 + $0x58] sm:$0x33] %v4280_v2  ;;  %v4377_v49 = vrot.slane %v4368_v31, 4  ;;  %5351 = vmatpush1.bf16.msra.mxu0 %v5194_v51  ;;  %v4378_v25 = vrot.slane %v7790_v32, 4  ;;  %5372 = vmatprep.mubr.bf16.mxu0 %v6531_v57 }
 0xa1c   : > { %5352 = vmatprep.subr.bf16.mxu0 %v6477_v21  ;;  %v6484_v63 = vld [vmem:[#allocation8 + $0x94] ss:$56 sps:$4 sm:$0xff]   ;;  %v6482_v60 = vld [vmem:[#allocation8 + $0x90] ss:$56 sps:$4 sm:$0xff]  }
 0xa1d   : > { %v4387_v10 = vsel %vm629_vm13, %v4376_v18, %v4377_v49  ;;  %v4389_v62 = vsel %vm629_vm13, %v4377_v49, %v4378_v25  ;;  %5312 = vmatpush1.bf16.msra.mxu1 %v6472_v3  ;;  %v6478_v18 = vld [vmem:[#allocation8 + $0x10] ss:$56 sps:$4 sm:$0xff]  }
 0xa1e   : > { %v4388_v27 = vsel %vm4381_vm10, %v7622_v16, %v4387_v10  ;;  %v4390_v13 = vsel %vm4381_vm10, %v4368_v31, %v4389_v62  ;;  %v4918_v28 = vpop.permute.xlu1 %4917  ;;  %v4481_v50 = vpop.permute.xlu0 %4480  ;;  %5313 = vmatprep.subr.bf16.mxu1 %v6480_v4 }
 0xa1f   : > { %4404 = vst [vmem:[#allocation8 + $0x50] sm:$0xcc] %v4388_v27  ;;  %4405 = vst [vmem:[#allocation8 + $0x58] sm:$0xcc] %v4390_v13  ;;  %v4925_v54 = vrot.slane %v4918_v28, 4  ;;  %5353 = vmatpush1.bf16.msra.mxu0 %v6475_v41  ;;  %v4488_v34 = vrot.slane %v4481_v50, 4 }
 0xa21   : > { %v4937_v9 = vsel %vm629_vm13, %v4924_v14, %v4925_v54  ;;  %v4939_v16 = vsel %vm4927_vm6, %v4918_v28, %v4925_v54  ;;  %v4500_v23 = vsel %vm629_vm13, %v4487_v47, %v4488_v34  ;;  %v4502_v11 = vsel %vm4490_vm0, %v4481_v50, %v4488_v34  ;;  %5314 = vmatpush1.bf16.msra.mxu1 %v6478_v18 }
 0xa22   : > { %v4938_v12 = vsel %vm4927_vm6, %v7638_v29, %v4937_v9  ;;  %4953 = vst.msk [vmem:[#allocation8 + $0x110] sm:$0x33] %vm7515_vm1, %v4939_v16  ;;  %v4501_v24 = vsel %vm4490_vm0, %v7650_v44, %v4500_v23  ;;  %4516 = vst.msk [vmem:[#allocation8 + $0xa0] sm:$0x33] %vm7515_vm1, %v4502_v11  ;;  %v4591_v14 = vpop.permute.xlu1 %4590  ;;  %v4700_v39 = vpop.permute.xlu0 %4699  ;;  %5837 = vmatprep.subr.msk.bf16.mxu1 %vm4074_vm7, %v5824_v45  ;;  %v5200_v44 = vsel %vm4074_vm7, %v5823_v8, 0 }
 0xa23   : > { %4952 = vst [vmem:[#allocation8 + $0x108] sm:$0x33] %v4938_v12  ;;  %4515 = vst [vmem:[#allocation8 + $0x98] sm:$0x33] %v4501_v24  ;;  %v4598_v29 = vrot.slane %v4591_v14, 4  ;;  %v4707_v58 = vrot.slane %v4700_v39, 4 }
 0xa24   : > { %5834 = vmatmul.mubr.msk.bf16.vlgmr.msra.gmra.mxu1 %vm5171_vm11, %v7764_v55  ;;  %vm7971_vm0 = vmmov %vm7965_vm9 }
 0xa25   : > { %v4610_v19 = vsel %vm629_vm13, %v4597_v15, %v4598_v29  ;;  %v4612_v0 = vsel %vm4600_vm8, %v4591_v14, %v4598_v29  ;;  %v4718_v1 = vsel %vm629_vm13, %v4706_v22, %v4707_v58  ;;  %v4720_v52 = vsel %vm3962_vm2, %v4700_v39, %v4707_v58  ;;  %5392 = vmatpush1.bf16.msra.mxu1 %v5200_v44 }
 0xa26   : > { %v4611_v53 = vsel %vm4600_vm8, %v7662_v7, %v4610_v19  ;;  %4626 = vst.msk [vmem:[#allocation8 + $0xa0] sm:$0xcc] %vm7822_vm14, %v4612_v0  ;;  %v4719_v26 = vsel %vm3962_vm2, %v7727_v17, %v4718_v1  ;;  %v4809_v15 = vpop.permute.xlu1 %4808  ;;  %v4152_v37 = vpop.permute.xlu0 %4151  ;;  %5393 = vmatprep.subr.bf16.mxu1 %v6484_v63  ;;  %v6485_v36 = vld [vmem:[#allocation8 + $0x18] ss:$56 sps:$4 sm:$0xff]   ;;  %v6487_v22 = vld [vmem:[#allocation8 + $0x1c] ss:$56 sps:$4 sm:$0xff]   ;;  %5413 = vmatprep.mubr.bf16.mxu1 %v6531_v57  ;;  %vm7969_vm2 = vmmov %vm7964_vm15 }
 0xa27   : > { %4734 = vst.msk [vmem:[#allocation8 + $0xd8] sm:$0x33] %vm7515_vm1, %v4720_v52  ;;  %4625 = vst [vmem:[#allocation8 + $0x98] sm:$0xcc] %v4611_v53  ;;  %v4816_v38 = vrot.slane %v4809_v15, 4  ;;  %v4159_v7 = vrot.slane %v4152_v37, 4  ;;  %5354 = vmatprep.subr.bf16.mxu0 %v6487_v22 }
 0xa28   : > { %4733 = vst [vmem:[#allocation8 + $0xd0] sm:$0x33] %v4719_v26  ;;  %5355 = vmatpush1.bf16.msra.mxu0 %v6485_v36  ;;  %v6490_v56 = vld [vmem:[#allocation8 + $0x24] ss:$56 sps:$4 sm:$0xff]   ;;  %vm7970_vm6 = vmmov %vm7969_vm2  ;;  %v6488_v49 = vld [vmem:[#allocation8 + $0x20] ss:$56 sps:$4 sm:$0xff]  }
 0xa29   : > { %v4828_v17 = vsel %vm629_vm13, %v4815_v30, %v4816_v38  ;;  %v4830_v46 = vsel %vm4818_vm3, %v4809_v15, %v4816_v38  ;;  %v4170_v61 = vsel %vm629_vm13, %v4158_v33, %v4159_v7  ;;  %v4172_v42 = vsel %vm7969_vm2, %v4152_v37, %v4159_v7  ;;  %v4989_v6 = vld [vmem:[#allocation8 + $0x110] sm:$0x33]  ;;  %5394 = vmatpush1.bf16.msra.mxu1 %v6482_v60  ;;  %vm7972_vm8 = vmmov %vm7971_vm0 }
 0xa2a   : > { %v4829_v59 = vsel %vm4818_vm3, %v7740_v20, %v4828_v17  ;;  %4844 = vst.msk [vmem:[#allocation8 + $0xd8] sm:$0xcc] %vm7822_vm14, %v4830_v46  ;;  %v4171_v30 = vsel %vm7970_vm6, %v7752_v48, %v4170_v61  ;;  %4189 = vst.msk [vmem:[#allocation8 + $0x30] sm:$0xcc] %vm7822_vm14, %v4172_v42  ;;  %v4263_v2 = vpop.permute.xlu1 %4262  ;;  %v4372_v33 = vpop.permute.xlu0 %4371  ;;  %v4988_v31 = vld [vmem:[#allocation8 + $0x108] sm:$0x33]  ;;  %5395 = vmatprep.subr.bf16.mxu1 %v6490_v56  ;;  %v5828_v41 = vcombine.high %v4989_v6, %v4989_v6 }
 0xa2b   : > { %4843 = vst [vmem:[#allocation8 + $0xd0] sm:$0xcc] %v4829_v59  ;;  %4185 = vst [vmem:[#allocation8 + $0x28] sm:$0xcc] %v4171_v30  ;;  %v4270_v51 = vrot.slane %v4263_v2, 4  ;;  %v4379_v3 = vrot.slane %v4372_v33, 4  ;;  %v5826_v21 = vcombine.high %v4988_v31, %v4988_v31  ;;  %v5825_v20 = vcombine.low %v4988_v31, %v4988_v31  ;;  %5836 = vmatmul.mubr.msk.bf16.vlgmr.msra.gmra.mxu0 %vm5171_vm11, %v7764_v55 }
 0xa2c   : > { %v5827_v48 = vcombine.low %v4989_v6, %v4989_v6  ;;  %5454 = vmatprep.mubr.bf16.mxu0 %v6531_v57 }
 0xa2d   : > { %v4281_v4 = vsel %vm629_vm13, %v4269_v43, %v4270_v51  ;;  %v4283_v10 = vsel %vm7971_vm0, %v4263_v2, %v4270_v51  ;;  %v4391_v62 = vsel %vm629_vm13, %v4378_v25, %v4379_v3  ;;  %v4393_v40 = vsel %vm4381_vm10, %v4372_v33, %v4379_v3  ;;  %5839 = vmatprep.subr.msk.bf16.mxu0 %vm4074_vm7, %v5826_v21 }
 0xa2e   : > { %v4282_v27 = vsel %vm7972_vm8, %v7769_v5, %v4281_v4  ;;  %4297 = vst.msk [vmem:[#allocation8 + $0x68] sm:$0x33] %vm7515_vm1, %v4283_v10  ;;  %v4392_v13 = vsel %vm4381_vm10, %v7790_v32, %v4391_v62  ;;  %5396 = vmatpush1.bf16.msra.mxu1 %v6488_v49  ;;  %v5206_v43 = vsel %vm4074_vm7, %v5825_v20, 0  ;;  %v5212_v35 = vsel %vm4074_vm7, %v5827_v48, 0 }
 0xa2f   : > { %4407 = vst.msk [vmem:[#allocation8 + $0x68] sm:$0xcc] %vm7822_vm14, %v4393_v40  ;;  %4296 = vst [vmem:[#allocation8 + $0x60] sm:$0x33] %v4282_v27  ;;  %5433 = vmatpush1.bf16.msra.mxu0 %v5206_v43  ;;  %5841 = vmatprep.subr.msk.bf16.mxu1 %vm4074_vm7, %v5828_v41  ;;  %vm5538_vm13 = vcmask 1042432   ;;  %vm5539_vm7 = vcmask 129028  }
 0xa30   : > { %4406 = vst [vmem:[#allocation8 + $0x60] sm:$0xcc] %v4392_v13  ;;  %vm5540_vm1 = vmor %vm5539_vm7, %vm5538_vm13 }
 0xa31   : > { %5838 = vmatmul.mubr.msk.bf16.vlgmr.msra.gmra.mxu1 %vm5171_vm11, %v7764_v55  ;;  %v6497_v5 = vld [vmem:[#allocation8 + $0xa4] ss:$56 sps:$4 sm:$0xff]   ;;  %v6495_v28 = vld [vmem:[#allocation8 + $0xa0] ss:$56 sps:$4 sm:$0xff]  }
 0xa32   : > { %5474 = vmatpush1.bf16.msra.mxu1 %v5212_v35  ;;  %v6498_v32 = vld [vmem:[#allocation8 + $0x98] ss:$56 sps:$4 sm:$0xff]   ;;  %v6500_v25 = vld [vmem:[#allocation8 + $0x9c] ss:$56 sps:$4 sm:$0xff]   ;;  %5495 = vmatprep.mubr.bf16.mxu1 %v6531_v57 }
 0xa33   : > { %5475 = vmatprep.subr.bf16.mxu1 %v6497_v5  ;;  %5434 = vmatprep.subr.bf16.mxu0 %v6500_v25 }
 0xa34   : > { %5435 = vmatpush1.bf16.msra.mxu0 %v6498_v32 }
 0xa36   : > { %v6503_v50 = vld [vmem:[#allocation8 + $0x34] ss:$56 sps:$4 sm:$0xff]   ;;  %5476 = vmatpush1.bf16.msra.mxu1 %v6495_v28  ;;  %v6501_v18 = vld [vmem:[#allocation8 + $0x30] ss:$56 sps:$4 sm:$0xff]  }
 0xa37   : > { %v6504_v54 = vld [vmem:[#allocation8 + $0x28] ss:$56 sps:$4 sm:$0xff]   ;;  %v6506_v34 = vld [vmem:[#allocation8 + $0x2c] ss:$56 sps:$4 sm:$0xff]   ;;  %5477 = vmatprep.subr.bf16.mxu1 %v6503_v50  ;;  %v4994_v45 = vpop.permute.xlu1 %4993 }
 0xa38   : > { %5436 = vmatprep.subr.bf16.mxu0 %v6506_v34 }
 0xa39   : > { %5437 = vmatpush1.bf16.msra.mxu0 %v6504_v54 }
 0xa3a   : > { %5478 = vmatpush1.bf16.msra.mxu1 %v6501_v18 }
 0xa3c   : > { %5840 = vmatmul.mubr.msk.bf16.vlgmr.msra.gmra.mxu0 %vm5171_vm11, %v7764_v55 }
 0xa3d   : > { %5842 = vmatmul.mubr.msk.bf16.vlgmr.msra.gmra.mxu1 %vm5171_vm11, %v7764_v55 }
 0xad8   : > { %v5251_v57 = vpop.f32.mrf.mxu1 }
 0xad9   : > { %v5252_v16 = vadd.f32 %v5251_v57, %v4994_v45 }
 0xada   : > { %v5292_v8 = vpop.f32.mrf.mxu0  ;;  %v5253_v9 = vpop.f32.mrf.mxu1 }
 0xadb   : > { %v5254_v23 = vadd.f32 %v5253_v9, %v4994_v45  ;;  %v5293_v24 = vadd.f32 %v5292_v8, %v4994_v45 }
 0xadc   : > { %v5294_v11 = vpop.f32.mrf.mxu0  ;;  %v5255_v12 = vpop.f32.mrf.mxu1 }
 0xadd   : > { %v5518_v14 = vcombine.low %v5252_v16, %v5254_v23  ;;  %v5295_v55 = vadd.f32 %v5294_v11, %v4994_v45 }
 0xade   : > { %v5256_v39 = vpop.f32.mrf.mxu1  ;;  %v5296_v47 = vpop.f32.mrf.mxu0 }
 0xadf   : > { %5532 = vst [vmem:[%s7896_s20] sm:$0x77] %v5518_v14  ;;  %v5519_v29 = vcombine.low %v5293_v24, %v5295_v55 }
 0xae0   : > { %v5297_v58 = vpop.f32.mrf.mxu0 }
 0xae1   : > { %5533 = vst [vmem:[%s7896_s20 + $0x8] sm:$0x77] %v5519_v29 }
 0xae4   : > { %v5333_v44 = vpop.f32.mrf.mxu1 }
 0xae5   : > { %v5334_v19 = vadd.f32 %v5333_v44, %v4994_v45 }
 0xae6   : > { %v5335_v63 = vpop.f32.mrf.mxu1 }
 0xae7   : > { %v5336_v0 = vadd.f32 %v5335_v63, %v4994_v45 }
 0xae8   : > { %v5337_v1 = vpop.f32.mrf.mxu1 }
 0xae9   : > { %v5520_v52 = vcombine.low %v5334_v19, %v5336_v0 }
 0xaea   : > { %v5338_v53 = vpop.f32.mrf.mxu1 }
 0xaeb   : > { %5534 = vst [vmem:[%s7896_s20 + $0x10] sm:$0x77] %v5520_v52  ;;  %v5374_v26 = vpop.f32.mrf.mxu0 }
 0xaec   : > { %v5375_v37 = vadd.f32 %v5374_v26, %v4994_v45 }
 0xaed   : > { %v5376_v15 = vpop.f32.mrf.mxu0 }
 0xaee   : > { %v5377_v36 = vadd.f32 %v5376_v15, %v4994_v45 }
 0xaef   : > { %v5378_v22 = vpop.f32.mrf.mxu0 }
 0xaf0   : > { %v5521_v38 = vcombine.low %v5375_v37, %v5377_v36 }
 0xaf1   : > { %v5415_v7 = vpop.f32.mrf.mxu1  ;;  %v5379_v60 = vpop.f32.mrf.mxu0 }
 0xaf2   : > { %5535 = vst [vmem:[%s7896_s20 + $0x18] sm:$0x77] %v5521_v38  ;;  %v5416_v46 = vadd.f32 %v5415_v7, %v4994_v45 }
 0xaf3   : > { %v5417_v17 = vpop.f32.mrf.mxu1 }
 0xaf4   : > { %v5418_v61 = vadd.f32 %v5417_v17, %v4994_v45 }
 0xaf5   : > { %v5419_v42 = vpop.f32.mrf.mxu1 }
 0xaf6   : > { %v5522_v56 = vcombine.low %v5416_v46, %v5418_v61 }
 0xaf7   : > { %v5420_v6 = vpop.f32.mrf.mxu1 }
 0xaf8   : > { %5536 = vst [vmem:[%s7896_s20 + $0x20] sm:$0x77] %v5522_v56 }
 0xafc   : > { %v5456_v59 = vpop.f32.mrf.mxu0 }
 0xafd   : > { %v5497_v30 = vpop.f32.mrf.mxu1  ;;  %v5457_v33 = vadd.f32 %v5456_v59, %v4994_v45 }
 0xafe   : > { %v5458_v2 = vpop.f32.mrf.mxu0  ;;  %v5498_v3 = vadd.f32 %v5497_v30, %v4994_v45 }
 0xaff   : > { %v5459_v31 = vadd.f32 %v5458_v2, %v4994_v45  ;;  %v5499_v51 = vpop.f32.mrf.mxu1 }
 0xb00   : > { %v5500_v21 = vadd.f32 %v5499_v51, %v4994_v45  ;;  %v5460_v20 = vpop.f32.mrf.mxu0 }
 0xb01   : > { %v5523_v49 = vcombine.low %v5457_v33, %v5459_v31  ;;  %v5501_v41 = vpop.f32.mrf.mxu1 }
 0xb02   : > { %v5524_v48 = vcombine.low %v5498_v3, %v5500_v21  ;;  %v5461_v4 = vpop.f32.mrf.mxu0 }
 0xb03   : > { %5537 = vst [vmem:[%s7896_s20 + $0x28] sm:$0x77] %v5523_v49  ;;  %v5502_v10 = vpop.f32.mrf.mxu1 }
 0xb04   : > { %5541 = vst.msk [vmem:[%s7896_s20 + $0x30] sm:$0x77] %vm5540_vm1, %v5524_v48 }
 0xb05 PF: > { %s17_s24 = sadd.s32 1, %s6519_s24  }
 0xb06   : > { %p14_p4 = scmp.ge.s32.totalorder %s17_s24, 4  }
 0xb08   :  { %16 = sbr.rel (!%p14_p4) target bundleno = 1 (0x1), region = 78 }

</bundles_post_ra>
